<compile_context>
chip_gen: v7x
topology: tpu7x:2x2x1
jax: 0.10.0
libtpu: 0.0.40
codegen_flags: <defaults>
</compile_context>

<pallas_src>
import math
from functools import partial

import jax
import jax.numpy as jnp
from jax.experimental import pallas as pl
from jax.experimental.pallas import tpu as pltpu


# ----------------------------------------------------------------------------- 
# Kernel
# -----------------------------------------------------------------------------
def _cross_attn_kernel(q_in_ref, kv_in_ref, wq_ref, qb_ref, wkv_ref, kvb_ref,
                       wp_ref, pb_ref, o_ref, q_scr, kv_scr, ctx_scr,
                       *, n_head, scale):
    """One TB-block of fused (batch*frame) elements per grid step.

    q_in_ref : (TB, Nq, dim)  video tokens (temporal pos already added)
    kv_in_ref: (TB, Na, dim)  audio tokens (temporal pos already added)
    wq : (dim, Hd)     qb : (1, Hd)
    wkv: (dim, 2*Hd)   kvb: (1, 2*Hd)      # e-major: cols [0:Hd]=K, [Hd:2Hd]=V
    wp : (Hd, dim)     pb : (1, dim)
    o_ref  : (TB, Nq, dim)
    q_scr  : VMEM (TB*Nq, Hd)      staged Q (scale folded in)
    kv_scr : VMEM (TB*Na, 2*Hd)    staged K|V
    ctx_scr: VMEM (TB*Nq, Hd)      per-head attention context
    """
    tb, nq, dim = q_in_ref.shape
    na = kv_in_ref.shape[1]
    hd_all = wq_ref.shape[1]
    hd = hd_all // n_head
    cdt = q_scr.dtype                      # staging / MXU compute dtype

    # ---- Projections: one big GEMM each over the whole TB block -------------
    xq = q_in_ref[...].reshape(tb * nq, dim)
    xkv = kv_in_ref[...].reshape(tb * na, dim)

    q = jnp.dot(xq, wq_ref[...], preferred_element_type=jnp.float32)
    q = (q + qb_ref[...].astype(jnp.float32)) * scale     # scale applied once
    q_scr[...] = q.astype(cdt)

    kv = jnp.dot(xkv, wkv_ref[...], preferred_element_type=jnp.float32)
    kv_scr[...] = (kv + kvb_ref[...].astype(jnp.float32)).astype(cdt)

    # ---- Attention: static loops over TB elements and lane-dense head groups
    if hd >= 128:
        g = 1
    else:
        g = 1
        for d in range(1, n_head + 1):
            if n_head % d == 0 and d * hd <= 128:
                g = d                       # largest divisor with width <= 128

    for b in range(tb):
        q0, q1 = b * nq, (b + 1) * nq
        k0, k1 = b * na, (b + 1) * na
        for g0 in range(0, n_head, g):
            parts = []
            for h in range(g0, g0 + g):
                h0, h1 = h * hd, (h + 1) * hd
                qh = q_scr[q0:q1, h0:h1]                            # (nq, hd)
                kh = kv_scr[k0:k1, h0:h1]                           # (na, hd)
                vh = kv_scr[k0:k1, hd_all + h0:hd_all + h1]         # (na, hd)
                s = jax.lax.dot_general(qh, kh, (((1,), (1,)), ((), ())),
                                        preferred_element_type=jnp.float32)
                s = s - jnp.max(s, axis=-1, keepdims=True)
                e = jnp.exp(s)
                den = jnp.sum(e, axis=-1, keepdims=True)
                inv = pl.reciprocal(den, approx=True)
                inv = inv * (2.0 - den * inv)   # one Newton step -> f32-grade
                p = (e * inv).astype(cdt)
                parts.append(jnp.dot(p, vh, preferred_element_type=jnp.float32))
            blk = parts[0] if g == 1 else jnp.concatenate(parts, axis=-1)
            ctx_scr[q0:q1, g0 * hd:(g0 + g) * hd] = blk.astype(cdt)

    # ---- Output projection: one lane-dense GEMM + store ---------------------
    y = jnp.dot(ctx_scr[...], wp_ref[...], preferred_element_type=jnp.float32)
    y = y + pb_ref[...].astype(jnp.float32)
    o_ref[...] = y.reshape(tb, nq, dim).astype(o_ref.dtype)


# ----------------------------------------------------------------------------- 
# Wrapper
# -----------------------------------------------------------------------------
def _tpu_tuning():
    """(tb_max, vmem_ceiling_bytes) for the current TPU generation."""
    try:
        kind = jax.devices()[0].device_kind.lower()
    except Exception:
        kind = ""
    if "v7" in kind:                       # 64 MiB VMEM/TC: smaller blocks, slack
        return 4, (56 << 20)
    return 8, (100 << 20)                  # v5e / v6e: 128 MiB physical VMEM


def _pick_tb(bt, tb_max):
    divs = [d for d in range(1, min(bt, tb_max) + 1) if bt % d == 0]
    even = [d for d in divs if (bt // d) % 2 == 0]   # balanced megacore split
    return max(even) if even else max(divs)


def fused_cross_attention(q_tokens, kv_tokens, wq, qb, wkv, kvb, wp, pb,
                          *, n_head, scale, tb=None):
    """q_tokens: (BT, Nq, dim); kv_tokens: (BT, Na, dim) -> (BT, Nq, dim)."""
    BT, Nq, dim = q_tokens.shape
    BT2, Na, dim2 = kv_tokens.shape
    assert BT == BT2 and dim == dim2, "query/key-value batch or dim mismatch"
    hd_all = wq.shape[1]
    assert hd_all % n_head == 0

    tb_max, vmem_ceiling = _tpu_tuning()
    if tb is None:
        tb = _pick_tb(BT, tb_max)
    assert BT % tb == 0

    cdt = q_tokens.dtype                   # staging dtype (bf16 in production)
    kernel = partial(_cross_attn_kernel, n_head=n_head, scale=scale)

    # VMEM budget: double-buffered input AND output tiles, worst-case two weight
    # buffers, all scratch, plus slack for Mosaic internal scratch.
    itm = q_tokens.dtype.itemsize
    witm = wq.dtype.itemsize
    bitm = qb.dtype.itemsize
    citm = jnp.dtype(cdt).itemsize
    est = (2 * tb * (Nq + Na) * dim * itm
           + 2 * tb * Nq * dim * itm
           + 2 * (dim * hd_all + dim * 2 * hd_all + hd_all * dim) * witm
           + 2 * (hd_all + 2 * hd_all + dim) * bitm
           + (2 * tb * Nq * hd_all + tb * Na * 2 * hd_all) * citm
           + (4 << 20))
    vmem_limit = int(min(max(est, 16 << 20), vmem_ceiling))

    def _call(weight_mode):
        wkw = {} if weight_mode is None else {"pipeline_mode": weight_mode}
        in_specs = [
            pl.BlockSpec((tb, Nq, dim), lambda b: (b, 0, 0)),          # video tile
            pl.BlockSpec((tb, Na, dim), lambda b: (b, 0, 0)),          # audio tile
            pl.BlockSpec((dim, hd_all), lambda b: (0, 0), **wkw),      # wq resident
            pl.BlockSpec((1, hd_all), lambda b: (0, 0), **wkw),        # q_bias
            pl.BlockSpec((dim, 2 * hd_all), lambda b: (0, 0), **wkw),  # wkv resident
            pl.BlockSpec((1, 2 * hd_all), lambda b: (0, 0), **wkw),    # kv_bias
            pl.BlockSpec((hd_all, dim), lambda b: (0, 0), **wkw),      # wp resident
            pl.BlockSpec((1, dim), lambda b: (0, 0), **wkw),           # proj_bias
        ]
        return pl.pallas_call(
            kernel,
            out_shape=jax.ShapeDtypeStruct((BT, Nq, dim), q_tokens.dtype),
            grid=(BT // tb,),
            in_specs=in_specs,
            out_specs=pl.BlockSpec((tb, Nq, dim), lambda b: (b, 0, 0)),
            scratch_shapes=[
                pltpu.VMEM((tb * Nq, hd_all), cdt),       # staged Q
                pltpu.VMEM((tb * Na, 2 * hd_all), cdt),   # staged K|V
                pltpu.VMEM((tb * Nq, hd_all), cdt),       # attention context
            ],
            compiler_params=pltpu.CompilerParams(
                dimension_semantics=("parallel",),
                vmem_limit_bytes=vmem_limit),
        )(q_tokens, kv_tokens, wq, qb.reshape(1, -1), wkv, kvb.reshape(1, -1),
          wp, pb.reshape(1, -1))

    try:
        # Resident weights never change across the grid -> single buffer.
        return _call(pl.Buffered(1))
    except Exception:
        # TODO(synk): pl.Buffered(1) rejected by this jax version; fall back to
        # default double-buffered weights (correct, just more VMEM resident).
        return _call(None)


def cross_attention_audio2t_forward(t_x, audio, params, *, num_frames,
                                    spec_frames, n_head):
    """Default-config forward of CrossAttentionAudio2T (non-all-frame path)."""
    # TODO(synk): attn_all_frame=True / time-embedding config branches (extra
    # layout + concat work only) are not implemented in this kernel path.
    B, TN, dim = t_x.shape
    t = num_frames // 2
    n = TN // t
    assert spec_frames == t, "non-all-frame path requires spec_frames == num_frames // 2"

    head_dim = dim // n_head
    scale = head_dim ** (-0.5)

    audio_pat = audio[2:]                    # drop the two leading audio tokens
    Na = audio_pat.shape[0]

    # video: 'b (t n) d -> b n t d' (+ temporal pos) -> '(b t) n d'
    tx = t_x.reshape(B, t, n, dim).transpose(0, 2, 1, 3)
    tx = tx + params["vmae_temporal_pos"]
    tx = tx.transpose(0, 2, 1, 3).reshape(B * t, n, dim)

    # audio: 'n (b t) d -> b n t d' (+ temporal pos) -> '(b t) n d'
    ap = audio_pat.reshape(Na, B, spec_frames, dim).transpose(1, 0, 2, 3)
    ap = ap + params["audio_temporal_pos"]
    ap = ap.transpose(0, 2, 1, 3).reshape(B * spec_frames, Na, dim)

    out = fused_cross_attention(
        tx, ap,
        params["wq"], params["q_bias"],
        params["wkv"], params["kv_bias"],
        params["wp"], params["proj_bias"],
        n_head=n_head, scale=scale)

    # '(b t) n d -> b (t n) d'
    return out.reshape(B, t * n, dim)


# ----------------------------------------------------------------------------- 
# Parameters & pure-JAX reference
# -----------------------------------------------------------------------------
def init_params(key, dim, n_head, num_frames, spec_frames, dtype=jnp.float32):
    """Weights as (in_features, out_features), i.e. PyTorch W transposed.

    NOTE: wkv output channels must be e-major ('e h d'): columns [0:hd_all]
    produce K and [hd_all:2*hd_all] produce V, matching the module's
    rearrange 'b n (e h d) -> e b h n d'.
    """
    t = num_frames // 2
    head_dim = dim // n_head
    scale = head_dim ** (-0.5)
    hd_all = head_dim * n_head
    ks = jax.random.split(key, 6)
    lim = 1.0 / math.sqrt(dim)
    limp = 1.0 / math.sqrt(hd_all)
    return dict(
        vmae_temporal_pos=scale * jax.random.normal(ks[0], (t, dim), dtype),
        audio_temporal_pos=scale * jax.random.normal(ks[1], (spec_frames, dim), dtype),
        wq=jax.random.uniform(ks[2], (dim, hd_all), dtype, -lim, lim),
        q_bias=jnp.zeros((hd_all,), dtype),
        wkv=jax.random.uniform(ks[3], (dim, 2 * hd_all), dtype, -lim, lim),
        kv_bias=jnp.zeros((2 * hd_all,), dtype),
        wp=jax.random.uniform(ks[4], (hd_all, dim), dtype, -limp, limp),
        proj_bias=jax.random.uniform(ks[5], (dim,), dtype, -limp, limp),
    )


def reference_forward(t_x, audio, params, *, num_frames, spec_frames, n_head):
    """Pure-JAX reference mirroring the PyTorch module (default config)."""
    HI = jax.lax.Precision.HIGHEST
    B, TN, dim = t_x.shape
    t = num_frames // 2
    n = TN // t
    head_dim = dim // n_head
    scale = head_dim ** (-0.5)
    hd_all = head_dim * n_head

    audio_pat = audio[2:]
    Na = audio_pat.shape[0]
    tx = t_x.reshape(B, t, n, dim).transpose(0, 2, 1, 3) + params["vmae_temporal_pos"]
    tx = tx.transpose(0, 2, 1, 3).reshape(B * t, n, dim)
    ap = (audio_pat.reshape(Na, B, spec_frames, dim).transpose(1, 0, 2, 3)
          + params["audio_temporal_pos"])
    ap = ap.transpose(0, 2, 1, 3).reshape(B * spec_frames, Na, dim)

    q = jnp.dot(tx, params["wq"], precision=HI) + params["q_bias"]
    kv = jnp.dot(ap, params["wkv"], precision=HI) + params["kv_bias"]
    q = q.reshape(B * t, n, n_head, head_dim).transpose(0, 2, 1, 3)              # b h n d
    kv = kv.reshape(B * t, Na, 2, n_head, head_dim).transpose(2, 0, 3, 1, 4)     # e b h n d
    k, v = kv[0], kv[1]
    q = q * scale
    attn = jnp.einsum("bhnd,bhmd->bhnm", q, k, precision=HI)
    attn = jax.nn.softmax(attn, axis=-1)
    ctx = jnp.einsum("bhnm,bhmd->bhnd", attn, v, precision=HI)
    ctx = ctx.transpose(0, 2, 1, 3).reshape(B * t, n, hd_all)
    out = jnp.dot(ctx, params["wp"], precision=HI) + params["proj_bias"]
    return out.reshape(B, t * n, dim)


if __name__ == "__main__":
    key = jax.random.PRNGKey(0)
    k_tx, k_audio, k_param = jax.random.split(key, 3)

    # Small shapes consistent with the module's default (non-all-frame) path.
    B = 2
    dim = 32
    n_head = 4
    num_frames = 4            # -> t = 2 temporal query frames
    spec_frames = 2           # must equal num_frames // 2 in this path
    n_patches = 16            # video patches per frame
    audio_patch = 8           # audio patches per spec frame

    t = num_frames // 2
    t_x = jax.random.normal(k_tx, (B, t * n_patches, dim), jnp.float32)
    audio = jax.random.normal(k_audio, (audio_patch + 2, B * spec_frames, dim),
                              jnp.float32)

    params = init_params(k_param, dim, n_head, num_frames, spec_frames)

    out = cross_attention_audio2t_forward(
        t_x, audio, params,
        num_frames=num_frames, spec_frames=spec_frames, n_head=n_head)
    out = jax.block_until_ready(out)

    ref = reference_forward(
        t_x, audio, params,
        num_frames=num_frames, spec_frames=spec_frames, n_head=n_head)

    assert out.shape == (B, t * n_patches, dim)
    max_err = float(jnp.max(jnp.abs(out - ref)))
    assert jnp.allclose(out, ref, atol=1e-3, rtol=1e-3), f"max_err={max_err}"

    print("KERNEL_OK")
</pallas_src>

<mosaic_0001>
module attributes {stable_mosaic.version = 11 : i64} {
  func.func @_cross_attn_kernel(%arg0: i32, %arg1: memref<2x16x32xf32, #tpu.memory_space<vmem>>, %arg2: memref<2x8x32xf32, #tpu.memory_space<vmem>>, %arg3: memref<32x32xf32, #tpu.memory_space<vmem>>, %arg4: memref<1x32xf32, #tpu.memory_space<vmem>>, %arg5: memref<32x64xf32, #tpu.memory_space<vmem>>, %arg6: memref<1x64xf32, #tpu.memory_space<vmem>>, %arg7: memref<32x32xf32, #tpu.memory_space<vmem>>, %arg8: memref<1x32xf32, #tpu.memory_space<vmem>>, %arg9: memref<2x16x32xf32, #tpu.memory_space<vmem>>, %arg10: memref<32x32xf32, #tpu.memory_space<vmem>>, %arg11: memref<16x64xf32, #tpu.memory_space<vmem>>, %arg12: memref<32x32xf32, #tpu.memory_space<vmem>>) attributes {dimension_semantics = [#tpu.dimension_semantics<parallel>], iteration_bounds = array<i64: 2>, scalar_prefetch = 0 : i64, scratch_operands = 3 : i64, tpu.core_type = #tpu.core_type<tc>, window_params = [{transform_indices = @transform_0, window_bounds = array<i64: 2, 16, 32>}, {transform_indices = @transform_1, window_bounds = array<i64: 2, 8, 32>}, {pipeline_mode = #tpu.pipeline_mode<synchronous>, transform_indices = @transform_2, window_bounds = array<i64: 32, 32>}, {pipeline_mode = #tpu.pipeline_mode<synchronous>, transform_indices = @transform_3, window_bounds = array<i64: 1, 32>}, {pipeline_mode = #tpu.pipeline_mode<synchronous>, transform_indices = @transform_4, window_bounds = array<i64: 32, 64>}, {pipeline_mode = #tpu.pipeline_mode<synchronous>, transform_indices = @transform_5, window_bounds = array<i64: 1, 64>}, {pipeline_mode = #tpu.pipeline_mode<synchronous>, transform_indices = @transform_6, window_bounds = array<i64: 32, 32>}, {pipeline_mode = #tpu.pipeline_mode<synchronous>, transform_indices = @transform_7, window_bounds = array<i64: 1, 32>}, {transform_indices = @transform_8, window_bounds = array<i64: 2, 16, 32>}]} {
    %c0 = arith.constant 0 : index
    %c0_0 = arith.constant 0 : index
    %c0_1 = arith.constant 0 : index
    %0 = vector.load %arg1[%c0, %c0_0, %c0_1] : memref<2x16x32xf32, #tpu.memory_space<vmem>>, vector<2x16x32xf32>
    %1 = vector.shape_cast %0 : vector<2x16x32xf32> to vector<32x32xf32>
    %c0_2 = arith.constant 0 : index
    %c0_3 = arith.constant 0 : index
    %c0_4 = arith.constant 0 : index
    %2 = vector.load %arg2[%c0_2, %c0_3, %c0_4] : memref<2x8x32xf32, #tpu.memory_space<vmem>>, vector<2x8x32xf32>
    %3 = vector.shape_cast %2 : vector<2x8x32xf32> to vector<16x32xf32>
    %c0_5 = arith.constant 0 : index
    %c0_6 = arith.constant 0 : index
    %4 = vector.load %arg3[%c0_5, %c0_6] : memref<32x32xf32, #tpu.memory_space<vmem>>, vector<32x32xf32>
    %cst = arith.constant dense<0.000000e+00> : vector<32x32xf32>
    %5 = tpu.matmul %1, %4, %cst {dimension_numbers = #tpu.dot_dimension_numbers<[1], [0], [0], [1], [0, 0, 1, 1], [], []>} : vector<32x32xf32>, vector<32x32xf32>, vector<32x32xf32> -> vector<32x32xf32>
    %c0_7 = arith.constant 0 : index
    %c0_8 = arith.constant 0 : index
    %6 = vector.load %arg4[%c0_7, %c0_8] : memref<1x32xf32, #tpu.memory_space<vmem>>, vector<1x32xf32>
    %7 = vector.broadcast %6 : vector<1x32xf32> to vector<32x32xf32>
    %8 = arith.addf %5, %7 : vector<32x32xf32>
    %cst_9 = arith.constant 0.353553385 : f32
    %9 = vector.broadcast %cst_9 : f32 to vector<32x32xf32>
    %10 = arith.mulf %8, %9 : vector<32x32xf32>
    %c0_10 = arith.constant 0 : index
    %c0_11 = arith.constant 0 : index
    %11 = vector.load %arg10[%c0_10, %c0_11] : memref<32x32xf32, #tpu.memory_space<vmem>>, vector<32x32xf32>
    tpu.vector_store %arg10[%c0_10, %c0_11], %10 {strides = array<i32>} : memref<32x32xf32, #tpu.memory_space<vmem>>, vector<32x32xf32>,
    %c0_12 = arith.constant 0 : index
    %c0_13 = arith.constant 0 : index
    %12 = vector.load %arg5[%c0_12, %c0_13] : memref<32x64xf32, #tpu.memory_space<vmem>>, vector<32x64xf32>
    %cst_14 = arith.constant dense<0.000000e+00> : vector<16x64xf32>
    %13 = tpu.matmul %3, %12, %cst_14 {dimension_numbers = #tpu.dot_dimension_numbers<[1], [0], [0], [1], [0, 0, 1, 1], [], []>} : vector<16x32xf32>, vector<32x64xf32>, vector<16x64xf32> -> vector<16x64xf32>
    %c0_15 = arith.constant 0 : index
    %c0_16 = arith.constant 0 : index
    %14 = vector.load %arg6[%c0_15, %c0_16] : memref<1x64xf32, #tpu.memory_space<vmem>>, vector<1x64xf32>
    %15 = vector.broadcast %14 : vector<1x64xf32> to vector<16x64xf32>
    %16 = arith.addf %13, %15 : vector<16x64xf32>
    %c0_17 = arith.constant 0 : index
    %c0_18 = arith.constant 0 : index
    %17 = vector.load %arg11[%c0_17, %c0_18] : memref<16x64xf32, #tpu.memory_space<vmem>>, vector<16x64xf32>
    tpu.vector_store %arg11[%c0_17, %c0_18], %16 {strides = array<i32>} : memref<16x64xf32, #tpu.memory_space<vmem>>, vector<16x64xf32>,
    %c0_19 = arith.constant 0 : index
    %c0_20 = arith.constant 0 : index
    %18 = vector.load %arg10[%c0_19, %c0_20] : memref<32x32xf32, #tpu.memory_space<vmem>>, vector<16x8xf32>
    %c0_21 = arith.constant 0 : index
    %c0_22 = arith.constant 0 : index
    %19 = vector.load %arg11[%c0_21, %c0_22] : memref<16x64xf32, #tpu.memory_space<vmem>>, vector<8x8xf32>
    %c0_23 = arith.constant 0 : index
    %c32 = arith.constant 32 : index
    %20 = vector.load %arg11[%c0_23, %c32] : memref<16x64xf32, #tpu.memory_space<vmem>>, vector<8x8xf32>
    %cst_24 = arith.constant dense<0.000000e+00> : vector<16x8xf32>
    %21 = tpu.matmul %18, %19, %cst_24 {dimension_numbers = #tpu.dot_dimension_numbers<[1], [1], [0], [0], [0, 0, 1, 0], [], []>} : vector<16x8xf32>, vector<8x8xf32>, vector<16x8xf32> -> vector<16x8xf32>
    %cst_25 = arith.constant dense<0xFF800000> : vector<16xf32>
    %22 = vector.multi_reduction <maximumf>, %21, %cst_25 [1] : vector<16x8xf32> to vector<16xf32>
    %23 = vector.shape_cast %22 : vector<16xf32> to vector<16x1xf32>
    %24 = vector.broadcast %23 : vector<16x1xf32> to vector<16x8xf32>
    %25 = arith.subf %21, %24 : vector<16x8xf32>
    %26 = math.exp %25 : vector<16x8xf32>
    %cst_26 = arith.constant dense<0.000000e+00> : vector<16xf32>
    %27 = vector.multi_reduction <add>, %26, %cst_26 [1] : vector<16x8xf32> to vector<16xf32>
    %28 = vector.shape_cast %27 : vector<16xf32> to vector<16x1xf32>
    %29 = tpu.reciprocal %28 {approx = true} : vector<16x1xf32> -> vector<16x1xf32>
    %30 = arith.mulf %28, %29 : vector<16x1xf32>
    %cst_27 = arith.constant 2.000000e+00 : f32
    %31 = vector.broadcast %cst_27 : f32 to vector<16x1xf32>
    %32 = arith.subf %31, %30 : vector<16x1xf32>
    %33 = arith.mulf %29, %32 : vector<16x1xf32>
    %34 = vector.broadcast %33 : vector<16x1xf32> to vector<16x8xf32>
    %35 = arith.mulf %26, %34 : vector<16x8xf32>
    %cst_28 = arith.constant dense<0.000000e+00> : vector<16x8xf32>
    %36 = tpu.matmul %35, %20, %cst_28 {dimension_numbers = #tpu.dot_dimension_numbers<[1], [0], [0], [1], [0, 0, 1, 1], [], []>} : vector<16x8xf32>, vector<8x8xf32>, vector<16x8xf32> -> vector<16x8xf32>
    %c0_29 = arith.constant 0 : index
    %c8 = arith.constant 8 : index
    %37 = vector.load %arg10[%c0_29, %c8] : memref<32x32xf32, #tpu.memory_space<vmem>>, vector<16x8xf32>
    %c0_30 = arith.constant 0 : index
    %c8_31 = arith.constant 8 : index
    %38 = vector.load %arg11[%c0_30, %c8_31] : memref<16x64xf32, #tpu.memory_space<vmem>>, vector<8x8xf32>
    %c0_32 = arith.constant 0 : index
    %c40 = arith.constant 40 : index
    %39 = vector.load %arg11[%c0_32, %c40] : memref<16x64xf32, #tpu.memory_space<vmem>>, vector<8x8xf32>
    %cst_33 = arith.constant dense<0.000000e+00> : vector<16x8xf32>
    %40 = tpu.matmul %37, %38, %cst_33 {dimension_numbers = #tpu.dot_dimension_numbers<[1], [1], [0], [0], [0, 0, 1, 0], [], []>} : vector<16x8xf32>, vector<8x8xf32>, vector<16x8xf32> -> vector<16x8xf32>
    %cst_34 = arith.constant dense<0xFF800000> : vector<16xf32>
    %41 = vector.multi_reduction <maximumf>, %40, %cst_34 [1] : vector<16x8xf32> to vector<16xf32>
    %42 = vector.shape_cast %41 : vector<16xf32> to vector<16x1xf32>
    %43 = vector.broadcast %42 : vector<16x1xf32> to vector<16x8xf32>
    %44 = arith.subf %40, %43 : vector<16x8xf32>
    %45 = math.exp %44 : vector<16x8xf32>
    %cst_35 = arith.constant dense<0.000000e+00> : vector<16xf32>
    %46 = vector.multi_reduction <add>, %45, %cst_35 [1] : vector<16x8xf32> to vector<16xf32>
    %47 = vector.shape_cast %46 : vector<16xf32> to vector<16x1xf32>
    %48 = tpu.reciprocal %47 {approx = true} : vector<16x1xf32> -> vector<16x1xf32>
    %49 = arith.mulf %47, %48 : vector<16x1xf32>
    %cst_36 = arith.constant 2.000000e+00 : f32
    %50 = vector.broadcast %cst_36 : f32 to vector<16x1xf32>
    %51 = arith.subf %50, %49 : vector<16x1xf32>
    %52 = arith.mulf %48, %51 : vector<16x1xf32>
    %53 = vector.broadcast %52 : vector<16x1xf32> to vector<16x8xf32>
    %54 = arith.mulf %45, %53 : vector<16x8xf32>
    %cst_37 = arith.constant dense<0.000000e+00> : vector<16x8xf32>
    %55 = tpu.matmul %54, %39, %cst_37 {dimension_numbers = #tpu.dot_dimension_numbers<[1], [0], [0], [1], [0, 0, 1, 1], [], []>} : vector<16x8xf32>, vector<8x8xf32>, vector<16x8xf32> -> vector<16x8xf32>
    %c0_38 = arith.constant 0 : index
    %c16 = arith.constant 16 : index
    %56 = vector.load %arg10[%c0_38, %c16] : memref<32x32xf32, #tpu.memory_space<vmem>>, vector<16x8xf32>
    %c0_39 = arith.constant 0 : index
    %c16_40 = arith.constant 16 : index
    %57 = vector.load %arg11[%c0_39, %c16_40] : memref<16x64xf32, #tpu.memory_space<vmem>>, vector<8x8xf32>
    %c0_41 = arith.constant 0 : index
    %c48 = arith.constant 48 : index
    %58 = vector.load %arg11[%c0_41, %c48] : memref<16x64xf32, #tpu.memory_space<vmem>>, vector<8x8xf32>
    %cst_42 = arith.constant dense<0.000000e+00> : vector<16x8xf32>
    %59 = tpu.matmul %56, %57, %cst_42 {dimension_numbers = #tpu.dot_dimension_numbers<[1], [1], [0], [0], [0, 0, 1, 0], [], []>} : vector<16x8xf32>, vector<8x8xf32>, vector<16x8xf32> -> vector<16x8xf32>
    %cst_43 = arith.constant dense<0xFF800000> : vector<16xf32>
    %60 = vector.multi_reduction <maximumf>, %59, %cst_43 [1] : vector<16x8xf32> to vector<16xf32>
    %61 = vector.shape_cast %60 : vector<16xf32> to vector<16x1xf32>
    %62 = vector.broadcast %61 : vector<16x1xf32> to vector<16x8xf32>
    %63 = arith.subf %59, %62 : vector<16x8xf32>
    %64 = math.exp %63 : vector<16x8xf32>
    %cst_44 = arith.constant dense<0.000000e+00> : vector<16xf32>
    %65 = vector.multi_reduction <add>, %64, %cst_44 [1] : vector<16x8xf32> to vector<16xf32>
    %66 = vector.shape_cast %65 : vector<16xf32> to vector<16x1xf32>
    %67 = tpu.reciprocal %66 {approx = true} : vector<16x1xf32> -> vector<16x1xf32>
    %68 = arith.mulf %66, %67 : vector<16x1xf32>
    %cst_45 = arith.constant 2.000000e+00 : f32
    %69 = vector.broadcast %cst_45 : f32 to vector<16x1xf32>
    %70 = arith.subf %69, %68 : vector<16x1xf32>
    %71 = arith.mulf %67, %70 : vector<16x1xf32>
    %72 = vector.broadcast %71 : vector<16x1xf32> to vector<16x8xf32>
    %73 = arith.mulf %64, %72 : vector<16x8xf32>
    %cst_46 = arith.constant dense<0.000000e+00> : vector<16x8xf32>
    %74 = tpu.matmul %73, %58, %cst_46 {dimension_numbers = #tpu.dot_dimension_numbers<[1], [0], [0], [1], [0, 0, 1, 1], [], []>} : vector<16x8xf32>, vector<8x8xf32>, vector<16x8xf32> -> vector<16x8xf32>
    %c0_47 = arith.constant 0 : index
    %c24 = arith.constant 24 : index
    %75 = vector.load %arg10[%c0_47, %c24] : memref<32x32xf32, #tpu.memory_space<vmem>>, vector<16x8xf32>
    %c0_48 = arith.constant 0 : index
    %c24_49 = arith.constant 24 : index
    %76 = vector.load %arg11[%c0_48, %c24_49] : memref<16x64xf32, #tpu.memory_space<vmem>>, vector<8x8xf32>
    %c0_50 = arith.constant 0 : index
    %c56 = arith.constant 56 : index
    %77 = vector.load %arg11[%c0_50, %c56] : memref<16x64xf32, #tpu.memory_space<vmem>>, vector<8x8xf32>
    %cst_51 = arith.constant dense<0.000000e+00> : vector<16x8xf32>
    %78 = tpu.matmul %75, %76, %cst_51 {dimension_numbers = #tpu.dot_dimension_numbers<[1], [1], [0], [0], [0, 0, 1, 0], [], []>} : vector<16x8xf32>, vector<8x8xf32>, vector<16x8xf32> -> vector<16x8xf32>
    %cst_52 = arith.constant dense<0xFF800000> : vector<16xf32>
    %79 = vector.multi_reduction <maximumf>, %78, %cst_52 [1] : vector<16x8xf32> to vector<16xf32>
    %80 = vector.shape_cast %79 : vector<16xf32> to vector<16x1xf32>
    %81 = vector.broadcast %80 : vector<16x1xf32> to vector<16x8xf32>
    %82 = arith.subf %78, %81 : vector<16x8xf32>
    %83 = math.exp %82 : vector<16x8xf32>
    %cst_53 = arith.constant dense<0.000000e+00> : vector<16xf32>
    %84 = vector.multi_reduction <add>, %83, %cst_53 [1] : vector<16x8xf32> to vector<16xf32>
    %85 = vector.shape_cast %84 : vector<16xf32> to vector<16x1xf32>
    %86 = tpu.reciprocal %85 {approx = true} : vector<16x1xf32> -> vector<16x1xf32>
    %87 = arith.mulf %85, %86 : vector<16x1xf32>
    %cst_54 = arith.constant 2.000000e+00 : f32
    %88 = vector.broadcast %cst_54 : f32 to vector<16x1xf32>
    %89 = arith.subf %88, %87 : vector<16x1xf32>
    %90 = arith.mulf %86, %89 : vector<16x1xf32>
    %91 = vector.broadcast %90 : vector<16x1xf32> to vector<16x8xf32>
    %92 = arith.mulf %83, %91 : vector<16x8xf32>
    %cst_55 = arith.constant dense<0.000000e+00> : vector<16x8xf32>
    %93 = tpu.matmul %92, %77, %cst_55 {dimension_numbers = #tpu.dot_dimension_numbers<[1], [0], [0], [1], [0, 0, 1, 1], [], []>} : vector<16x8xf32>, vector<8x8xf32>, vector<16x8xf32> -> vector<16x8xf32>
    %94 = tpu.concatenate %36, %55, %74, %93 in 1 : vector<16x8xf32>, vector<16x8xf32>, vector<16x8xf32>, vector<16x8xf32> -> vector<16x32xf32>
    %c0_56 = arith.constant 0 : index
    %c0_57 = arith.constant 0 : index
    %95 = vector.load %arg12[%c0_56, %c0_57] : memref<32x32xf32, #tpu.memory_space<vmem>>, vector<16x32xf32>
    tpu.vector_store %arg12[%c0_56, %c0_57], %94 {strides = array<i32>} : memref<32x32xf32, #tpu.memory_space<vmem>>, vector<16x32xf32>,
    %c16_58 = arith.constant 16 : index
    %c0_59 = arith.constant 0 : index
    %96 = vector.load %arg10[%c16_58, %c0_59] : memref<32x32xf32, #tpu.memory_space<vmem>>, vector<16x8xf32>
    %c8_60 = arith.constant 8 : index
    %c0_61 = arith.constant 0 : index
    %97 = vector.load %arg11[%c8_60, %c0_61] : memref<16x64xf32, #tpu.memory_space<vmem>>, vector<8x8xf32>
    %c8_62 = arith.constant 8 : index
    %c32_63 = arith.constant 32 : index
    %98 = vector.load %arg11[%c8_62, %c32_63] : memref<16x64xf32, #tpu.memory_space<vmem>>, vector<8x8xf32>
    %cst_64 = arith.constant dense<0.000000e+00> : vector<16x8xf32>
    %99 = tpu.matmul %96, %97, %cst_64 {dimension_numbers = #tpu.dot_dimension_numbers<[1], [1], [0], [0], [0, 0, 1, 0], [], []>} : vector<16x8xf32>, vector<8x8xf32>, vector<16x8xf32> -> vector<16x8xf32>
    %cst_65 = arith.constant dense<0xFF800000> : vector<16xf32>
    %100 = vector.multi_reduction <maximumf>, %99, %cst_65 [1] : vector<16x8xf32> to vector<16xf32>
    %101 = vector.shape_cast %100 : vector<16xf32> to vector<16x1xf32>
    %102 = vector.broadcast %101 : vector<16x1xf32> to vector<16x8xf32>
    %103 = arith.subf %99, %102 : vector<16x8xf32>
    %104 = math.exp %103 : vector<16x8xf32>
    %cst_66 = arith.constant dense<0.000000e+00> : vector<16xf32>
    %105 = vector.multi_reduction <add>, %104, %cst_66 [1] : vector<16x8xf32> to vector<16xf32>
    %106 = vector.shape_cast %105 : vector<16xf32> to vector<16x1xf32>
    %107 = tpu.reciprocal %106 {approx = true} : vector<16x1xf32> -> vector<16x1xf32>
    %108 = arith.mulf %106, %107 : vector<16x1xf32>
    %cst_67 = arith.constant 2.000000e+00 : f32
    %109 = vector.broadcast %cst_67 : f32 to vector<16x1xf32>
    %110 = arith.subf %109, %108 : vector<16x1xf32>
    %111 = arith.mulf %107, %110 : vector<16x1xf32>
    %112 = vector.broadcast %111 : vector<16x1xf32> to vector<16x8xf32>
    %113 = arith.mulf %104, %112 : vector<16x8xf32>
    %cst_68 = arith.constant dense<0.000000e+00> : vector<16x8xf32>
    %114 = tpu.matmul %113, %98, %cst_68 {dimension_numbers = #tpu.dot_dimension_numbers<[1], [0], [0], [1], [0, 0, 1, 1], [], []>} : vector<16x8xf32>, vector<8x8xf32>, vector<16x8xf32> -> vector<16x8xf32>
    %c16_69 = arith.constant 16 : index
    %c8_70 = arith.constant 8 : index
    %115 = vector.load %arg10[%c16_69, %c8_70] : memref<32x32xf32, #tpu.memory_space<vmem>>, vector<16x8xf32>
    %c8_71 = arith.constant 8 : index
    %c8_72 = arith.constant 8 : index
    %116 = vector.load %arg11[%c8_71, %c8_72] : memref<16x64xf32, #tpu.memory_space<vmem>>, vector<8x8xf32>
    %c8_73 = arith.constant 8 : index
    %c40_74 = arith.constant 40 : index
    %117 = vector.load %arg11[%c8_73, %c40_74] : memref<16x64xf32, #tpu.memory_space<vmem>>, vector<8x8xf32>
    %cst_75 = arith.constant dense<0.000000e+00> : vector<16x8xf32>
    %118 = tpu.matmul %115, %116, %cst_75 {dimension_numbers = #tpu.dot_dimension_numbers<[1], [1], [0], [0], [0, 0, 1, 0], [], []>} : vector<16x8xf32>, vector<8x8xf32>, vector<16x8xf32> -> vector<16x8xf32>
    %cst_76 = arith.constant dense<0xFF800000> : vector<16xf32>
    %119 = vector.multi_reduction <maximumf>, %118, %cst_76 [1] : vector<16x8xf32> to vector<16xf32>
    %120 = vector.shape_cast %119 : vector<16xf32> to vector<16x1xf32>
    %121 = vector.broadcast %120 : vector<16x1xf32> to vector<16x8xf32>
    %122 = arith.subf %118, %121 : vector<16x8xf32>
    %123 = math.exp %122 : vector<16x8xf32>
    %cst_77 = arith.constant dense<0.000000e+00> : vector<16xf32>
    %124 = vector.multi_reduction <add>, %123, %cst_77 [1] : vector<16x8xf32> to vector<16xf32>
    %125 = vector.shape_cast %124 : vector<16xf32> to vector<16x1xf32>
    %126 = tpu.reciprocal %125 {approx = true} : vector<16x1xf32> -> vector<16x1xf32>
    %127 = arith.mulf %125, %126 : vector<16x1xf32>
    %cst_78 = arith.constant 2.000000e+00 : f32
    %128 = vector.broadcast %cst_78 : f32 to vector<16x1xf32>
    %129 = arith.subf %128, %127 : vector<16x1xf32>
    %130 = arith.mulf %126, %129 : vector<16x1xf32>
    %131 = vector.broadcast %130 : vector<16x1xf32> to vector<16x8xf32>
    %132 = arith.mulf %123, %131 : vector<16x8xf32>
    %cst_79 = arith.constant dense<0.000000e+00> : vector<16x8xf32>
    %133 = tpu.matmul %132, %117, %cst_79 {dimension_numbers = #tpu.dot_dimension_numbers<[1], [0], [0], [1], [0, 0, 1, 1], [], []>} : vector<16x8xf32>, vector<8x8xf32>, vector<16x8xf32> -> vector<16x8xf32>
    %c16_80 = arith.constant 16 : index
    %c16_81 = arith.constant 16 : index
    %134 = vector.load %arg10[%c16_80, %c16_81] : memref<32x32xf32, #tpu.memory_space<vmem>>, vector<16x8xf32>
    %c8_82 = arith.constant 8 : index
    %c16_83 = arith.constant 16 : index
    %135 = vector.load %arg11[%c8_82, %c16_83] : memref<16x64xf32, #tpu.memory_space<vmem>>, vector<8x8xf32>
    %c8_84 = arith.constant 8 : index
    %c48_85 = arith.constant 48 : index
    %136 = vector.load %arg11[%c8_84, %c48_85] : memref<16x64xf32, #tpu.memory_space<vmem>>, vector<8x8xf32>
    %cst_86 = arith.constant dense<0.000000e+00> : vector<16x8xf32>
    %137 = tpu.matmul %134, %135, %cst_86 {dimension_numbers = #tpu.dot_dimension_numbers<[1], [1], [0], [0], [0, 0, 1, 0], [], []>} : vector<16x8xf32>, vector<8x8xf32>, vector<16x8xf32> -> vector<16x8xf32>
    %cst_87 = arith.constant dense<0xFF800000> : vector<16xf32>
    %138 = vector.multi_reduction <maximumf>, %137, %cst_87 [1] : vector<16x8xf32> to vector<16xf32>
    %139 = vector.shape_cast %138 : vector<16xf32> to vector<16x1xf32>
    %140 = vector.broadcast %139 : vector<16x1xf32> to vector<16x8xf32>
    %141 = arith.subf %137, %140 : vector<16x8xf32>
    %142 = math.exp %141 : vector<16x8xf32>
    %cst_88 = arith.constant dense<0.000000e+00> : vector<16xf32>
    %143 = vector.multi_reduction <add>, %142, %cst_88 [1] : vector<16x8xf32> to vector<16xf32>
    %144 = vector.shape_cast %143 : vector<16xf32> to vector<16x1xf32>
    %145 = tpu.reciprocal %144 {approx = true} : vector<16x1xf32> -> vector<16x1xf32>
    %146 = arith.mulf %144, %145 : vector<16x1xf32>
    %cst_89 = arith.constant 2.000000e+00 : f32
    %147 = vector.broadcast %cst_89 : f32 to vector<16x1xf32>
    %148 = arith.subf %147, %146 : vector<16x1xf32>
    %149 = arith.mulf %145, %148 : vector<16x1xf32>
    %150 = vector.broadcast %149 : vector<16x1xf32> to vector<16x8xf32>
    %151 = arith.mulf %142, %150 : vector<16x8xf32>
    %cst_90 = arith.constant dense<0.000000e+00> : vector<16x8xf32>
    %152 = tpu.matmul %151, %136, %cst_90 {dimension_numbers = #tpu.dot_dimension_numbers<[1], [0], [0], [1], [0, 0, 1, 1], [], []>} : vector<16x8xf32>, vector<8x8xf32>, vector<16x8xf32> -> vector<16x8xf32>
    %c16_91 = arith.constant 16 : index
    %c24_92 = arith.constant 24 : index
    %153 = vector.load %arg10[%c16_91, %c24_92] : memref<32x32xf32, #tpu.memory_space<vmem>>, vector<16x8xf32>
    %c8_93 = arith.constant 8 : index
    %c24_94 = arith.constant 24 : index
    %154 = vector.load %arg11[%c8_93, %c24_94] : memref<16x64xf32, #tpu.memory_space<vmem>>, vector<8x8xf32>
    %c8_95 = arith.constant 8 : index
    %c56_96 = arith.constant 56 : index
    %155 = vector.load %arg11[%c8_95, %c56_96] : memref<16x64xf32, #tpu.memory_space<vmem>>, vector<8x8xf32>
    %cst_97 = arith.constant dense<0.000000e+00> : vector<16x8xf32>
    %156 = tpu.matmul %153, %154, %cst_97 {dimension_numbers = #tpu.dot_dimension_numbers<[1], [1], [0], [0], [0, 0, 1, 0], [], []>} : vector<16x8xf32>, vector<8x8xf32>, vector<16x8xf32> -> vector<16x8xf32>
    %cst_98 = arith.constant dense<0xFF800000> : vector<16xf32>
    %157 = vector.multi_reduction <maximumf>, %156, %cst_98 [1] : vector<16x8xf32> to vector<16xf32>
    %158 = vector.shape_cast %157 : vector<16xf32> to vector<16x1xf32>
    %159 = vector.broadcast %158 : vector<16x1xf32> to vector<16x8xf32>
    %160 = arith.subf %156, %159 : vector<16x8xf32>
    %161 = math.exp %160 : vector<16x8xf32>
    %cst_99 = arith.constant dense<0.000000e+00> : vector<16xf32>
    %162 = vector.multi_reduction <add>, %161, %cst_99 [1] : vector<16x8xf32> to vector<16xf32>
    %163 = vector.shape_cast %162 : vector<16xf32> to vector<16x1xf32>
    %164 = tpu.reciprocal %163 {approx = true} : vector<16x1xf32> -> vector<16x1xf32>
    %165 = arith.mulf %163, %164 : vector<16x1xf32>
    %cst_100 = arith.constant 2.000000e+00 : f32
    %166 = vector.broadcast %cst_100 : f32 to vector<16x1xf32>
    %167 = arith.subf %166, %165 : vector<16x1xf32>
    %168 = arith.mulf %164, %167 : vector<16x1xf32>
    %169 = vector.broadcast %168 : vector<16x1xf32> to vector<16x8xf32>
    %170 = arith.mulf %161, %169 : vector<16x8xf32>
    %cst_101 = arith.constant dense<0.000000e+00> : vector<16x8xf32>
    %171 = tpu.matmul %170, %155, %cst_101 {dimension_numbers = #tpu.dot_dimension_numbers<[1], [0], [0], [1], [0, 0, 1, 1], [], []>} : vector<16x8xf32>, vector<8x8xf32>, vector<16x8xf32> -> vector<16x8xf32>
    %172 = tpu.concatenate %114, %133, %152, %171 in 1 : vector<16x8xf32>, vector<16x8xf32>, vector<16x8xf32>, vector<16x8xf32> -> vector<16x32xf32>
    %c16_102 = arith.constant 16 : index
    %c0_103 = arith.constant 0 : index
    %173 = vector.load %arg12[%c16_102, %c0_103] : memref<32x32xf32, #tpu.memory_space<vmem>>, vector<16x32xf32>
    tpu.vector_store %arg12[%c16_102, %c0_103], %172 {strides = array<i32>} : memref<32x32xf32, #tpu.memory_space<vmem>>, vector<16x32xf32>,
    %c0_104 = arith.constant 0 : index
    %c0_105 = arith.constant 0 : index
    %174 = vector.load %arg12[%c0_104, %c0_105] : memref<32x32xf32, #tpu.memory_space<vmem>>, vector<32x32xf32>
    %c0_106 = arith.constant 0 : index
    %c0_107 = arith.constant 0 : index
    %175 = vector.load %arg7[%c0_106, %c0_107] : memref<32x32xf32, #tpu.memory_space<vmem>>, vector<32x32xf32>
    %cst_108 = arith.constant dense<0.000000e+00> : vector<32x32xf32>
    %176 = tpu.matmul %174, %175, %cst_108 {dimension_numbers = #tpu.dot_dimension_numbers<[1], [0], [0], [1], [0, 0, 1, 1], [], []>} : vector<32x32xf32>, vector<32x32xf32>, vector<32x32xf32> -> vector<32x32xf32>
    %c0_109 = arith.constant 0 : index
    %c0_110 = arith.constant 0 : index
    %177 = vector.load %arg8[%c0_109, %c0_110] : memref<1x32xf32, #tpu.memory_space<vmem>>, vector<1x32xf32>
    %178 = vector.broadcast %177 : vector<1x32xf32> to vector<32x32xf32>
    %179 = arith.addf %176, %178 : vector<32x32xf32>
    %180 = vector.shape_cast %179 : vector<32x32xf32> to vector<2x16x32xf32>
    %c0_111 = arith.constant 0 : index
    %c0_112 = arith.constant 0 : index
    %c0_113 = arith.constant 0 : index
    %181 = vector.load %arg9[%c0_111, %c0_112, %c0_113] : memref<2x16x32xf32, #tpu.memory_space<vmem>>, vector<2x16x32xf32>
    tpu.vector_store %arg9[%c0_111, %c0_112, %c0_113], %180 {strides = array<i32>} : memref<2x16x32xf32, #tpu.memory_space<vmem>>, vector<2x16x32xf32>,
    return
  }
  func.func @transform_0(%arg0: i32) -> (i32, i32, i32) {
    %c0_i32 = arith.constant 0 : i32
    %c0_i32_0 = arith.constant 0 : i32
    %c0_i32_1 = arith.constant 0 : i32
    return %arg0, %c0_i32, %c0_i32_0 : i32, i32, i32
  }
  func.func @transform_1(%arg0: i32) -> (i32, i32, i32) {
    %c0_i32 = arith.constant 0 : i32
    %c0_i32_0 = arith.constant 0 : i32
    %c0_i32_1 = arith.constant 0 : i32
    return %arg0, %c0_i32, %c0_i32_0 : i32, i32, i32
  }
  func.func @transform_2(%arg0: i32) -> (i32, i32) {
    %c0_i32 = arith.constant 0 : i32
    %c0_i32_0 = arith.constant 0 : i32
    %c0_i32_1 = arith.constant 0 : i32
    return %c0_i32, %c0_i32_0 : i32, i32
  }
  func.func @transform_3(%arg0: i32) -> (i32, i32) {
    %c0_i32 = arith.constant 0 : i32
    %c0_i32_0 = arith.constant 0 : i32
    %c0_i32_1 = arith.constant 0 : i32
    return %c0_i32, %c0_i32_0 : i32, i32
  }
  func.func @transform_4(%arg0: i32) -> (i32, i32) {
    %c0_i32 = arith.constant 0 : i32
    %c0_i32_0 = arith.constant 0 : i32
    %c0_i32_1 = arith.constant 0 : i32
    return %c0_i32, %c0_i32_0 : i32, i32
  }
  func.func @transform_5(%arg0: i32) -> (i32, i32) {
    %c0_i32 = arith.constant 0 : i32
    %c0_i32_0 = arith.constant 0 : i32
    %c0_i32_1 = arith.constant 0 : i32
    return %c0_i32, %c0_i32_0 : i32, i32
  }
  func.func @transform_6(%arg0: i32) -> (i32, i32) {
    %c0_i32 = arith.constant 0 : i32
    %c0_i32_0 = arith.constant 0 : i32
    %c0_i32_1 = arith.constant 0 : i32
    return %c0_i32, %c0_i32_0 : i32, i32
  }
  func.func @transform_7(%arg0: i32) -> (i32, i32) {
    %c0_i32 = arith.constant 0 : i32
    %c0_i32_0 = arith.constant 0 : i32
    %c0_i32_1 = arith.constant 0 : i32
    return %c0_i32, %c0_i32_0 : i32, i32
  }
  func.func @transform_8(%arg0: i32) -> (i32, i32, i32) {
    %c0_i32 = arith.constant 0 : i32
    %c0_i32_0 = arith.constant 0 : i32
    %c0_i32_1 = arith.constant 0 : i32
    return %arg0, %c0_i32, %c0_i32_0 : i32, i32, i32
  }
}

module attributes {stable_mosaic.version = 11 : i64} {
  func.func @_cross_attn_kernel(%arg0: i32, %arg1: memref<2x16x32xf32, #tpu.memory_space<vmem>>, %arg2: memref<2x8x32xf32, #tpu.memory_space<vmem>>, %arg3: memref<32x32xf32, #tpu.memory_space<vmem>>, %arg4: memref<1x32xf32, #tpu.memory_space<vmem>>, %arg5: memref<32x64xf32, #tpu.memory_space<vmem>>, %arg6: memref<1x64xf32, #tpu.memory_space<vmem>>, %arg7: memref<32x32xf32, #tpu.memory_space<vmem>>, %arg8: memref<1x32xf32, #tpu.memory_space<vmem>>, %arg9: memref<2x16x32xf32, #tpu.memory_space<vmem>>, %arg10: memref<32x32xf32, #tpu.memory_space<vmem>>, %arg11: memref<16x64xf32, #tpu.memory_space<vmem>>, %arg12: memref<32x32xf32, #tpu.memory_space<vmem>>) attributes {dimension_semantics = [#tpu.dimension_semantics<parallel>], iteration_bounds = array<i64: 2>, scalar_prefetch = 0 : i64, scratch_operands = 3 : i64, tpu.core_type = #tpu.core_type<tc>, window_params = [{transform_indices = @transform_0, window_bounds = array<i64: 2, 16, 32>}, {transform_indices = @transform_1, window_bounds = array<i64: 2, 8, 32>}, {pipeline_mode = #tpu.pipeline_mode<synchronous>, transform_indices = @transform_2, window_bounds = array<i64: 32, 32>}, {pipeline_mode = #tpu.pipeline_mode<synchronous>, transform_indices = @transform_3, window_bounds = array<i64: 1, 32>}, {pipeline_mode = #tpu.pipeline_mode<synchronous>, transform_indices = @transform_4, window_bounds = array<i64: 32, 64>}, {pipeline_mode = #tpu.pipeline_mode<synchronous>, transform_indices = @transform_5, window_bounds = array<i64: 1, 64>}, {pipeline_mode = #tpu.pipeline_mode<synchronous>, transform_indices = @transform_6, window_bounds = array<i64: 32, 32>}, {pipeline_mode = #tpu.pipeline_mode<synchronous>, transform_indices = @transform_7, window_bounds = array<i64: 1, 32>}, {transform_indices = @transform_8, window_bounds = array<i64: 2, 16, 32>}]} {
    %c0 = arith.constant 0 : index
    %c0_0 = arith.constant 0 : index
    %c0_1 = arith.constant 0 : index
    %0 = vector.load %arg1[%c0, %c0_0, %c0_1] : memref<2x16x32xf32, #tpu.memory_space<vmem>>, vector<2x16x32xf32>
    %1 = vector.shape_cast %0 : vector<2x16x32xf32> to vector<32x32xf32>
    %c0_2 = arith.constant 0 : index
    %c0_3 = arith.constant 0 : index
    %c0_4 = arith.constant 0 : index
    %2 = vector.load %arg2[%c0_2, %c0_3, %c0_4] : memref<2x8x32xf32, #tpu.memory_space<vmem>>, vector<2x8x32xf32>
    %3 = vector.shape_cast %2 : vector<2x8x32xf32> to vector<16x32xf32>
    %c0_5 = arith.constant 0 : index
    %c0_6 = arith.constant 0 : index
    %4 = vector.load %arg3[%c0_5, %c0_6] : memref<32x32xf32, #tpu.memory_space<vmem>>, vector<32x32xf32>
    %cst = arith.constant dense<0.000000e+00> : vector<32x32xf32>
    %5 = tpu.matmul %1, %4, %cst {dimension_numbers = #tpu.dot_dimension_numbers<[1], [0], [0], [1], [0, 0, 1, 1], [], []>} : vector<32x32xf32>, vector<32x32xf32>, vector<32x32xf32> -> vector<32x32xf32>
    %c0_7 = arith.constant 0 : index
    %c0_8 = arith.constant 0 : index
    %6 = vector.load %arg4[%c0_7, %c0_8] : memref<1x32xf32, #tpu.memory_space<vmem>>, vector<1x32xf32>
    %7 = vector.broadcast %6 : vector<1x32xf32> to vector<32x32xf32>
    %8 = arith.addf %5, %7 : vector<32x32xf32>
    %cst_9 = arith.constant 0.353553385 : f32
    %9 = vector.broadcast %cst_9 : f32 to vector<32x32xf32>
    %10 = arith.mulf %8, %9 : vector<32x32xf32>
    %c0_10 = arith.constant 0 : index
    %c0_11 = arith.constant 0 : index
    %11 = vector.load %arg10[%c0_10, %c0_11] : memref<32x32xf32, #tpu.memory_space<vmem>>, vector<32x32xf32>
    tpu.vector_store %arg10[%c0_10, %c0_11], %10 {strides = array<i32>} : memref<32x32xf32, #tpu.memory_space<vmem>>, vector<32x32xf32>,
    %c0_12 = arith.constant 0 : index
    %c0_13 = arith.constant 0 : index
    %12 = vector.load %arg5[%c0_12, %c0_13] : memref<32x64xf32, #tpu.memory_space<vmem>>, vector<32x64xf32>
    %cst_14 = arith.constant dense<0.000000e+00> : vector<16x64xf32>
    %13 = tpu.matmul %3, %12, %cst_14 {dimension_numbers = #tpu.dot_dimension_numbers<[1], [0], [0], [1], [0, 0, 1, 1], [], []>} : vector<16x32xf32>, vector<32x64xf32>, vector<16x64xf32> -> vector<16x64xf32>
    %c0_15 = arith.constant 0 : index
    %c0_16 = arith.constant 0 : index
    %14 = vector.load %arg6[%c0_15, %c0_16] : memref<1x64xf32, #tpu.memory_space<vmem>>, vector<1x64xf32>
    %15 = vector.broadcast %14 : vector<1x64xf32> to vector<16x64xf32>
    %16 = arith.addf %13, %15 : vector<16x64xf32>
    %c0_17 = arith.constant 0 : index
    %c0_18 = arith.constant 0 : index
    %17 = vector.load %arg11[%c0_17, %c0_18] : memref<16x64xf32, #tpu.memory_space<vmem>>, vector<16x64xf32>
    tpu.vector_store %arg11[%c0_17, %c0_18], %16 {strides = array<i32>} : memref<16x64xf32, #tpu.memory_space<vmem>>, vector<16x64xf32>,
    %c0_19 = arith.constant 0 : index
    %c0_20 = arith.constant 0 : index
    %18 = vector.load %arg10[%c0_19, %c0_20] : memref<32x32xf32, #tpu.memory_space<vmem>>, vector<16x8xf32>
    %c0_21 = arith.constant 0 : index
    %c0_22 = arith.constant 0 : index
    %19 = vector.load %arg11[%c0_21, %c0_22] : memref<16x64xf32, #tpu.memory_space<vmem>>, vector<8x8xf32>
    %c0_23 = arith.constant 0 : index
    %c32 = arith.constant 32 : index
    %20 = vector.load %arg11[%c0_23, %c32] : memref<16x64xf32, #tpu.memory_space<vmem>>, vector<8x8xf32>
    %cst_24 = arith.constant dense<0.000000e+00> : vector<16x8xf32>
    %21 = tpu.matmul %18, %19, %cst_24 {dimension_numbers = #tpu.dot_dimension_numbers<[1], [1], [0], [0], [0, 0, 1, 0], [], []>} : vector<16x8xf32>, vector<8x8xf32>, vector<16x8xf32> -> vector<16x8xf32>
    %cst_25 = arith.constant dense<0xFF800000> : vector<16xf32>
    %22 = vector.multi_reduction <maximumf>, %21, %cst_25 [1] : vector<16x8xf32> to vector<16xf32>
    %23 = vector.shape_cast %22 : vector<16xf32> to vector<16x1xf32>
    %24 = vector.broadcast %23 : vector<16x1xf32> to vector<16x8xf32>
    %25 = arith.subf %21, %24 : vector<16x8xf32>
    %26 = math.exp %25 : vector<16x8xf32>
    %cst_26 = arith.constant dense<0.000000e+00> : vector<16xf32>
    %27 = vector.multi_reduction <add>, %26, %cst_26 [1] : vector<16x8xf32> to vector<16xf32>
    %28 = vector.shape_cast %27 : vector<16xf32> to vector<16x1xf32>
    %29 = tpu.reciprocal %28 {approx = true} : vector<16x1xf32> -> vector<16x1xf32>
    %30 = arith.mulf %28, %29 : vector<16x1xf32>
    %cst_27 = arith.constant 2.000000e+00 : f32
    %31 = vector.broadcast %cst_27 : f32 to vector<16x1xf32>
    %32 = arith.subf %31, %30 : vector<16x1xf32>
    %33 = arith.mulf %29, %32 : vector<16x1xf32>
    %34 = vector.broadcast %33 : vector<16x1xf32> to vector<16x8xf32>
    %35 = arith.mulf %26, %34 : vector<16x8xf32>
    %cst_28 = arith.constant dense<0.000000e+00> : vector<16x8xf32>
    %36 = tpu.matmul %35, %20, %cst_28 {dimension_numbers = #tpu.dot_dimension_numbers<[1], [0], [0], [1], [0, 0, 1, 1], [], []>} : vector<16x8xf32>, vector<8x8xf32>, vector<16x8xf32> -> vector<16x8xf32>
    %c0_29 = arith.constant 0 : index
    %c8 = arith.constant 8 : index
    %37 = vector.load %arg10[%c0_29, %c8] : memref<32x32xf32, #tpu.memory_space<vmem>>, vector<16x8xf32>
    %c0_30 = arith.constant 0 : index
    %c8_31 = arith.constant 8 : index
    %38 = vector.load %arg11[%c0_30, %c8_31] : memref<16x64xf32, #tpu.memory_space<vmem>>, vector<8x8xf32>
    %c0_32 = arith.constant 0 : index
    %c40 = arith.constant 40 : index
    %39 = vector.load %arg11[%c0_32, %c40] : memref<16x64xf32, #tpu.memory_space<vmem>>, vector<8x8xf32>
    %cst_33 = arith.constant dense<0.000000e+00> : vector<16x8xf32>
    %40 = tpu.matmul %37, %38, %cst_33 {dimension_numbers = #tpu.dot_dimension_numbers<[1], [1], [0], [0], [0, 0, 1, 0], [], []>} : vector<16x8xf32>, vector<8x8xf32>, vector<16x8xf32> -> vector<16x8xf32>
    %cst_34 = arith.constant dense<0xFF800000> : vector<16xf32>
    %41 = vector.multi_reduction <maximumf>, %40, %cst_34 [1] : vector<16x8xf32> to vector<16xf32>
    %42 = vector.shape_cast %41 : vector<16xf32> to vector<16x1xf32>
    %43 = vector.broadcast %42 : vector<16x1xf32> to vector<16x8xf32>
    %44 = arith.subf %40, %43 : vector<16x8xf32>
    %45 = math.exp %44 : vector<16x8xf32>
    %cst_35 = arith.constant dense<0.000000e+00> : vector<16xf32>
    %46 = vector.multi_reduction <add>, %45, %cst_35 [1] : vector<16x8xf32> to vector<16xf32>
    %47 = vector.shape_cast %46 : vector<16xf32> to vector<16x1xf32>
    %48 = tpu.reciprocal %47 {approx = true} : vector<16x1xf32> -> vector<16x1xf32>
    %49 = arith.mulf %47, %48 : vector<16x1xf32>
    %cst_36 = arith.constant 2.000000e+00 : f32
    %50 = vector.broadcast %cst_36 : f32 to vector<16x1xf32>
    %51 = arith.subf %50, %49 : vector<16x1xf32>
    %52 = arith.mulf %48, %51 : vector<16x1xf32>
    %53 = vector.broadcast %52 : vector<16x1xf32> to vector<16x8xf32>
    %54 = arith.mulf %45, %53 : vector<16x8xf32>
    %cst_37 = arith.constant dense<0.000000e+00> : vector<16x8xf32>
    %55 = tpu.matmul %54, %39, %cst_37 {dimension_numbers = #tpu.dot_dimension_numbers<[1], [0], [0], [1], [0, 0, 1, 1], [], []>} : vector<16x8xf32>, vector<8x8xf32>, vector<16x8xf32> -> vector<16x8xf32>
    %c0_38 = arith.constant 0 : index
    %c16 = arith.constant 16 : index
    %56 = vector.load %arg10[%c0_38, %c16] : memref<32x32xf32, #tpu.memory_space<vmem>>, vector<16x8xf32>
    %c0_39 = arith.constant 0 : index
    %c16_40 = arith.constant 16 : index
    %57 = vector.load %arg11[%c0_39, %c16_40] : memref<16x64xf32, #tpu.memory_space<vmem>>, vector<8x8xf32>
    %c0_41 = arith.constant 0 : index
    %c48 = arith.constant 48 : index
    %58 = vector.load %arg11[%c0_41, %c48] : memref<16x64xf32, #tpu.memory_space<vmem>>, vector<8x8xf32>
    %cst_42 = arith.constant dense<0.000000e+00> : vector<16x8xf32>
    %59 = tpu.matmul %56, %57, %cst_42 {dimension_numbers = #tpu.dot_dimension_numbers<[1], [1], [0], [0], [0, 0, 1, 0], [], []>} : vector<16x8xf32>, vector<8x8xf32>, vector<16x8xf32> -> vector<16x8xf32>
    %cst_43 = arith.constant dense<0xFF800000> : vector<16xf32>
    %60 = vector.multi_reduction <maximumf>, %59, %cst_43 [1] : vector<16x8xf32> to vector<16xf32>
    %61 = vector.shape_cast %60 : vector<16xf32> to vector<16x1xf32>
    %62 = vector.broadcast %61 : vector<16x1xf32> to vector<16x8xf32>
    %63 = arith.subf %59, %62 : vector<16x8xf32>
    %64 = math.exp %63 : vector<16x8xf32>
    %cst_44 = arith.constant dense<0.000000e+00> : vector<16xf32>
    %65 = vector.multi_reduction <add>, %64, %cst_44 [1] : vector<16x8xf32> to vector<16xf32>
    %66 = vector.shape_cast %65 : vector<16xf32> to vector<16x1xf32>
    %67 = tpu.reciprocal %66 {approx = true} : vector<16x1xf32> -> vector<16x1xf32>
    %68 = arith.mulf %66, %67 : vector<16x1xf32>
    %cst_45 = arith.constant 2.000000e+00 : f32
    %69 = vector.broadcast %cst_45 : f32 to vector<16x1xf32>
    %70 = arith.subf %69, %68 : vector<16x1xf32>
    %71 = arith.mulf %67, %70 : vector<16x1xf32>
    %72 = vector.broadcast %71 : vector<16x1xf32> to vector<16x8xf32>
    %73 = arith.mulf %64, %72 : vector<16x8xf32>
    %cst_46 = arith.constant dense<0.000000e+00> : vector<16x8xf32>
    %74 = tpu.matmul %73, %58, %cst_46 {dimension_numbers = #tpu.dot_dimension_numbers<[1], [0], [0], [1], [0, 0, 1, 1], [], []>} : vector<16x8xf32>, vector<8x8xf32>, vector<16x8xf32> -> vector<16x8xf32>
    %c0_47 = arith.constant 0 : index
    %c24 = arith.constant 24 : index
    %75 = vector.load %arg10[%c0_47, %c24] : memref<32x32xf32, #tpu.memory_space<vmem>>, vector<16x8xf32>
    %c0_48 = arith.constant 0 : index
    %c24_49 = arith.constant 24 : index
    %76 = vector.load %arg11[%c0_48, %c24_49] : memref<16x64xf32, #tpu.memory_space<vmem>>, vector<8x8xf32>
    %c0_50 = arith.constant 0 : index
    %c56 = arith.constant 56 : index
    %77 = vector.load %arg11[%c0_50, %c56] : memref<16x64xf32, #tpu.memory_space<vmem>>, vector<8x8xf32>
    %cst_51 = arith.constant dense<0.000000e+00> : vector<16x8xf32>
    %78 = tpu.matmul %75, %76, %cst_51 {dimension_numbers = #tpu.dot_dimension_numbers<[1], [1], [0], [0], [0, 0, 1, 0], [], []>} : vector<16x8xf32>, vector<8x8xf32>, vector<16x8xf32> -> vector<16x8xf32>
    %cst_52 = arith.constant dense<0xFF800000> : vector<16xf32>
    %79 = vector.multi_reduction <maximumf>, %78, %cst_52 [1] : vector<16x8xf32> to vector<16xf32>
    %80 = vector.shape_cast %79 : vector<16xf32> to vector<16x1xf32>
    %81 = vector.broadcast %80 : vector<16x1xf32> to vector<16x8xf32>
    %82 = arith.subf %78, %81 : vector<16x8xf32>
    %83 = math.exp %82 : vector<16x8xf32>
    %cst_53 = arith.constant dense<0.000000e+00> : vector<16xf32>
    %84 = vector.multi_reduction <add>, %83, %cst_53 [1] : vector<16x8xf32> to vector<16xf32>
    %85 = vector.shape_cast %84 : vector<16xf32> to vector<16x1xf32>
    %86 = tpu.reciprocal %85 {approx = true} : vector<16x1xf32> -> vector<16x1xf32>
    %87 = arith.mulf %85, %86 : vector<16x1xf32>
    %cst_54 = arith.constant 2.000000e+00 : f32
    %88 = vector.broadcast %cst_54 : f32 to vector<16x1xf32>
    %89 = arith.subf %88, %87 : vector<16x1xf32>
    %90 = arith.mulf %86, %89 : vector<16x1xf32>
    %91 = vector.broadcast %90 : vector<16x1xf32> to vector<16x8xf32>
    %92 = arith.mulf %83, %91 : vector<16x8xf32>
    %cst_55 = arith.constant dense<0.000000e+00> : vector<16x8xf32>
    %93 = tpu.matmul %92, %77, %cst_55 {dimension_numbers = #tpu.dot_dimension_numbers<[1], [0], [0], [1], [0, 0, 1, 1], [], []>} : vector<16x8xf32>, vector<8x8xf32>, vector<16x8xf32> -> vector<16x8xf32>
    %94 = tpu.concatenate %36, %55, %74, %93 in 1 : vector<16x8xf32>, vector<16x8xf32>, vector<16x8xf32>, vector<16x8xf32> -> vector<16x32xf32>
    %c0_56 = arith.constant 0 : index
    %c0_57 = arith.constant 0 : index
    %95 = vector.load %arg12[%c0_56, %c0_57] : memref<32x32xf32, #tpu.memory_space<vmem>>, vector<16x32xf32>
    tpu.vector_store %arg12[%c0_56, %c0_57], %94 {strides = array<i32>} : memref<32x32xf32, #tpu.memory_space<vmem>>, vector<16x32xf32>,
    %c16_58 = arith.constant 16 : index
    %c0_59 = arith.constant 0 : index
    %96 = vector.load %arg10[%c16_58, %c0_59] : memref<32x32xf32, #tpu.memory_space<vmem>>, vector<16x8xf32>
    %c8_60 = arith.constant 8 : index
    %c0_61 = arith.constant 0 : index
    %97 = vector.load %arg11[%c8_60, %c0_61] : memref<16x64xf32, #tpu.memory_space<vmem>>, vector<8x8xf32>
    %c8_62 = arith.constant 8 : index
    %c32_63 = arith.constant 32 : index
    %98 = vector.load %arg11[%c8_62, %c32_63] : memref<16x64xf32, #tpu.memory_space<vmem>>, vector<8x8xf32>
    %cst_64 = arith.constant dense<0.000000e+00> : vector<16x8xf32>
    %99 = tpu.matmul %96, %97, %cst_64 {dimension_numbers = #tpu.dot_dimension_numbers<[1], [1], [0], [0], [0, 0, 1, 0], [], []>} : vector<16x8xf32>, vector<8x8xf32>, vector<16x8xf32> -> vector<16x8xf32>
    %cst_65 = arith.constant dense<0xFF800000> : vector<16xf32>
    %100 = vector.multi_reduction <maximumf>, %99, %cst_65 [1] : vector<16x8xf32> to vector<16xf32>
    %101 = vector.shape_cast %100 : vector<16xf32> to vector<16x1xf32>
    %102 = vector.broadcast %101 : vector<16x1xf32> to vector<16x8xf32>
    %103 = arith.subf %99, %102 : vector<16x8xf32>
    %104 = math.exp %103 : vector<16x8xf32>
    %cst_66 = arith.constant dense<0.000000e+00> : vector<16xf32>
    %105 = vector.multi_reduction <add>, %104, %cst_66 [1] : vector<16x8xf32> to vector<16xf32>
    %106 = vector.shape_cast %105 : vector<16xf32> to vector<16x1xf32>
    %107 = tpu.reciprocal %106 {approx = true} : vector<16x1xf32> -> vector<16x1xf32>
    %108 = arith.mulf %106, %107 : vector<16x1xf32>
    %cst_67 = arith.constant 2.000000e+00 : f32
    %109 = vector.broadcast %cst_67 : f32 to vector<16x1xf32>
    %110 = arith.subf %109, %108 : vector<16x1xf32>
    %111 = arith.mulf %107, %110 : vector<16x1xf32>
    %112 = vector.broadcast %111 : vector<16x1xf32> to vector<16x8xf32>
    %113 = arith.mulf %104, %112 : vector<16x8xf32>
    %cst_68 = arith.constant dense<0.000000e+00> : vector<16x8xf32>
    %114 = tpu.matmul %113, %98, %cst_68 {dimension_numbers = #tpu.dot_dimension_numbers<[1], [0], [0], [1], [0, 0, 1, 1], [], []>} : vector<16x8xf32>, vector<8x8xf32>, vector<16x8xf32> -> vector<16x8xf32>
    %c16_69 = arith.constant 16 : index
    %c8_70 = arith.constant 8 : index
    %115 = vector.load %arg10[%c16_69, %c8_70] : memref<32x32xf32, #tpu.memory_space<vmem>>, vector<16x8xf32>
    %c8_71 = arith.constant 8 : index
    %c8_72 = arith.constant 8 : index
    %116 = vector.load %arg11[%c8_71, %c8_72] : memref<16x64xf32, #tpu.memory_space<vmem>>, vector<8x8xf32>
    %c8_73 = arith.constant 8 : index
    %c40_74 = arith.constant 40 : index
    %117 = vector.load %arg11[%c8_73, %c40_74] : memref<16x64xf32, #tpu.memory_space<vmem>>, vector<8x8xf32>
    %cst_75 = arith.constant dense<0.000000e+00> : vector<16x8xf32>
    %118 = tpu.matmul %115, %116, %cst_75 {dimension_numbers = #tpu.dot_dimension_numbers<[1], [1], [0], [0], [0, 0, 1, 0], [], []>} : vector<16x8xf32>, vector<8x8xf32>, vector<16x8xf32> -> vector<16x8xf32>
    %cst_76 = arith.constant dense<0xFF800000> : vector<16xf32>
    %119 = vector.multi_reduction <maximumf>, %118, %cst_76 [1] : vector<16x8xf32> to vector<16xf32>
    %120 = vector.shape_cast %119 : vector<16xf32> to vector<16x1xf32>
    %121 = vector.broadcast %120 : vector<16x1xf32> to vector<16x8xf32>
    %122 = arith.subf %118, %121 : vector<16x8xf32>
    %123 = math.exp %122 : vector<16x8xf32>
    %cst_77 = arith.constant dense<0.000000e+00> : vector<16xf32>
    %124 = vector.multi_reduction <add>, %123, %cst_77 [1] : vector<16x8xf32> to vector<16xf32>
    %125 = vector.shape_cast %124 : vector<16xf32> to vector<16x1xf32>
    %126 = tpu.reciprocal %125 {approx = true} : vector<16x1xf32> -> vector<16x1xf32>
    %127 = arith.mulf %125, %126 : vector<16x1xf32>
    %cst_78 = arith.constant 2.000000e+00 : f32
    %128 = vector.broadcast %cst_78 : f32 to vector<16x1xf32>
    %129 = arith.subf %128, %127 : vector<16x1xf32>
    %130 = arith.mulf %126, %129 : vector<16x1xf32>
    %131 = vector.broadcast %130 : vector<16x1xf32> to vector<16x8xf32>
    %132 = arith.mulf %123, %131 : vector<16x8xf32>
    %cst_79 = arith.constant dense<0.000000e+00> : vector<16x8xf32>
    %133 = tpu.matmul %132, %117, %cst_79 {dimension_numbers = #tpu.dot_dimension_numbers<[1], [0], [0], [1], [0, 0, 1, 1], [], []>} : vector<16x8xf32>, vector<8x8xf32>, vector<16x8xf32> -> vector<16x8xf32>
    %c16_80 = arith.constant 16 : index
    %c16_81 = arith.constant 16 : index
    %134 = vector.load %arg10[%c16_80, %c16_81] : memref<32x32xf32, #tpu.memory_space<vmem>>, vector<16x8xf32>
    %c8_82 = arith.constant 8 : index
    %c16_83 = arith.constant 16 : index
    %135 = vector.load %arg11[%c8_82, %c16_83] : memref<16x64xf32, #tpu.memory_space<vmem>>, vector<8x8xf32>
    %c8_84 = arith.constant 8 : index
    %c48_85 = arith.constant 48 : index
    %136 = vector.load %arg11[%c8_84, %c48_85] : memref<16x64xf32, #tpu.memory_space<vmem>>, vector<8x8xf32>
    %cst_86 = arith.constant dense<0.000000e+00> : vector<16x8xf32>
    %137 = tpu.matmul %134, %135, %cst_86 {dimension_numbers = #tpu.dot_dimension_numbers<[1], [1], [0], [0], [0, 0, 1, 0], [], []>} : vector<16x8xf32>, vector<8x8xf32>, vector<16x8xf32> -> vector<16x8xf32>
    %cst_87 = arith.constant dense<0xFF800000> : vector<16xf32>
    %138 = vector.multi_reduction <maximumf>, %137, %cst_87 [1] : vector<16x8xf32> to vector<16xf32>
    %139 = vector.shape_cast %138 : vector<16xf32> to vector<16x1xf32>
    %140 = vector.broadcast %139 : vector<16x1xf32> to vector<16x8xf32>
    %141 = arith.subf %137, %140 : vector<16x8xf32>
    %142 = math.exp %141 : vector<16x8xf32>
    %cst_88 = arith.constant dense<0.000000e+00> : vector<16xf32>
    %143 = vector.multi_reduction <add>, %142, %cst_88 [1] : vector<16x8xf32> to vector<16xf32>
    %144 = vector.shape_cast %143 : vector<16xf32> to vector<16x1xf32>
    %145 = tpu.reciprocal %144 {approx = true} : vector<16x1xf32> -> vector<16x1xf32>
    %146 = arith.mulf %144, %145 : vector<16x1xf32>
    %cst_89 = arith.constant 2.000000e+00 : f32
    %147 = vector.broadcast %cst_89 : f32 to vector<16x1xf32>
    %148 = arith.subf %147, %146 : vector<16x1xf32>
    %149 = arith.mulf %145, %148 : vector<16x1xf32>
    %150 = vector.broadcast %149 : vector<16x1xf32> to vector<16x8xf32>
    %151 = arith.mulf %142, %150 : vector<16x8xf32>
    %cst_90 = arith.constant dense<0.000000e+00> : vector<16x8xf32>
    %152 = tpu.matmul %151, %136, %cst_90 {dimension_numbers = #tpu.dot_dimension_numbers<[1], [0], [0], [1], [0, 0, 1, 1], [], []>} : vector<16x8xf32>, vector<8x8xf32>, vector<16x8xf32> -> vector<16x8xf32>
    %c16_91 = arith.constant 16 : index
    %c24_92 = arith.constant 24 : index
    %153 = vector.load %arg10[%c16_91, %c24_92] : memref<32x32xf32, #tpu.memory_space<vmem>>, vector<16x8xf32>
    %c8_93 = arith.constant 8 : index
    %c24_94 = arith.constant 24 : index
    %154 = vector.load %arg11[%c8_93, %c24_94] : memref<16x64xf32, #tpu.memory_space<vmem>>, vector<8x8xf32>
    %c8_95 = arith.constant 8 : index
    %c56_96 = arith.constant 56 : index
    %155 = vector.load %arg11[%c8_95, %c56_96] : memref<16x64xf32, #tpu.memory_space<vmem>>, vector<8x8xf32>
    %cst_97 = arith.constant dense<0.000000e+00> : vector<16x8xf32>
    %156 = tpu.matmul %153, %154, %cst_97 {dimension_numbers = #tpu.dot_dimension_numbers<[1], [1], [0], [0], [0, 0, 1, 0], [], []>} : vector<16x8xf32>, vector<8x8xf32>, vector<16x8xf32> -> vector<16x8xf32>
    %cst_98 = arith.constant dense<0xFF800000> : vector<16xf32>
    %157 = vector.multi_reduction <maximumf>, %156, %cst_98 [1] : vector<16x8xf32> to vector<16xf32>
    %158 = vector.shape_cast %157 : vector<16xf32> to vector<16x1xf32>
    %159 = vector.broadcast %158 : vector<16x1xf32> to vector<16x8xf32>
    %160 = arith.subf %156, %159 : vector<16x8xf32>
    %161 = math.exp %160 : vector<16x8xf32>
    %cst_99 = arith.constant dense<0.000000e+00> : vector<16xf32>
    %162 = vector.multi_reduction <add>, %161, %cst_99 [1] : vector<16x8xf32> to vector<16xf32>
    %163 = vector.shape_cast %162 : vector<16xf32> to vector<16x1xf32>
    %164 = tpu.reciprocal %163 {approx = true} : vector<16x1xf32> -> vector<16x1xf32>
    %165 = arith.mulf %163, %164 : vector<16x1xf32>
    %cst_100 = arith.constant 2.000000e+00 : f32
    %166 = vector.broadcast %cst_100 : f32 to vector<16x1xf32>
    %167 = arith.subf %166, %165 : vector<16x1xf32>
    %168 = arith.mulf %164, %167 : vector<16x1xf32>
    %169 = vector.broadcast %168 : vector<16x1xf32> to vector<16x8xf32>
    %170 = arith.mulf %161, %169 : vector<16x8xf32>
    %cst_101 = arith.constant dense<0.000000e+00> : vector<16x8xf32>
    %171 = tpu.matmul %170, %155, %cst_101 {dimension_numbers = #tpu.dot_dimension_numbers<[1], [0], [0], [1], [0, 0, 1, 1], [], []>} : vector<16x8xf32>, vector<8x8xf32>, vector<16x8xf32> -> vector<16x8xf32>
    %172 = tpu.concatenate %114, %133, %152, %171 in 1 : vector<16x8xf32>, vector<16x8xf32>, vector<16x8xf32>, vector<16x8xf32> -> vector<16x32xf32>
    %c16_102 = arith.constant 16 : index
    %c0_103 = arith.constant 0 : index
    %173 = vector.load %arg12[%c16_102, %c0_103] : memref<32x32xf32, #tpu.memory_space<vmem>>, vector<16x32xf32>
    tpu.vector_store %arg12[%c16_102, %c0_103], %172 {strides = array<i32>} : memref<32x32xf32, #tpu.memory_space<vmem>>, vector<16x32xf32>,
    %c0_104 = arith.constant 0 : index
    %c0_105 = arith.constant 0 : index
    %174 = vector.load %arg12[%c0_104, %c0_105] : memref<32x32xf32, #tpu.memory_space<vmem>>, vector<32x32xf32>
    %c0_106 = arith.constant 0 : index
    %c0_107 = arith.constant 0 : index
    %175 = vector.load %arg7[%c0_106, %c0_107] : memref<32x32xf32, #tpu.memory_space<vmem>>, vector<32x32xf32>
    %cst_108 = arith.constant dense<0.000000e+00> : vector<32x32xf32>
    %176 = tpu.matmul %174, %175, %cst_108 {dimension_numbers = #tpu.dot_dimension_numbers<[1], [0], [0], [1], [0, 0, 1, 1], [], []>} : vector<32x32xf32>, vector<32x32xf32>, vector<32x32xf32> -> vector<32x32xf32>
    %c0_109 = arith.constant 0 : index
    %c0_110 = arith.constant 0 : index
    %177 = vector.load %arg8[%c0_109, %c0_110] : memref<1x32xf32, #tpu.memory_space<vmem>>, vector<1x32xf32>
    %178 = vector.broadcast %177 : vector<1x32xf32> to vector<32x32xf32>
    %179 = arith.addf %176, %178 : vector<32x32xf32>
    %180 = vector.shape_cast %179 : vector<32x32xf32> to vector<2x16x32xf32>
    %c0_111 = arith.constant 0 : index
    %c0_112 = arith.constant 0 : index
    %c0_113 = arith.constant 0 : index
    %181 = vector.load %arg9[%c0_111, %c0_112, %c0_113] : memref<2x16x32xf32, #tpu.memory_space<vmem>>, vector<2x16x32xf32>
    tpu.vector_store %arg9[%c0_111, %c0_112, %c0_113], %180 {strides = array<i32>} : memref<2x16x32xf32, #tpu.memory_space<vmem>>, vector<2x16x32xf32>,
    return
  }
  func.func @transform_0(%arg0: i32) -> (i32, i32, i32) {
    %c0_i32 = arith.constant 0 : i32
    %c0_i32_0 = arith.constant 0 : i32
    %c0_i32_1 = arith.constant 0 : i32
    return %arg0, %c0_i32, %c0_i32_0 : i32, i32, i32
  }
  func.func @transform_1(%arg0: i32) -> (i32, i32, i32) {
    %c0_i32 = arith.constant 0 : i32
    %c0_i32_0 = arith.constant 0 : i32
    %c0_i32_1 = arith.constant 0 : i32
    return %arg0, %c0_i32, %c0_i32_0 : i32, i32, i32
  }
  func.func @transform_2(%arg0: i32) -> (i32, i32) {
    %c0_i32 = arith.constant 0 : i32
    %c0_i32_0 = arith.constant 0 : i32
    %c0_i32_1 = arith.constant 0 : i32
    return %c0_i32, %c0_i32_0 : i32, i32
  }
  func.func @transform_3(%arg0: i32) -> (i32, i32) {
    %c0_i32 = arith.constant 0 : i32
    %c0_i32_0 = arith.constant 0 : i32
    %c0_i32_1 = arith.constant 0 : i32
    return %c0_i32, %c0_i32_0 : i32, i32
  }
  func.func @transform_4(%arg0: i32) -> (i32, i32) {
    %c0_i32 = arith.constant 0 : i32
    %c0_i32_0 = arith.constant 0 : i32
    %c0_i32_1 = arith.constant 0 : i32
    return %c0_i32, %c0_i32_0 : i32, i32
  }
  func.func @transform_5(%arg0: i32) -> (i32, i32) {
    %c0_i32 = arith.constant 0 : i32
    %c0_i32_0 = arith.constant 0 : i32
    %c0_i32_1 = arith.constant 0 : i32
    return %c0_i32, %c0_i32_0 : i32, i32
  }
  func.func @transform_6(%arg0: i32) -> (i32, i32) {
    %c0_i32 = arith.constant 0 : i32
    %c0_i32_0 = arith.constant 0 : i32
    %c0_i32_1 = arith.constant 0 : i32
    return %c0_i32, %c0_i32_0 : i32, i32
  }
  func.func @transform_7(%arg0: i32) -> (i32, i32) {
    %c0_i32 = arith.constant 0 : i32
    %c0_i32_0 = arith.constant 0 : i32
    %c0_i32_1 = arith.constant 0 : i32
    return %c0_i32, %c0_i32_0 : i32, i32
  }
  func.func @transform_8(%arg0: i32) -> (i32, i32, i32) {
    %c0_i32 = arith.constant 0 : i32
    %c0_i32_0 = arith.constant 0 : i32
    %c0_i32_1 = arith.constant 0 : i32
    return %arg0, %c0_i32, %c0_i32_0 : i32, i32, i32
  }
}

</mosaic_0001>

<bundles_post_ra>
// kernel: tpu_custom_call.1
= control target key start
LH: loop header
LB: loop body
LE: loop exit
PB: predicated region body
PF: predicated region fallthrough
CT: control target
= control target key end

     0   :  { %s3918_s0 = inlined_call_operand.hbm [shape: f32[4,16,32], index: 0, kind: input, shape index: {}]   ;;  %s3919_s1 = inlined_call_operand.hbm [shape: f32[4,8,32], index: 1, kind: input, shape index: {}]   ;;  %s3920_s2 = inlined_call_operand.hbm [shape: f32[32,32], index: 2, kind: input, shape index: {}]   ;;  %s3921_s3 = inlined_call_operand.vmem [shape: f32[1,32], index: 3, kind: input, shape index: {}]   ;;  %s3922_s4 = inlined_call_operand.hbm [shape: f32[32,64], index: 4, kind: input, shape index: {}]   ;;  %s3923_s5 = inlined_call_operand.vmem [shape: f32[1,64], index: 5, kind: input, shape index: {}]   ;;  %s3924_s6 = inlined_call_operand.hbm [shape: f32[32,32], index: 6, kind: input, shape index: {}]   ;;  %s3925_s7 = inlined_call_operand.vmem [shape: f32[1,32], index: 7, kind: input, shape index: {}]   ;;  %s3926_s8 = inlined_call_operand.hbm [shape: f32[4,16,32], index: 8, kind: output, shape index: {}]  }
   0x1   :  { %3934 = sst [smem:[#allocation22_spill]] %s3918_s0 }
   0x2   :  { %3935 = sst [smem:[#allocation23_spill]] %s3920_s2 }
   0x3   :  { %3936 = sst [smem:[#allocation24_spill]] %s3922_s4 }
   0x4   :  { %3937 = sst [smem:[#allocation25_spill]] %s3924_s6 }
   0x5   :  { %13 = vsyncpa [#allocation6], 0 }
   0x6   :  { %15 = vsyncpa [#allocation6 + $0x1], 0 }
   0x7   :  { %16 = vsyncpa [#allocation9], 0 }
   0x8   :  { %18 = vsyncpa [#allocation9 + $0x1], 0 }
   0x9   :  { %19 = vsyncpa [#allocation12], 0 }
   0xa   :  { %20 = vsyncpa [#allocation7], 0 }
   0xb   :  { %22 = vsyncpa [#allocation7 + $0x1], 0  ;;  %s3287_s27 = smov 0   ;;  %s3289_s28 = smov 0  }
   0xc   :  { %s3291_s29 = smov 0   ;;  %s3293_s30 = smov 0  }
   0xd LB: > { %3938 = sst [smem:[#allocation20_spill]] %s3209_s27  ;;  %s3308_s9 = sadd.s32 4294967295, %s3221_s30   ;;  %s3221_s30 = sphi %s3293_s30, %s3967_s30   ;;  %s3217_s29 = sphi %s3291_s29, %s3966_s29   ;;  %s3213_s28 = sphi %s3289_s28, %s3965_s28   ;;  %s3209_s27 = sphi %s3287_s27, %s3964_s27  }
   0xe   : > { %s2543_s10 = sadd.s32 4294967294, %s3221_s30   ;;  %p48_p0 = scmp.ne.s32.totalorder %s3213_s28, %s3209_s27 }
   0xf   : > { %p3927_p1 = scmp.eq.s32.totalorder %s3308_s9, 0  ;;  %p230_p3 = scmp.eq.s32.totalorder %s2543_s10, 1 }
  0x10   : > { %p2544_p5 = scmp.ge.s32.totalorder %s3221_s30, 1  ;;  %p237_p7 = scmp.lt.s32.totalorder %s3221_s30, 3 }
  0x11   : > { %p3317_p4 = por %p3927_p1, %p48_p0  ;;  %p3322_p6 = por %p230_p3, %p48_p0 }
  0x12   : > { %p3327_p8 = pnand %p2544_p5, %p237_p7  ;;  %s3223_s14 = smov [#allocation10]  }
  0x13   : > { %s3939_s11 = scalar_select %p3317_p4, 1, 0 }
  0x14   : > { %s3940_s12 = scalar_select %p3322_p6, 1, 0 }
  0x15   : > { %s3942_s13 = scalar_select %p3327_p8, 1, 0 }
  0x16   : > { %3941 = sst [smem:[#allocation21_spill]] %s3940_s12  ;;  %s249_s15 = sshll.u32 %s3223_s14, 4  ;;  %s3331_s15 = int_to_ptr.vmem [resolvable:$true] %s249_s15 }
  0x17   : > { %p2858_p9 = pneg %p3327_p8  ;;  %s3224_s17 = smov [#allocation11]  }
  0x18   : > { %s265_s18 = sshll.u32 %s3224_s17, 4  ;;  %s3225_s19 = smov [#allocation13]   ;;  %s3342_s18 = int_to_ptr.vmem [resolvable:$true] %s265_s18 }
  0x19   : > { %p3338_p11 = pnand %p2858_p9, %p3927_p1  ;;  %s3344_s20 = sshll.u32 %s3225_s19, 4  ;;  %s282_s20 = int_to_ptr.vmem [resolvable:$true] %s3344_s20 }
  0x1a   : > { %s3944_s2 = sld [smem:[#allocation23_spill]] }
  0x1b   : > { %p3354_p13 = pneg %p3338_p11 }
  0x20   : > { %s2999_s23 = scalar_lea.hbm %s3944_s2, 512 }
  0x21   : > { %p3000_p12 = scmp.ne.s32.totalorder %s3944_s2, %s2999_s23  ;;  %p3006_p5 = scmp.lt.u32.totalorder %s2999_s23, %s3944_s2 }
  0x23   : > { %p3002_p0 = pnand %p3354_p13, %p3000_p12 }
  0x25   : > { %p3003_p3 = pneg %p3002_p0 }
  0x27   : > { %p3008_p7 = pnand %p3006_p5, %p3003_p3 }
  0x29   : > { %3011 = shalt.err (!%p3008_p7)
}
  0x2a   : > { %s3012_s17 = scalar_lea.vmem %s3331_s15, 512  ;;  %p3020_p2 = scmp.lt.s32.totalorder %s3331_s15, %s3331_s15 }
  0x2b   : > { %p3013_p9 = scmp.ne.s32.totalorder %s3331_s15, %s3012_s17  ;;  %p3021_p6 = scmp.lt.s32.totalorder %s3012_s17, %s3012_s17 }
  0x2d   : > { %p3015_p10 = pnand %p3013_p9, %p3354_p13  ;;  %p3022_p12 = por %p3021_p6, %p3020_p2 }
  0x2f   : > { %p3016_p1 = pneg %p3015_p10 }
  0x31   : > { %p3023_p0 = pnand %p3022_p12, %p3016_p1 }
  0x33   : > { %3026 = shalt.err (!%p3023_p0)
}
  0x34   : > { %s3932_s19 = smov 128   ;;  %s3227_s21 = smov 8  }
  0x35   : > { %2861 = dma.hbm_to_vmem [thread:$0]  (!%p3338_p11), %s3944_s2, 512, %s3331_s15, [#allocation9], %s3932_s19, %s3932_s19, %s3227_s21  }
  0x36   : > { %s3946_s4 = sld [smem:[#allocation24_spill]] }
  0x3c   : > { %s3027_s10 = scalar_lea.hbm %s3946_s4, 512 }
  0x3d   : > { %p3028_p1 = scmp.ne.s32.totalorder %s3946_s4, %s3027_s10  ;;  %p3034_p10 = scmp.lt.u32.totalorder %s3027_s10, %s3946_s4 }
  0x3f   : > { %p3030_p2 = pnand %p3028_p1, %p3354_p13 }
  0x41   : > { %p3031_p6 = pneg %p3030_p2 }
  0x43   : > { %p3036_p3 = pnand %p3034_p10, %p3031_p6 }
  0x45   : > { %3039 = shalt.err (!%p3036_p3)
}
  0x46   : > { %s3040_s15 = scalar_lea.vmem %s3342_s18, 512  ;;  %p3048_p12 = scmp.lt.s32.totalorder %s3342_s18, %s3342_s18 }
  0x47   : > { %p3041_p5 = scmp.ne.s32.totalorder %s3342_s18, %s3040_s15  ;;  %p3049_p0 = scmp.lt.s32.totalorder %s3040_s15, %s3040_s15 }
  0x49   : > { %p3043_p7 = pnand %p3041_p5, %p3354_p13  ;;  %p3050_p1 = por %p3049_p0, %p3048_p12 }
  0x4b   : > { %p3044_p9 = pneg %p3043_p7 }
  0x4d   : > { %p3051_p2 = pnand %p3050_p1, %p3044_p9 }
  0x4f   : > { %3054 = shalt.err (!%p3051_p2)
}
  0x50   : > { %2864 = dma.hbm_to_vmem [thread:$0]  (!%p3338_p11), %s3946_s4, 512, %s3342_s18, [#allocation12], %s3932_s19, %s3932_s19, %s3227_s21  }
  0x51   : > { %s3947_s6 = sld [smem:[#allocation25_spill]] }
  0x57   : > { %s3055_s24 = scalar_lea.hbm %s3947_s6, 512 }
  0x58   : > { %p3056_p6 = scmp.ne.s32.totalorder %s3947_s6, %s3055_s24  ;;  %p3062_p5 = scmp.lt.u32.totalorder %s3055_s24, %s3947_s6 }
  0x5a   : > { %p3058_p10 = pnand %p3056_p6, %p3354_p13 }
  0x5c   : > { %p3059_p3 = pneg %p3058_p10 }
  0x5e   : > { %p3064_p7 = pnand %p3062_p5, %p3059_p3 }
  0x60   : > { %3067 = shalt.err (!%p3064_p7)
}
  0x61   : > { %s3068_s15 = scalar_lea.vmem %s282_s20, 512  ;;  %p3076_p1 = scmp.lt.s32.totalorder %s282_s20, %s282_s20 }
  0x62   : > { %p3069_p9 = scmp.ne.s32.totalorder %s282_s20, %s3068_s15  ;;  %p3077_p2 = scmp.lt.s32.totalorder %s3068_s15, %s3068_s15 }
  0x64   : > { %p3071_p12 = pnand %p3069_p9, %p3354_p13  ;;  %p3078_p4 = por %p3077_p2, %p3076_p1 }
  0x66   : > { %p3072_p0 = pneg %p3071_p12 }
  0x68   : > { %p3079_p8 = pnand %p3078_p4, %p3072_p0 }
  0x6a   : > { %3082 = shalt.err (!%p3079_p8)
}
  0x6b   : > { %2867 = dma.hbm_to_vmem [thread:$0]  (!%p3338_p11), %s3947_s6, 512, %s282_s20, [#allocation12], %s3932_s19, %s3932_s19, %s3227_s21  }
  0x6c   : > { %s3427_s26 = sadd.s32 1, %s3221_s30   ;;  %s35_s12 = sadd.s32 1, %s3217_s29 }
  0x6d   : > { %s32_s16 = ssub.s32 %s3221_s30, %s3427_s26  ;;  %p42_p8 = scmp.ne.s32.totalorder %s3217_s29, %s3213_s28 }
  0x6e   : > { %p33_p4 = scmp.eq.s32.totalorder %s32_s16, 0  ;;  %p43_p13 = scmp.eq.s32.totalorder %s3221_s30, 0 }
  0x6f   : > { %p2882_p6 = scmp.lt.s32.totalorder %s3221_s30, 2  ;;  %p3948_p3 = scmp.eq.s32.totalorder %s3308_s9, 1 }
  0x70   : > { %s3437_s22 = scalar_select %p33_p4, %s3217_s29, %s35_s12  }
  0x71   : > { %p44_p10 = por %p43_p13, %p42_p8  ;;  %p3441_p5 = por %p3948_p3, %p42_p8 }
  0x72   : > { %s3446_s24 = sand.u32 1, %s3217_s29   ;;  %s2623_s20 = sshll.u32 %s3221_s30, 9 }
  0x73   : > { %s2549_s25 = sshll.u32 %s3446_s24, 5  ;;  %s3950_s0 = sld [smem:[#allocation22_spill]] }
  0x74   : > { %s302_s15 = scalar_lea.vmem [#allocation5], %s2549_s25  ;;  %p3455_p11 = pnand %p2882_p6, %p44_p10 }
  0x75   : > { %s310_s18 = sshll.u32 %s302_s15, 4  ;;  %s299_s12 = scalar_lea.sflag [#allocation6], %s3446_s24  ;;  %s3459_s18 = int_to_ptr.vmem [resolvable:$true] %s310_s18 }
  0x76   : > { %p3085_p9 = pneg %p3455_p11 }
  0x79   : > { %s3453_s17 = scalar_lea.hbm %s3950_s0, %s2623_s20  ;;  %s3088_s10 = scalar_lea.hbm %s3950_s0, 1024 }
  0x7a   : > { %s3083_s19 = scalar_lea.hbm %s3453_s17, 512  ;;  %p3089_p1 = scmp.lt.u32.totalorder %s3453_s17, %s3950_s0 }
  0x7b   : > { %p3084_p7 = scmp.ne.s32.totalorder %s3453_s17, %s3083_s19  ;;  %p3090_p2 = scmp.lt.u32.totalorder %s3088_s10, %s3083_s19 }
  0x7c   : > { %p3092_p8 = scmp.lt.u32.totalorder %s3083_s19, %s3453_s17 }
  0x7d   : > { %p3086_p12 = pnand %p3085_p9, %p3084_p7  ;;  %p3091_p4 = por %p3090_p2, %p3089_p1 }
  0x7f   : > { %p3087_p0 = pneg %p3086_p12  ;;  %p3093_p13 = por %p3092_p8, %p3091_p4 }
  0x81   : > { %p3094_p6 = pnand %p3093_p13, %p3087_p0 }
  0x83   : > { %3097 = shalt.err (!%p3094_p6)
}
  0x84   : > { %s3098_s16 = scalar_lea.vmem %s3459_s18, 512  ;;  %s3228_s20 = smov [#allocation5]  }
  0x85   : > { %p3099_p10 = scmp.ne.s32.totalorder %s3459_s18, %s3098_s16  ;;  %s3103_s25 = sshll.u32 %s3228_s20, 4  ;;  %s3104_s25 = int_to_ptr.vmem [resolvable:$false] %s3103_s25 }
  0x86   : > { %s3105_s14 = scalar_lea.vmem %s3104_s25, 1024  ;;  %p3106_p12 = scmp.lt.s32.totalorder %s3459_s18, %s3104_s25 }
  0x87   : > { %p3101_p3 = pnand %p3099_p10, %p3085_p9  ;;  %p3107_p1 = scmp.lt.s32.totalorder %s3105_s14, %s3098_s16 }
  0x89   : > { %p3102_p7 = pneg %p3101_p3  ;;  %p3108_p2 = por %p3107_p1, %p3106_p12 }
  0x8b   : > { %p3109_p4 = pnand %p3108_p2, %p3102_p7 }
  0x8d   : > { %3112 = shalt.err (!%p3109_p4)
}
  0x8e   : > { %s3952_s19 = smov 128   ;;  %s2553_s10 = sshll.u32 %s3446_s24, 4 }
  0x8f   : > { %2871 = dma.hbm_to_vmem [thread:$0]  (!%p3455_p11), %s3453_s17, 512, %s3459_s18, %s299_s12, %s3952_s19, %s3952_s19, %s3227_s21  }
  0x90   : > { %s2624_s15 = sshll.u32 %s3221_s30, 8  ;;  %s324_s14 = scalar_lea.vmem [#allocation8], %s2553_s10 }
  0x91   : > { %s3498_s25 = scalar_lea.hbm %s3919_s1, %s2624_s15  ;;  %s331_s0 = sshll.u32 %s324_s14, 4  ;;  %s3500_s0 = int_to_ptr.vmem [resolvable:$true] %s331_s0 }
  0x92   : > { %s3953_s2 = sand.u32 1, %s3221_s30   ;;  %s3113_s6 = scalar_lea.hbm %s3498_s25, 256 }
  0x93   : > { %s3504_s4 = scalar_lea.sflag [#allocation9], %s3953_s2  ;;  %p3114_p0 = scmp.ne.s32.totalorder %s3498_s25, %s3113_s6 }
  0x94   : > { %s3118_s18 = scalar_lea.hbm %s3919_s1, 512  ;;  %p3119_p6 = scmp.lt.u32.totalorder %s3498_s25, %s3919_s1 }
  0x95   : > { %p3116_p8 = pnand %p3114_p0, %p3085_p9  ;;  %p3120_p10 = scmp.lt.u32.totalorder %s3118_s18, %s3113_s6 }
  0x96   : > { %p3122_p7 = scmp.lt.u32.totalorder %s3113_s6, %s3498_s25 }
  0x97   : > { %p3117_p13 = pneg %p3116_p8  ;;  %p3121_p3 = por %p3120_p10, %p3119_p6 }
  0x99   : > { %p3123_p12 = por %p3122_p7, %p3121_p3 }
  0x9b   : > { %p3124_p1 = pnand %p3123_p12, %p3117_p13 }
  0x9d   : > { %3127 = shalt.err (!%p3124_p1)
}
  0x9e   : > { %s3128_s2 = scalar_lea.vmem %s3500_s0, 256  ;;  %s3229_s10 = smov [#allocation8]  }
  0x9f   : > { %p3129_p2 = scmp.ne.s32.totalorder %s3500_s0, %s3128_s2  ;;  %s3133_s16 = sshll.u32 %s3229_s10, 4  ;;  %s3134_s16 = int_to_ptr.vmem [resolvable:$false] %s3133_s16 }
  0xa0   : > { %s3135_s20 = scalar_lea.vmem %s3134_s16, 512  ;;  %p3136_p8 = scmp.lt.s32.totalorder %s3500_s0, %s3134_s16 }
  0xa1   : > { %p3131_p4 = pnand %p3129_p2, %p3085_p9  ;;  %p3137_p6 = scmp.lt.s32.totalorder %s3135_s20, %s3128_s2 }
  0xa3   : > { %p3132_p0 = pneg %p3131_p4  ;;  %p3138_p10 = por %p3137_p6, %p3136_p8 }
  0xa5   : > { %p3139_p3 = pnand %p3138_p10, %p3132_p0 }
  0xa7   : > { %3142 = shalt.err (!%p3139_p3)
}
  0xa8   : > { %2874 = dma.hbm_to_vmem [thread:$0]  (!%p3455_p11), %s3498_s25, 256, %s3500_s0, %s3504_s4, %s3952_s19, %s3952_s19, %s3227_s21  }
  0xa9   : > { %p3954_p9 = scmp.ne.s32.totalorder %s3942_s13, 0 }
  0xaa   : > { %s3536_s6 = sand.u32 (!%p3954_p9), 1, %s3213_s28   ;;  %p3955_p13 = scmp.ne.s32.totalorder (!%p3954_p9), %s3939_s11, 0 }
  0xab   : > { %343 = sbr.rel (%p3954_p9) target bundleno = 1725 (0x6bd), region = 52  ;;  %s2557_s14 = sshll.u32 (!%p3954_p9), %s3536_s6, 5 }
  0xac   : > { %s346_s24 = scalar_lea.sflag (!%p3954_p9), [#allocation6], %s3536_s6  ;;  %s3542_s27 = scalar_lea.vmem (!%p3954_p9), [#allocation5], %s2557_s14 }
  0xb2   : > { %3188 = dma.done.wait (%p3955_p13), %s346_s24, 512  }
  0xb3   : > { %3190 = vsyncadd (%p3955_p13), %s346_s24, 4294966784  ;;  %s354_s0 = sand.u32 1, %s3308_s9   ;;  %s2558_s4 = sshll.u32 %s3536_s6, 4 }
  0xb4   : > { %s355_s13 = scalar_lea.sflag [#allocation9], %s354_s0  ;;  %s3550_s21 = scalar_lea.vmem [#allocation8], %s2558_s4 }
  0xb5   : > { %3192 = dma.done.wait (%p3955_p13), %s355_s13, 256  }
  0xb6   : > { %3194 = vsyncadd (%p3955_p13), %s355_s13, 4294967040  ;;  %p3956_p11 = scmp.eq.s32.totalorder %s3308_s9, 0 }
  0xb8   : > { %3196 = dma.done.wait (%p3956_p11), [#allocation9], 512   ;;  %p3957_p7 = pmov %p3956_p11 }
  0xba   : > { %3198 = vsyncadd (%p3957_p7), [#allocation9], 4294966784  ;;  %p3958_p12 = pmov %p3957_p7 }
  0xbb   : > { %p3959_p1 = pmov %p3957_p7 }
  0xbc   : > { %3200 = dma.done.wait (%p3958_p12), [#allocation12], 1024  }
  0xbd   : > { %3202 = vsyncadd (%p3959_p1), [#allocation12], 4294966272  ;;  %vm428_vm0 = vcmask 261120   ;;  %v417_v0 = vld [vmem:[#allocation10] sm:$0xff]  ;;  %v418_v1 = vld [vmem:[#allocation10 + $0x8] sm:$0xff]  ;;  %vm626_vm1 = vcmask 523264  }
  0xbe   : > { %v419_v2 = vld [vmem:[#allocation10 + $0x10] sm:$0xff]  ;;  %v2816_v3 = vpack.c.bf16 %v418_v1, %v417_v0  ;;  %v420_v4 = vld [vmem:[#allocation10 + $0x18] sm:$0xff]  ;;  %v411_v5 = vld [vmem:[%s3542_s27] sm:$0xff]  ;;  %vm632_vm2 = vcmask 64512   ;;  %s3230_s18 = smov 120   ;;  %s3231_s12 = smov 112  }
  0xbf   : > { %v2820_v6 = vpack.c.bf16 %v420_v4, %v419_v2  ;;  %2705 = vmatprep.mubr.msk.f32.mxu0 %vm428_vm0, %v411_v5  ;;  %v534_v7 = vld [vmem:[#allocation11] sm:$0xff]  ;;  %v535_v8 = vld [vmem:[#allocation11 + $0x8] sm:$0xff]  ;;  %v536_v10 = vld [vmem:[#allocation11 + $0x10] sm:$0xff]  ;;  %s3232_s15 = smov 104   ;;  %s3233_s2 = smov 96   ;;  %vm1452_vm3 = vcmask 130048  }
  0xc0   : > { %2817 = vmatprep.subr.bf16.mxu0 %v2816_v3  ;;  %v2824_v9 = vpack.c.bf16 %v535_v8, %v534_v7  ;;  %v537_v11 = vld [vmem:[#allocation11 + $0x18] sm:$0xff]  ;;  %v412_v12 = vld [vmem:[%s3542_s27 + $0x8] sm:$0xff]  ;;  %v413_v13 = vld [vmem:[%s3542_s27 + $0x10] sm:$0xff]  ;;  %s3234_s10 = smov 80   ;;  %s3235_s16 = smov 88   ;;  %vm1455_vm4 = vcmask 195584  }
  0xc1   : > { %2819 = vmatpush3.bf16.msra.mxu0 %v2816_v3  ;;  %v2828_v14 = vpack.c.bf16 %v537_v11, %v536_v10  ;;  %v414_v15 = vld [vmem:[%s3542_s27 + $0x18] sm:$0xff]  ;;  %v415_v16 = vld [vmem:[%s3550_s21] sm:$0xff]  ;;  %s3236_s20 = smov 72   ;;  %s3237_s24 = smov 8  }
  0xc2   : > { %2821 = vmatprep.subr.bf16.mxu0 %v2820_v6  ;;  %v416_v17 = vld [vmem:[%s3550_s21 + $0x8] sm:$0xff]  ;;  %v2563_v18 = vld [vmem:[%s3921_s3] ss:$0 sm:$0xff]  ;;  %s3238_s27 = smov 16   ;;  %s3239_s0 = smov 24  }
  0xc3   : > { %v2568_v29 = vld [vmem:[%s3923_s5] ss:$0 sm:$0xff]  ;;  %s407_s21 = scalar_lea.vmem [#allocation14], %s2557_s14  ;;  %s2626_s19 = sshll.u32 %s3308_s9, 9 }
  0xc4   : > { %s2419_s11 = sshll.u32 %s407_s21, 4  ;;  %s3871_s14 = scalar_lea.hbm %s3926_s8, %s2626_s19  ;;  %s3866_s11 = int_to_ptr.vmem [resolvable:$true] %s2419_s11 }
  0xc5   : > { %2823 = vmatpush3.bf16.msra.mxu0 %v2820_v6  ;;  %s3143_s9 = scalar_lea.vmem %s3866_s11, 512 }
  0xc6   : > { %2825 = vmatprep.subr.bf16.mxu0 %v2824_v9  ;;  %p3144_p2 = scmp.ne.s32.totalorder %s3866_s11, %s3143_s9 }
  0xc8   : > { %2706 = vmatmul.mubr.msk.f32.vlgmr.msra.gmra.mrb[0].mxu0 %vm428_vm0, %v412_v12  ;;  %p3145_p4 = pnand %p3144_p2, %p3441_p5 }
  0xc9   : > { %2827 = vmatpush3.bf16.msra.mxu0 %v2824_v9  ;;  %2708 = vmatprep.mubr.msk.f32.mxu0 %vm428_vm0, %v413_v13 }
  0xca   : > { %2829 = vmatprep.subr.bf16.mxu0 %v2828_v14  ;;  %p3146_p0 = pneg %p3145_p4 }
  0xcc   : > { %2709 = vmatmul.mubr.msk.f32.gmra.mrb[2].mxu0 %vm428_vm0, %v414_v15 }
  0xcd   : > { %2831 = vmatpush3.bf16.msra.mxu0 %v2828_v14  ;;  %2719 = vmatprep.mubr.msk.f32.mxu0 %vm428_vm0, %v415_v16 }
  0xd0   : > { %2720 = vmatmul.mubr.msk.f32.vlgmr.msra.gmra.mrb[4].mxu0 %vm428_vm0, %v416_v17 }
 0x19b   : > { %v2707_v19 = vpop.f32.mrb[0].mxu0 }
 0x19c   : > { %v513_v20 = vadd.f32 %v2707_v19, %v2563_v18  ;;  %v507_v21 = vpop.f32.mrb[1].mxu0 }
 0x19d   : > { %v508_v22 = vadd.f32 %v2563_v18, %v507_v21 }
 0x19e   : > { %v527_v23 = vmul.f32 0.35355338, %v513_v20 }
 0x19f   : > { %v526_v24 = vmul.f32 0.35355338, %v508_v22  ;;  %v2710_v25 = vpop.f32.mrb[2].mxu0 }
 0x1a0   : > { %531 = vst.msk [vmem:[#allocation2 + $0x8] sm:$0xff] %vm428_vm0, %v527_v23  ;;  %v523_v26 = vadd.f32 %v2710_v25, %v2563_v18  ;;  %v517_v27 = vpop.f32.mrb[3].mxu0 }
 0x1a1   : > { %530 = vst.msk [vmem:[#allocation2] sm:$0xff] %vm428_vm0, %v526_v24  ;;  %v518_v28 = vadd.f32 %v2563_v18, %v517_v27 }
 0x1a2   : > { %v529_v30 = vmul.f32 0.35355338, %v523_v26 }
 0x1a3   : > { %v528_v31 = vmul.f32 0.35355338, %v518_v28  ;;  %v2721_v32 = vpop.f32.mrb[4].mxu0 }
 0x1a4   : > { %533 = vst.msk [vmem:[#allocation2 + $0x18] sm:$0xff] %vm428_vm0, %v529_v30  ;;  %v623_v33 = vadd.f32 %v2721_v32, %v2568_v29  ;;  %v617_v34 = vpop.f32.mrb[5].mxu0 }
 0x1a5   : > { %532 = vst.msk [vmem:[#allocation2 + $0x10] sm:$0xff] %vm428_vm0, %v528_v31  ;;  %v618_v35 = vadd.f32 %v2568_v29, %v617_v34 }
 0x1a6   : > { %628 = vst.msk [vmem:[#allocation3 + $0x8] sm:$0xff] %vm626_vm1, %v623_v33 }
 0x1a7   : > { %627 = vst.msk [vmem:[#allocation3] sm:$0xff] %vm626_vm1, %v618_v35  ;;  %v630_v36 = vld [vmem:[#allocation2 + $0x8] sm:$0xff] }
 0x1a8   : > { %831 = vrot.lane.b32.xlu1 %v630_v36, %s3230_s18  ;;  %v629_v37 = vld [vmem:[#allocation2] sm:$0xff] }
 0x1a9   : > { %829 = vrot.lane.b32.xlu0 %v629_v37, %s3230_s18  ;;  %2724 = vmatprep.mubr.msk.f32.mxu1 %vm632_vm2, %v629_v37 }
 0x1ab   : > { %v1461_v40 = vld [vmem:[#allocation2 + $0x18] sm:$0xff] }
 0x1ac   : > { %1030 = vrot.lane.b32.xlu1 %v630_v36, %s3231_s12  ;;  %v1460_v41 = vld [vmem:[#allocation2 + $0x10] sm:$0xff] }
 0x1ad   : > { %v3597_v39 = vld [vmem:[#allocation3 + $0x8] sm:$0xff] }
 0x1ae   : > { %v3587_v38 = vld [vmem:[#allocation3] sm:$0xff] }
 0x1af   : > { %2722 = vmatprep.subr.msk.mxu1 %vm632_vm2, %v3587_v38  ;;  %833 = vrot.lane.b32.xlu0 %v3587_v38, %s3230_s18 }
 0x1b0   : > { %1032 = vrot.lane.b32.xlu1 %v3587_v38, %s3231_s12  ;;  %2723 = vmatpush3.xpose.msk.msra.mxu1 %vm632_vm2, %v3587_v38 }
 0x1b3   : > { %1028 = vrot.lane.b32.xlu0 %v629_v37, %s3231_s12  ;;  %2725 = vmatmul.mubr.msk.f32.vlgmr.msra.gmra.mrb[0].mxu1 %vm632_vm2, %v630_v36 }
 0x1b4   : > { %1227 = vrot.lane.b32.xlu1 %v629_v37, %s3232_s15 }
 0x1b7   : > { %1231 = vrot.lane.b32.xlu0 %v3587_v38, %s3232_s15 }
 0x1b8   : > { %1663 = vrot.lane.b32.xlu1 %v3597_v39, %s3230_s18 }
 0x1bb   : > { %1229 = vrot.lane.b32.xlu0 %v630_v36, %s3232_s15 }
 0x1bc   : > { %1661 = vrot.lane.b32.xlu1 %v1461_v40, %s3230_s18 }
 0x1bf   : > { %1659 = vrot.lane.b32.xlu0 %v1460_v41, %s3230_s18  ;;  %s2405_s18 = scalar_lea.sflag [#allocation7], %s3536_s6 }
 0x1c0   : > { %1858 = vrot.lane.b32.xlu1 %v1460_v41, %s3231_s12 }
 0x1c3   : > { %1862 = vrot.lane.b32.xlu0 %v3597_v39, %s3231_s12 }
 0x1c4   : > { %2061 = vrot.lane.b32.xlu1 %v3597_v39, %s3232_s15 }
 0x1c7   : > { %1860 = vrot.lane.b32.xlu0 %v1461_v40, %s3231_s12  ;;  %s3240_s12 = smov [#allocation14]  }
 0x1c8   : > { %2059 = vrot.lane.b32.xlu1 %v1461_v40, %s3232_s15 }
 0x1cb   : > { %2057 = vrot.lane.b32.xlu0 %v1460_v41, %s3232_s15  ;;  %s3147_s15 = sshll.u32 %s3240_s12, 4  ;;  %s3148_s15 = int_to_ptr.vmem [resolvable:$false] %s3147_s15 }
 0x1cc   : > { %745 = vrot.lane.b32.xlu1 %v3587_v38, %s3233_s2  ;;  %p3150_p8 = scmp.lt.s32.totalorder %s3866_s11, %s3148_s15 }
 0x21a   : > { %v832_v42 = vpop.permute.xlu1 %831 }
 0x21b   : > { %v830_v43 = vpop.permute.xlu0 %829 }
 0x21c   : > { %2734 = vmatprep.mubr.msk.f32.mxu1 %vm632_vm2, %v830_v43 }
 0x21e   : > { %v1031_v44 = vpop.permute.xlu1 %1030 }
 0x221   : > { %v834_v45 = vpop.permute.xlu0 %833 }
 0x222   : > { %v1033_v46 = vpop.permute.xlu1 %1032  ;;  %2732 = vmatprep.subr.msk.mxu1 %vm632_vm2, %v834_v45 }
 0x223   : > { %2733 = vmatpush3.xpose.msk.msra.mxu1 %vm632_vm2, %v834_v45 }
 0x224   : > { %2742 = vmatprep.subr.msk.mxu1 %vm632_vm2, %v1033_v46 }
 0x225   : > { %v1029_v47 = vpop.permute.xlu0 %1028 }
 0x226   : > { %v1228_v48 = vpop.permute.xlu1 %1227  ;;  %2735 = vmatmul.mubr.msk.f32.vlgmr.msra.gmra.mrb[2].mxu1 %vm632_vm2, %v832_v42 }
 0x227   : > { %2743 = vmatpush3.xpose.msk.msra.mxu1 %vm632_vm2, %v1033_v46  ;;  %2744 = vmatprep.mubr.msk.f32.mxu1 %vm632_vm2, %v1029_v47 }
 0x229   : > { %v1232_v49 = vpop.permute.xlu0 %1231 }
 0x22a   : > { %v1664_v50 = vpop.permute.xlu1 %1663  ;;  %2745 = vmatmul.mubr.msk.f32.vlgmr.msra.gmra.mrb[4].mxu1 %vm632_vm2, %v1031_v44  ;;  %2752 = vmatprep.subr.msk.mxu1 %vm632_vm2, %v1232_v49 }
 0x22b   : > { %2753 = vmatpush3.xpose.msk.msra.mxu1 %vm632_vm2, %v1232_v49  ;;  %2754 = vmatprep.mubr.msk.f32.mxu1 %vm632_vm2, %v1228_v48 }
 0x22c   : > { %2762 = vmatprep.subr.msk.mxu1 %vm632_vm2, %v3597_v39 }
 0x22d   : > { %v1230_v51 = vpop.permute.xlu0 %1229 }
 0x22e   : > { %v1662_v52 = vpop.permute.xlu1 %1661  ;;  %2755 = vmatmul.mubr.msk.f32.vlgmr.msra.gmra.mrb[6].mxu1 %vm632_vm2, %v1230_v51 }
 0x22f   : > { %2763 = vmatpush3.xpose.msk.msra.mxu1 %vm632_vm2, %v3597_v39  ;;  %2764 = vmatprep.mubr.msk.f32.mxu1 %vm632_vm2, %v1460_v41 }
 0x230   : > { %2772 = vmatprep.subr.msk.mxu1 %vm632_vm2, %v1664_v50 }
 0x231   : > { %v1660_v53 = vpop.permute.xlu0 %1659 }
 0x232   : > { %v1859_v54 = vpop.permute.xlu1 %1858  ;;  %2765 = vmatmul.mubr.msk.f32.vlgmr.msra.gmra.mrb[8].mxu1 %vm632_vm2, %v1461_v40 }
 0x233   : > { %2773 = vmatpush3.xpose.msk.msra.mxu1 %vm632_vm2, %v1664_v50  ;;  %2774 = vmatprep.mubr.msk.f32.mxu1 %vm632_vm2, %v1660_v53 }
 0x235   : > { %v1863_v55 = vpop.permute.xlu0 %1862 }
 0x236   : > { %v2062_v56 = vpop.permute.xlu1 %2061  ;;  %2775 = vmatmul.mubr.msk.f32.vlgmr.msra.gmra.mrb[10].mxu1 %vm632_vm2, %v1662_v52  ;;  %2782 = vmatprep.subr.msk.mxu1 %vm632_vm2, %v1863_v55 }
 0x237   : > { %2783 = vmatpush3.xpose.msk.msra.mxu1 %vm632_vm2, %v1863_v55  ;;  %2784 = vmatprep.mubr.msk.f32.mxu1 %vm632_vm2, %v1859_v54 }
 0x238   : > { %2792 = vmatprep.subr.msk.mxu1 %vm632_vm2, %v2062_v56 }
 0x239   : > { %v1861_v57 = vpop.permute.xlu0 %1860 }
 0x23a   : > { %v2060_v58 = vpop.permute.xlu1 %2059  ;;  %2785 = vmatmul.mubr.msk.f32.vlgmr.msra.gmra.mrb[12].mxu1 %vm632_vm2, %v1861_v57 }
 0x23b   : > { %2793 = vmatpush3.xpose.msk.msra.mxu1 %vm632_vm2, %v2062_v56 }
 0x23d   : > { %v2058_v59 = vpop.permute.xlu0 %2057 }
 0x23e   : > { %v746_v60 = vpop.permute.xlu1 %745  ;;  %2794 = vmatprep.mubr.msk.f32.mxu1 %vm632_vm2, %v2058_v59 }
 0x23f   : > { %2727 = vmatprep.subr.mxu0 %v746_v60  ;;  %2795 = vmatmul.mubr.msk.f32.vlgmr.msra.gmra.mrb[14].mxu1 %vm632_vm2, %v2060_v58 }
 0x240   : > { %2728 = vmatpush3.msra.mxu0 %v746_v60 }
 0x286   : > { %v2726_v61 = vpop.f32.mrb[0].mxu1 }
 0x287   : > { %v3634_v62 = vpop.f32.mrb[1].mxu1  ;;  %v720_v63 = vsel %vm632_vm2, %v2726_v61, -inf }
 0x288   : > { %721 = vmax.xlane.f32.xlu1 %v720_v63  ;;  %v717_v0 = vsel %vm632_vm2, %v3634_v62, -inf }
 0x289   : > { %718 = vmax.xlane.f32.xlu0 %v717_v0 }
 0x2f9   : > { %v3639_v1 = vpop.f32.mrb[2].mxu1 }
 0x2fa   : > { %v3641_v2 = vpop.f32.mrb[3].mxu1  ;;  %v919_v3 = vsel %vm632_vm2, %v3639_v1, -inf }
 0x2fb   : > { %920 = vmax.xlane.f32.xlu0 %v919_v3  ;;  %v916_v6 = vsel %vm632_vm2, %v3641_v2, -inf }
 0x2fd   : > { %v3645_v4 = vpop.f32.mrb[4].mxu1 }
 0x2fe   : > { %v3647_v5 = vpop.f32.mrb[5].mxu1  ;;  %v1118_v10 = vsel %vm632_vm2, %v3645_v4, -inf }
 0x2ff   : > { %917 = vmax.xlane.f32.xlu0 %v916_v6  ;;  %v1115_v7 = vsel %vm632_vm2, %v3647_v5, -inf }
 0x300   : > { %1116 = vmax.xlane.f32.xlu1 %v1115_v7 }
 0x301   : > { %v3653_v8 = vpop.f32.mrb[6].mxu1 }
 0x302   : > { %v3655_v9 = vpop.f32.mrb[7].mxu1  ;;  %v1317_v14 = vsel %vm632_vm2, %v3653_v8, -inf }
 0x303   : > { %1119 = vmax.xlane.f32.xlu0 %v1118_v10  ;;  %v1314_v11 = vsel %vm632_vm2, %v3655_v9, -inf }
 0x304   : > { %1315 = vmax.xlane.f32.xlu1 %v1314_v11 }
 0x305   : > { %v3661_v12 = vpop.f32.mrb[8].mxu1 }
 0x306   : > { %v3663_v13 = vpop.f32.mrb[9].mxu1  ;;  %v1550_v18 = vsel %vm632_vm2, %v3661_v12, -inf }
 0x307   : > { %1318 = vmax.xlane.f32.xlu0 %v1317_v14  ;;  %v1547_v15 = vsel %vm632_vm2, %v3663_v13, -inf }
 0x308   : > { %1548 = vmax.xlane.f32.xlu1 %v1547_v15 }
 0x309   : > { %v3669_v16 = vpop.f32.mrb[10].mxu1 }
 0x30a   : > { %v3671_v17 = vpop.f32.mrb[11].mxu1  ;;  %v1749_v22 = vsel %vm632_vm2, %v3669_v16, -inf }
 0x30b   : > { %1551 = vmax.xlane.f32.xlu0 %v1550_v18  ;;  %v1746_v19 = vsel %vm632_vm2, %v3671_v17, -inf }
 0x30c   : > { %1747 = vmax.xlane.f32.xlu1 %v1746_v19 }
 0x30d   : > { %v3677_v20 = vpop.f32.mrb[12].mxu1 }
 0x30e   : > { %v3679_v21 = vpop.f32.mrb[13].mxu1  ;;  %v1948_v25 = vsel %vm632_vm2, %v3677_v20, -inf }
 0x30f   : > { %1750 = vmax.xlane.f32.xlu0 %v1749_v22  ;;  %v1945_v23 = vsel %vm632_vm2, %v3679_v21, -inf }
 0x310   : > { %1946 = vmax.xlane.f32.xlu1 %v1945_v23 }
 0x312   : > { %v3685_v24 = vpop.f32.mrb[14].mxu1 }
 0x313   : > { %v3689_v26 = vpop.f32.mrb[15].mxu1  ;;  %1949 = vmax.xlane.f32.xlu0 %v1948_v25  ;;  %v2147_v27 = vsel %vm632_vm2, %v3685_v24, -inf }
 0x314   : > { %v2144_v31 = vsel %vm632_vm2, %v3689_v26, -inf }
 0x315   : > { %v722_v28 = vpop.xlane.xlu1 %721 }
 0x316   : > { %v724_v29 = vsub.f32 %v2726_v61, %v722_v28  ;;  %v719_v34 = vpop.xlane.xlu0 %718 }
 0x317   : > { %2148 = vmax.xlane.f32.xlu0 %v2147_v27  ;;  %v723_v35 = vsub.f32 %v3634_v62, %v719_v34 }
 0x318   : > { %v727_v30 = vmul.f32 1.442695, %v724_v29 }
 0x319   : > { %v725_v36 = vmul.f32 1.442695, %v723_v35 }
 0x31a   : > { %2935 = vpow2.f32 %v727_v30 }
 0x31b   : > { %2937 = vpow2.f32 %v725_v36 }
 0x321   : > { %1143 = vrot.lane.b32.xlu1 %v3587_v38, %s3234_s10 }
 0x324   : > { %v3700_v32 = vpop.eup %2935 }
 0x325   : > { %v732_v33 = vsel %vm632_vm2, %v3700_v32, 0.0  ;;  %v3708_v37 = vpop.eup %2937 }
 0x326   : > { %v729_v40 = vsel %vm632_vm2, %v3708_v37, 0.0 }
 0x32d   : > { %944 = vrot.lane.b32.xlu0 %v3587_v38, %s3235_s16 }
 0x331   : > { %1575 = vrot.lane.b32.xlu0 %v3597_v39, %s3233_s2  ;;  %s3149_s2 = scalar_lea.vmem %s3148_s15, 1024 }
 0x332   : > { %p3151_p6 = scmp.lt.s32.totalorder %s3149_s2, %s3143_s9 }
 0x334   : > { %p3152_p10 = por %p3151_p6, %p3150_p8 }
 0x336   : > { %p3153_p3 = pnand %p3152_p10, %p3146_p0 }
 0x345   : > { %2145 = vmax.xlane.f32.xlu1 %v2144_v31 }
 0x350   : > { %733 = vadd.xlane.f32.xlu0 %v732_v33 }
 0x356   : > { %1342 = vrot.lane.b32.xlu1 %v3587_v38, %s3236_s20 }
 0x35a   : > { %1774 = vrot.lane.b32.xlu1 %v3597_v39, %s3235_s16 }
 0x37e   : > { %730 = vadd.xlane.f32.xlu1 %v729_v40 }
 0x388   : > { %v921_v41 = vpop.xlane.xlu0 %920 }
 0x389   : > { %v923_v42 = vsub.f32 %v3639_v1, %v921_v41 }
 0x38b   : > { %v926_v43 = vmul.f32 1.442695, %v923_v42 }
 0x38c   : > { %v918_v44 = vpop.xlane.xlu0 %917 }
 0x38d   : > { %2939 = vpow2.f32 %v926_v43  ;;  %v922_v38 = vsub.f32 %v3641_v2, %v918_v44  ;;  %v1117_v45 = vpop.xlane.xlu1 %1116 }
 0x38e   : > { %v1121_v46 = vsub.f32 %v3647_v5, %v1117_v45 }
 0x38f   : > { %v924_v47 = vmul.f32 1.442695, %v922_v38 }
 0x390   : > { %v1123_v48 = vmul.f32 1.442695, %v1121_v46  ;;  %v1120_v49 = vpop.xlane.xlu0 %1119 }
 0x391   : > { %2941 = vpow2.f32 %v924_v47  ;;  %v1122_v50 = vsub.f32 %v3645_v4, %v1120_v49  ;;  %v1316_v51 = vpop.xlane.xlu1 %1315 }
 0x392   : > { %v1320_v52 = vsub.f32 %v3655_v9, %v1316_v51  ;;  %2943 = vpow2.f32 %v1123_v48 }
 0x393   : > { %v1125_v53 = vmul.f32 1.442695, %v1122_v50 }
 0x394   : > { %v1322_v54 = vmul.f32 1.442695, %v1320_v52  ;;  %v1319_v55 = vpop.xlane.xlu0 %1318 }
 0x395   : > { %2945 = vpow2.f32 %v1125_v53  ;;  %v1321_v56 = vsub.f32 %v3653_v8, %v1319_v55  ;;  %v1549_v57 = vpop.xlane.xlu1 %1548 }
 0x396   : > { %v1553_v58 = vsub.f32 %v3663_v13, %v1549_v57  ;;  %2947 = vpow2.f32 %v1322_v54 }
 0x397   : > { %v3719_v59 = vpop.eup %2939  ;;  %v1324_v60 = vmul.f32 1.442695, %v1321_v56 }
 0x398   : > { %v1555_v61 = vmul.f32 1.442695, %v1553_v58  ;;  %v1552_v62 = vpop.xlane.xlu0 %1551  ;;  %v931_v63 = vsel %vm632_vm2, %v3719_v59, 0.0 }
 0x399   : > { %2949 = vpow2.f32 %v1324_v60  ;;  %v1554_v0 = vsub.f32 %v3661_v12, %v1552_v62  ;;  %v1748_v1 = vpop.xlane.xlu1 %1747  ;;  %932 = vadd.xlane.f32.xlu0 %v931_v63 }
 0x39a   : > { %v1752_v2 = vsub.f32 %v3671_v17, %v1748_v1  ;;  %2951 = vpow2.f32 %v1555_v61 }
 0x39b   : > { %v3725_v3 = vpop.eup %2941  ;;  %v1557_v4 = vmul.f32 1.442695, %v1554_v0 }
 0x39c   : > { %v1754_v5 = vmul.f32 1.442695, %v1752_v2  ;;  %v1751_v6 = vpop.xlane.xlu0 %1750  ;;  %v928_v7 = vsel %vm632_vm2, %v3725_v3, 0.0  ;;  %v3729_v8 = vpop.eup %2943 }
 0x39d   : > { %2953 = vpow2.f32 %v1557_v4  ;;  %v1753_v9 = vsub.f32 %v3669_v16, %v1751_v6  ;;  %v1947_v10 = vpop.xlane.xlu1 %1946  ;;  %929 = vadd.xlane.f32.xlu1 %v928_v7  ;;  %v1127_v17 = vsel %vm632_vm2, %v3729_v8, 0.0 }
 0x39e   : > { %v1951_v11 = vsub.f32 %v3679_v21, %v1947_v10  ;;  %2955 = vpow2.f32 %v1754_v5 }
 0x39f   : > { %v3733_v12 = vpop.eup %2945  ;;  %v1756_v13 = vmul.f32 1.442695, %v1753_v9 }
 0x3a0   : > { %v1953_v14 = vmul.f32 1.442695, %v1951_v11  ;;  %v1950_v15 = vpop.xlane.xlu0 %1949  ;;  %v1130_v18 = vsel %vm632_vm2, %v3733_v12, 0.0  ;;  %v3739_v19 = vpop.eup %2947 }
 0x3a1   : > { %2957 = vpow2.f32 %v1756_v13  ;;  %v1952_v16 = vsub.f32 %v3677_v20, %v1950_v15  ;;  %1128 = vadd.xlane.f32.xlu1 %v1127_v17  ;;  %1131 = vadd.xlane.f32.xlu0 %v1130_v18  ;;  %v1326_v25 = vsel %vm632_vm2, %v3739_v19, 0.0  ;;  %v3779_v46 = vpop.permute.xlu1 %1143 }
 0x3a2   : > { %2959 = vpow2.f32 %v1953_v14 }
 0x3a3   : > { %v3742_v21 = vpop.eup %2949  ;;  %v1955_v22 = vmul.f32 1.442695, %v1952_v16 }
 0x3a4   : > { %v2149_v23 = vpop.xlane.xlu0 %2148  ;;  %v1329_v27 = vsel %vm632_vm2, %v3742_v21, 0.0  ;;  %v3748_v28 = vpop.eup %2951 }
 0x3a5   : > { %2961 = vpow2.f32 %v1955_v22  ;;  %v2151_v29 = vsub.f32 %v3685_v24, %v2149_v23  ;;  %1327 = vadd.xlane.f32.xlu1 %v1326_v25  ;;  %1330 = vadd.xlane.f32.xlu0 %v1329_v27  ;;  %v1559_v33 = vsel %vm632_vm2, %v3748_v28, 0.0 }
 0x3a7   : > { %v3751_v20 = vpop.eup %2953  ;;  %v2154_v30 = vmul.f32 1.442695, %v2151_v29 }
 0x3a8   : > { %v945_v31 = vpop.permute.xlu0 %944  ;;  %v1562_v34 = vsel %vm632_vm2, %v3751_v20, 0.0  ;;  %v3757_v35 = vpop.eup %2955 }
 0x3a9   : > { %2963 = vpow2.f32 %v2154_v30  ;;  %1560 = vadd.xlane.f32.xlu1 %v1559_v33  ;;  %1563 = vadd.xlane.f32.xlu0 %v1562_v34  ;;  %v1758_v24 = vsel %vm632_vm2, %v3757_v35, 0.0 }
 0x3aa   : > { %2737 = vmatprep.subr.mxu0 %v945_v31 }
 0x3ab   : > { %v3759_v36 = vpop.eup %2957 }
 0x3ac   : > { %v1761_v40 = vsel %vm632_vm2, %v3759_v36, 0.0  ;;  %v3765_v41 = vpop.eup %2959  ;;  %v3788_v52 = vpop.permute.xlu0 %1575 }
 0x3ad   : > { %1759 = vadd.xlane.f32.xlu1 %v1758_v24  ;;  %1762 = vadd.xlane.f32.xlu0 %v1761_v40  ;;  %v1957_v43 = vsel %vm632_vm2, %v3765_v41, 0.0 }
 0x3af   : > { %v3767_v42 = vpop.eup %2961 }
 0x3b0   : > { %v1960_v44 = vsel %vm632_vm2, %v3767_v42, 0.0 }
 0x3b1   : > { %1958 = vadd.xlane.f32.xlu1 %v1957_v43  ;;  %1961 = vadd.xlane.f32.xlu0 %v1960_v44 }
 0x3b3   : > { %v3773_v38 = vpop.eup %2963 }
 0x3b4   : > { %v2159_v45 = vsel %vm632_vm2, %v3773_v38, 0.0 }
 0x3b5   : > { %2160 = vadd.xlane.f32.xlu0 %v2159_v45 }
 0x3cb   : > { %1973 = vrot.lane.b32.xlu0 %v3597_v39, %s3234_s10 }
 0x3d2   : > { %v2146_v47 = vpop.xlane.xlu1 %2145 }
 0x3d3   : > { %v2150_v48 = vsub.f32 %v3689_v26, %v2146_v47 }
 0x3d5   : > { %v2152_v49 = vmul.f32 1.442695, %v2150_v48 }
 0x3d6   : > { %v3790_v53 = vpop.permute.xlu1 %1342 }
 0x3d7   : > { %2965 = vpow2.f32 %v2152_v49 }
 0x3da   : > { %v3792_v55 = vpop.permute.xlu1 %1774 }
 0x3dd   : > { %v734_v54 = vpop.xlane.xlu0 %733 }
 0x3de   : > { %2967 = vrcp.f32 %v734_v54 }
 0x3e1   : > { %v3782_v50 = vpop.eup %2965 }
 0x3e2   : > { %v2156_v51 = vsel %vm632_vm2, %v3782_v50, 0.0 }
 0x3e3   : > { %2157 = vadd.xlane.f32.xlu1 %v2156_v51 }
 0x3e8   : > { %v2968_v56 = vpop.eup %2967 }
 0x3e9   : > { %v738_v57 = vmul.f32 %v2968_v56, %v734_v54 }
 0x3eb   : > { %v740_v60 = vsub.f32 2.0, %v738_v57 }
 0x3ed   : > { %v742_v63 = vmul.f32 %v2968_v56, %v740_v60 }
 0x3ef   : > { %v744_v1 = vmul.f32 %v3700_v32, %v742_v63 }
 0x3f4   : > { %2172 = vrot.lane.b32.xlu1 %v3597_v39, %s3236_s20 }
 0x40b   : > { %v731_v26 = vpop.xlane.xlu1 %730 }
 0x40c   : > { %2969 = vrcp.f32 %v731_v26 }
 0x416   : > { %v2970_v58 = vpop.eup %2969 }
 0x417   : > { %v737_v61 = vmul.f32 %v2970_v58, %v731_v26 }
 0x419   : > { %v739_v62 = vsub.f32 2.0, %v737_v61 }
 0x41b   : > { %v741_v0 = vmul.f32 %v2970_v58, %v739_v62 }
 0x41d   : > { %v743_v39 = vmul.f32 %v3708_v37, %v741_v0 }
 0x41f   : > { %2729 = vmatprep.mubr.msk.f32.mxu0 %vm632_vm2, %v743_v39 }
 0x420   : > { %2730 = vmatmul.mubr.msk.f32.vlgmr.msra.gmra.mrb[6].mxu0 %vm632_vm2, %v744_v1 }
 0x421   : > { %2738 = vmatpush3.msra.mxu0 %v945_v31 }
 0x422   : > { %2747 = vmatprep.subr.mxu0 %v3779_v46 }
 0x426   : > { %v933_v2 = vpop.xlane.xlu0 %932 }
 0x427   : > { %2971 = vrcp.f32 %v933_v2 }
 0x42a   : > { %v930_v4 = vpop.xlane.xlu1 %929 }
 0x42b   : > { %2973 = vrcp.f32 %v930_v4 }
 0x42e   : > { %v1129_v5 = vpop.xlane.xlu1 %1128  ;;  %v1132_v6 = vpop.xlane.xlu0 %1131 }
 0x42f   : > { %2975 = vrcp.f32 %v1129_v5 }
 0x430   : > { %2977 = vrcp.f32 %v1132_v6 }
 0x431   : > { %v2972_v7 = vpop.eup %2971 }
 0x432   : > { %v937_v9 = vmul.f32 %v2972_v7, %v933_v2  ;;  %v1328_v37 = vpop.xlane.xlu1 %1327  ;;  %v1331_v10 = vpop.xlane.xlu0 %1330 }
 0x433   : > { %2979 = vrcp.f32 %v1328_v37 }
 0x434   : > { %2981 = vrcp.f32 %v1331_v10  ;;  %v939_v11 = vsub.f32 2.0, %v937_v9 }
 0x435   : > { %v2974_v32 = vpop.eup %2973 }
 0x436   : > { %v936_v13 = vmul.f32 %v2974_v32, %v930_v4  ;;  %v1561_v14 = vpop.xlane.xlu1 %1560  ;;  %v1564_v15 = vpop.xlane.xlu0 %1563  ;;  %v941_v16 = vmul.f32 %v2972_v7, %v939_v11 }
 0x437   : > { %2983 = vrcp.f32 %v1561_v14 }
 0x438   : > { %v938_v17 = vsub.f32 2.0, %v936_v13  ;;  %2985 = vrcp.f32 %v1564_v15  ;;  %v943_v24 = vmul.f32 %v3719_v59, %v941_v16 }
 0x439   : > { %v2976_v18 = vpop.eup %2975 }
 0x43a   : > { %v2978_v22 = vpop.eup %2977  ;;  %v940_v23 = vmul.f32 %v2974_v32, %v938_v17  ;;  %v1135_v25 = vmul.f32 %v2976_v18, %v1129_v5  ;;  %v1760_v27 = vpop.xlane.xlu1 %1759 }
 0x43b   : > { %v1763_v29 = vpop.xlane.xlu0 %1762  ;;  %v1136_v30 = vmul.f32 %v2978_v22, %v1132_v6  ;;  %2987 = vrcp.f32 %v1760_v27 }
 0x43c   : > { %v942_v31 = vmul.f32 %v3725_v3, %v940_v23  ;;  %v1137_v33 = vsub.f32 2.0, %v1135_v25  ;;  %2989 = vrcp.f32 %v1763_v29 }
 0x43d   : > { %v2980_v34 = vpop.eup %2979  ;;  %v1138_v40 = vsub.f32 2.0, %v1136_v30 }
 0x43e   : > { %v2982_v43 = vpop.eup %2981  ;;  %v1139_v44 = vmul.f32 %v2976_v18, %v1137_v33  ;;  %v1334_v45 = vmul.f32 %v2980_v34, %v1328_v37  ;;  %v1959_v47 = vpop.xlane.xlu1 %1958  ;;  %2739 = vmatprep.mubr.msk.f32.mxu0 %vm632_vm2, %v942_v31 }
 0x43f   : > { %v1962_v48 = vpop.xlane.xlu0 %1961  ;;  %v1140_v49 = vmul.f32 %v2978_v22, %v1138_v40  ;;  %v1335_v51 = vmul.f32 %v2982_v43, %v1331_v10  ;;  %2991 = vrcp.f32 %v1959_v47  ;;  %2740 = vmatmul.mubr.msk.f32.vlgmr.msra.gmra.mrb[8].mxu0 %vm632_vm2, %v943_v24  ;;  %v2292_v40 = vld [vmem:[#allocation13] sm:$0xff] }
 0x440   : > { %v1141_v3 = vmul.f32 %v3729_v8, %v1139_v44  ;;  %v1336_v54 = vsub.f32 2.0, %v1334_v45  ;;  %2993 = vrcp.f32 %v1962_v48  ;;  %2748 = vmatpush3.msra.mxu0 %v3779_v46  ;;  %v2294_v45 = vld [vmem:[#allocation13 + $0x10] sm:$0xff] }
 0x441   : > { %v2984_v59 = vpop.eup %2983  ;;  %v1142_v26 = vmul.f32 %v3733_v12, %v1140_v49  ;;  %v1337_v56 = vsub.f32 2.0, %v1335_v51  ;;  %2757 = vmatprep.subr.mxu0 %v3790_v53 }
 0x442   : > { %v2986_v57 = vpop.eup %2985  ;;  %v1338_v58 = vmul.f32 %v2980_v34, %v1336_v54  ;;  %v1567_v60 = vmul.f32 %v2984_v59, %v1561_v14  ;;  %2749 = vmatprep.mubr.msk.f32.mxu0 %vm632_vm2, %v1141_v3 }
 0x443   : > { %v1339_v61 = vmul.f32 %v2982_v43, %v1337_v56  ;;  %v1568_v62 = vmul.f32 %v2986_v57, %v1564_v15  ;;  %2750 = vmatmul.mubr.msk.f32.vlgmr.msra.gmra.mrb[10].mxu0 %vm632_vm2, %v1142_v26  ;;  %v2161_v4 = vpop.xlane.xlu0 %2160  ;;  %v2293_v43 = vld [vmem:[#allocation13 + $0x8] sm:$0xff] }
 0x444   : > { %v1340_v8 = vmul.f32 %v3739_v19, %v1338_v58  ;;  %v1569_v63 = vsub.f32 2.0, %v1567_v60  ;;  %2758 = vmatpush3.msra.mxu0 %v3790_v53  ;;  %2995 = vrcp.f32 %v2161_v4  ;;  %v2832_v44 = vpack.c.bf16 %v2293_v43, %v2292_v40 }
 0x445   : > { %v2988_v46 = vpop.eup %2987  ;;  %v1341_v12 = vmul.f32 %v3742_v21, %v1339_v61  ;;  %v1570_v0 = vsub.f32 2.0, %v1568_v62  ;;  %2767 = vmatprep.subr.mxu0 %v3788_v52 }
 0x446   : > { %v2990_v39 = vpop.eup %2989  ;;  %v1571_v1 = vmul.f32 %v2984_v59, %v1569_v63  ;;  %v1766_v2 = vmul.f32 %v2988_v46, %v1760_v27  ;;  %2759 = vmatprep.mubr.msk.f32.mxu0 %vm632_vm2, %v1340_v8  ;;  %2833 = vmatprep.subr.bf16.mxu1 %v2832_v44 }
 0x447   : > { %v1572_v5 = vmul.f32 %v2986_v57, %v1570_v0  ;;  %v1767_v6 = vmul.f32 %v2990_v39, %v1763_v29  ;;  %2760 = vmatmul.mubr.msk.f32.vlgmr.msra.gmra.mrb[12].mxu0 %vm632_vm2, %v1341_v12  ;;  %v1974_v15 = vpop.permute.xlu0 %1973  ;;  %2835 = vmatpush3.bf16.msra.mxu1 %v2832_v44 }
 0x448   : > { %v1573_v19 = vmul.f32 %v3748_v28, %v1571_v1  ;;  %v1768_v7 = vsub.f32 2.0, %v1766_v2  ;;  %2768 = vmatpush3.msra.mxu0 %v3788_v52 }
 0x449   : > { %v2992_v53 = vpop.eup %2991  ;;  %v1574_v21 = vmul.f32 %v3751_v20, %v1572_v5  ;;  %v1769_v9 = vsub.f32 2.0, %v1767_v6  ;;  %2777 = vmatprep.subr.mxu0 %v3792_v55 }
 0x44a   : > { %v2994_v37 = vpop.eup %2993  ;;  %v1770_v10 = vmul.f32 %v2988_v46, %v1768_v7  ;;  %v1965_v32 = vmul.f32 %v2992_v53, %v1959_v47  ;;  %2769 = vmatprep.mubr.msk.f32.mxu0 %vm632_vm2, %v1573_v19  ;;  %v2295_v47 = vld [vmem:[#allocation13 + $0x18] sm:$0xff] }
 0x44b   : > { %v1771_v11 = vmul.f32 %v2990_v39, %v1769_v9  ;;  %v1966_v13 = vmul.f32 %v2994_v37, %v1962_v48  ;;  %2770 = vmatmul.mubr.msk.f32.vlgmr.msra.gmra.mrb[14].mxu0 %vm632_vm2, %v1574_v21  ;;  %v2836_v48 = vpack.c.bf16 %v2295_v47, %v2294_v45 }
 0x44c   : > { %v1772_v28 = vmul.f32 %v3757_v35, %v1770_v10  ;;  %v1967_v14 = vsub.f32 2.0, %v1965_v32  ;;  %2778 = vmatpush3.msra.mxu0 %v3792_v55 }
 0x44d   : > { %v1773_v20 = vmul.f32 %v3759_v36, %v1771_v11  ;;  %v1968_v52 = vsub.f32 2.0, %v1966_v13  ;;  %2787 = vmatprep.subr.mxu0 %v1974_v15  ;;  %2837 = vmatprep.subr.bf16.mxu1 %v2836_v48 }
 0x44e   : > { %v1969_v17 = vmul.f32 %v2992_v53, %v1967_v14  ;;  %2779 = vmatprep.mubr.msk.f32.mxu0 %vm632_vm2, %v1772_v28  ;;  %v2996_v36 = vpop.eup %2995  ;;  %2839 = vmatpush3.bf16.msra.mxu1 %v2836_v48 }
 0x44f   : > { %v1970_v18 = vmul.f32 %v2994_v37, %v1968_v52  ;;  %2780 = vmatmul.mubr.msk.f32.vlgmr.msra.gmra.mrb[16].mxu0 %vm632_vm2, %v1773_v20  ;;  %v2165_v23 = vmul.f32 %v2996_v36, %v2161_v4 }
 0x450   : > { %v1971_v16 = vmul.f32 %v3765_v41, %v1969_v17  ;;  %2788 = vmatpush3.msra.mxu0 %v1974_v15 }
 0x451   : > { %v1972_v22 = vmul.f32 %v3767_v42, %v1970_v18  ;;  %v2167_v27 = vsub.f32 2.0, %v2165_v23 }
 0x452   : > { %2789 = vmatprep.mubr.msk.f32.mxu0 %vm632_vm2, %v1971_v16  ;;  %v2611_v16 = vld [vmem:[%s3925_s7] ss:$0 sm:$0xff] }
 0x453   : > { %2790 = vmatmul.mubr.msk.f32.vlgmr.msra.gmra.mrb[18].mxu0 %vm632_vm2, %v1972_v22  ;;  %v2169_v41 = vmul.f32 %v2996_v36, %v2167_v27 }
 0x455   : > { %v2171_v33 = vmul.f32 %v3773_v38, %v2169_v41 }
 0x470   : > { %v2158_v35 = vpop.xlane.xlu1 %2157 }
 0x471   : > { %2997 = vrcp.f32 %v2158_v35 }
 0x474   : > { %v2173_v55 = vpop.permute.xlu1 %2172 }
 0x475   : > { %2797 = vmatprep.subr.mxu0 %v2173_v55 }
 0x476   : > { %2798 = vmatpush3.msra.mxu0 %v2173_v55 }
 0x47b   : > { %v2998_v25 = vpop.eup %2997 }
 0x47c   : > { %v2164_v29 = vmul.f32 %v2998_v25, %v2158_v35 }
 0x47e   : > { %v2166_v30 = vsub.f32 2.0, %v2164_v29 }
 0x480   : > { %v2168_v31 = vmul.f32 %v2998_v25, %v2166_v30 }
 0x482   : > { %v2170_v42 = vmul.f32 %v3782_v50, %v2168_v31 }
 0x484   : > { %2799 = vmatprep.mubr.msk.f32.mxu0 %vm632_vm2, %v2170_v42 }
 0x485   : > { %2800 = vmatmul.mubr.msk.f32.vlgmr.msra.gmra.mrb[20].mxu0 %vm632_vm2, %v2171_v33 }
 0x4f3   : > { %v2731_v34 = vpop.f32.mrb[6].mxu0 }
 0x4f4   : > { %v820_v24 = vpop.f32.mrb[7].mxu0 }
 0x512   : > { %v2741_v49 = vpop.f32.mrb[8].mxu0 }
 0x513   : > { %1430 = vrot.lane.b32.xlu1 %v2741_v49, %s3237_s24  ;;  %v1019_v50 = vpop.f32.mrb[9].mxu0 }
 0x514   : > { %1428 = vrot.lane.b32.xlu0 %v1019_v50, %s3237_s24 }
 0x516   : > { %v2751_v38 = vpop.f32.mrb[10].mxu0 }
 0x517   : > { %1438 = vrot.lane.b32.xlu1 %v2751_v38, %s3238_s27  ;;  %v1218_v51 = vpop.f32.mrb[11].mxu0 }
 0x518   : > { %1436 = vrot.lane.b32.xlu0 %v1218_v51, %s3238_s27 }
 0x51a   : > { %v2761_v3 = vpop.f32.mrb[12].mxu0 }
 0x51b   : > { %1446 = vrot.lane.b32.xlu1 %v2761_v3, %s3239_s0  ;;  %v1417_v54 = vpop.f32.mrb[13].mxu0 }
 0x51c   : > { %1444 = vrot.lane.b32.xlu0 %v1417_v54, %s3239_s0 }
 0x51e   : > { %v2771_v59 = vpop.f32.mrb[14].mxu0 }
 0x51f   : > { %v1650_v26 = vpop.f32.mrb[15].mxu0 }
 0x522   : > { %v2781_v56 = vpop.f32.mrb[16].mxu0 }
 0x523   : > { %2260 = vrot.lane.b32.xlu1 %v2781_v56, %s3237_s24  ;;  %v1849_v57 = vpop.f32.mrb[17].mxu0 }
 0x524   : > { %2258 = vrot.lane.b32.xlu0 %v1849_v57, %s3237_s24 }
 0x526   : > { %v2791_v58 = vpop.f32.mrb[18].mxu0 }
 0x527   : > { %2268 = vrot.lane.b32.xlu1 %v2791_v58, %s3238_s27  ;;  %v2048_v60 = vpop.f32.mrb[19].mxu0 }
 0x528   : > { %2266 = vrot.lane.b32.xlu0 %v2048_v60, %s3238_s27 }
 0x558   : > { %v2801_v61 = vpop.f32.mrb[20].mxu0 }
 0x559   : > { %2276 = vrot.lane.b32.xlu1 %v2801_v61, %s3239_s0  ;;  %v2247_v62 = vpop.f32.mrb[21].mxu0 }
 0x55a   : > { %2274 = vrot.lane.b32.xlu0 %v2247_v62, %s3239_s0 }
 0x585   : > { %v1431_v8 = vpop.permute.xlu1 %1430 }
 0x586   : > { %v1429_v63 = vpop.permute.xlu0 %1428  ;;  %v1451_v0 = vsel %vm632_vm2, %v2731_v34, %v1431_v8 }
 0x587   : > { %v1450_v39 = vsel %vm632_vm2, %v820_v24, %v1429_v63 }
 0x589   : > { %v1439_v46 = vpop.permute.xlu1 %1438 }
 0x58a   : > { %v1437_v12 = vpop.permute.xlu0 %1436  ;;  %v1454_v1 = vsel %vm1452_vm3, %v1451_v0, %v1439_v46 }
 0x58b   : > { %v1453_v4 = vsel %vm1452_vm3, %v1450_v39, %v1437_v12 }
 0x58d   : > { %v1447_v2 = vpop.permute.xlu1 %1446 }
 0x58e   : > { %v1457_v5 = vsel %vm1455_vm4, %v1454_v1, %v1447_v2  ;;  %v1445_v6 = vpop.permute.xlu0 %1444 }
 0x58f   : > { %1459 = vst.msk [vmem:[#allocation4 + $0x8] sm:$0xff] %vm428_vm0, %v1457_v5  ;;  %v1456_v19 = vsel %vm1455_vm4, %v1453_v4, %v1445_v6 }
 0x590   : > { %1458 = vst.msk [vmem:[#allocation4] sm:$0xff] %vm428_vm0, %v1456_v19 }
 0x595   : > { %v2261_v21 = vpop.permute.xlu1 %2260 }
 0x596   : > { %v2289_v53 = vld [vmem:[#allocation4 + $0x8] sm:$0xff]  ;;  %v2259_v9 = vpop.permute.xlu0 %2258  ;;  %v2281_v32 = vsel %vm632_vm2, %v2771_v59, %v2261_v21 }
 0x597   : > { %v2288_v7 = vld [vmem:[#allocation4] sm:$0xff]  ;;  %v2280_v11 = vsel %vm632_vm2, %v1650_v26, %v2259_v9 }
 0x598   : > { %2810 = vmatprep.mubr.msk.f32.mxu1 %vm428_vm0, %v2288_v7 }
 0x599   : > { %2811 = vmatmul.mubr.msk.f32.vlgmr.msra.gmra.mrb[16].mxu1 %vm428_vm0, %v2289_v53  ;;  %v2269_v37 = vpop.permute.xlu1 %2268 }
 0x59a   : > { %v2267_v10 = vpop.permute.xlu0 %2266  ;;  %v2283_v13 = vsel %vm1452_vm3, %v2281_v32, %v2269_v37 }
 0x59b   : > { %v2282_v14 = vsel %vm1452_vm3, %v2280_v11, %v2267_v10 }
 0x5cb   : > { %v2277_v28 = vpop.permute.xlu1 %2276 }
 0x5cc   : > { %v2285_v15 = vsel %vm1455_vm4, %v2283_v13, %v2277_v28  ;;  %v2275_v20 = vpop.permute.xlu0 %2274 }
 0x5cd   : > { %2287 = vst.msk [vmem:[#allocation4 + $0x18] sm:$0xff] %vm428_vm0, %v2285_v15  ;;  %v2284_v52 = vsel %vm1455_vm4, %v2282_v14, %v2275_v20 }
 0x5ce   : > { %2286 = vst.msk [vmem:[#allocation4 + $0x10] sm:$0xff] %vm428_vm0, %v2284_v52 }
 0x5d4   : > { %v2291_v18 = vld [vmem:[#allocation4 + $0x18] sm:$0xff] }
 0x5d5   : > { %v2290_v17 = vld [vmem:[#allocation4 + $0x10] sm:$0xff] }
 0x5d6   : > { %2813 = vmatprep.mubr.msk.f32.mxu1 %vm428_vm0, %v2290_v17 }
 0x5d7   : > { %2814 = vmatmul.mubr.msk.f32.gmra.mrb[18].mxu1 %vm428_vm0, %v2291_v18 }
 0x66c   : > { %v2812_v22 = vpop.f32.mrb[16].mxu1 }
 0x66d   : > { %v2387_v35 = vadd.f32 %v2812_v22, %v2611_v16  ;;  %v2381_v36 = vpop.f32.mrb[17].mxu1 }
 0x66e   : > { %v2382_v55 = vadd.f32 %v2611_v16, %v2381_v36 }
 0x66f   : > { %2401 = vst.msk [vmem:[%s407_s21 + $0x8] sm:$0xff] %vm428_vm0, %v2387_v35 }
 0x670   : > { %2400 = vst.msk [vmem:[%s407_s21] sm:$0xff] %vm428_vm0, %v2382_v55 }
 0x6aa   : > { %v2815_v23 = vpop.f32.mrb[18].mxu1 }
 0x6ab   : > { %v2397_v25 = vadd.f32 %v2815_v23, %v2611_v16  ;;  %v2391_v27 = vpop.f32.mrb[19].mxu1 }
 0x6ac   : > { %v2392_v29 = vadd.f32 %v2611_v16, %v2391_v27 }
 0x6ad   : > { %2403 = vst.msk [vmem:[%s407_s21 + $0x18] sm:$0xff] %vm428_vm0, %v2397_v25 }
 0x6ae   : > { %2402 = vst.msk [vmem:[%s407_s21 + $0x10] sm:$0xff] %vm428_vm0, %v2392_v29 }
 0x6af   : > { %3156 = shalt.err (!%p3153_p3)
}
 0x6b0   : > { %s3157_s10 = scalar_lea.hbm %s3871_s14, 512  ;;  %s3161_s27 = scalar_lea.hbm %s3926_s8, 1024 }
 0x6b1   : > { %p3158_p9 = scmp.ne.s32.totalorder %s3871_s14, %s3157_s10  ;;  %p3162_p7 = scmp.lt.u32.totalorder %s3871_s14, %s3926_s8 }
 0x6b2   : > { %p3163_p12 = scmp.lt.u32.totalorder %s3161_s27, %s3157_s10  ;;  %p3165_p2 = scmp.lt.u32.totalorder %s3157_s10, %s3871_s14 }
 0x6b3   : > { %p3159_p13 = pnand %p3158_p9, %p3441_p5 }
 0x6b4   : > { %p3164_p1 = por %p3163_p12, %p3162_p7 }
 0x6b5   : > { %p3160_p11 = pneg %p3159_p13 }
 0x6b6   : > { %p3166_p4 = por %p3165_p2, %p3164_p1 }
 0x6b8   : > { %p3167_p0 = pnand %p3166_p4, %p3160_p11 }
 0x6ba   : > { %3170 = shalt.err (!%p3167_p0)
}
 0x6bb   : > { %s3241_s13 = smov 128  }
 0x6bc   : > { %2856 = dma.vmem_to_hbm [thread:$0]  (%p3441_p5), %s3866_s11, 512, %s3871_s14, %s2405_s18, %s3241_s13, %s3241_s13, %s3237_s24  }
 0x6bd PF: > { %s3960_s21 = sld [smem:[#allocation20_spill]]  ;;  %s3961_s19 = sld [smem:[#allocation21_spill]] }
 0x6be   : > { %p3963_p6 = scmp.ge.s32.totalorder %s3221_s30, 2 }
 0x6c3   : > { %s2434_s25 = sand.u32 1, %s3960_s21   ;;  %p3962_p8 = scmp.ne.s32.totalorder %s3961_s19, 0 }
 0x6c4   : > { %s2435_s17 = scalar_lea.sflag [#allocation7], %s2434_s25 }
 0x6c5   : > { %p2876_p10 = pnand %p3963_p6, %p3962_p8 }
 0x6c7   : > { %3204 = dma.done.wait (!%p2876_p10), %s2435_s17, 512  }
 0x6c8   : > { %3206 = vsyncadd (!%p2876_p10), %s2435_s17, 4294966784  ;;  %p25_p3 = scmp.ge.s32.totalorder %s3427_s26, 4   ;;  %s3964_s27 = smov %s3213_s28 }
 0x6c9   : > { %s3965_s28 = smov %s3217_s29  ;;  %s3966_s29 = smov %s3437_s22 }
 0x6ca   : > { %s3967_s30 = smov %s3427_s26  ;;  %27 = sbr.rel (!%p25_p3) target bundleno = 13 (0xd), region = 122 }
 0x6d1   :  { %2440 = vsyncpa [#allocation6], 1 }
 0x6d2   :  { %2442 = vsyncpa [#allocation6 + $0x1], 1 }
 0x6d3   :  { %2443 = vsyncpa [#allocation9], 1 }
 0x6d4   :  { %2445 = vsyncpa [#allocation9 + $0x1], 1 }
 0x6d5   :  { %2446 = vsyncpa [#allocation12], 1 }
 0x6d6   :  { %2447 = vsyncpa [#allocation7], 1 }
 0x6d7   :  { %2449 = vsyncpa [#allocation7 + $0x1], 1 }

// kernel: tpu_custom_call.1
= control target key start
LH: loop header
LB: loop body
LE: loop exit
PB: predicated region body
PF: predicated region fallthrough
CT: control target
= control target key end

     0   :  { %s3918_s0 = inlined_call_operand.hbm [shape: f32[4,16,32], index: 0, kind: input, shape index: {}]   ;;  %s3919_s1 = inlined_call_operand.hbm [shape: f32[4,8,32], index: 1, kind: input, shape index: {}]   ;;  %s3920_s2 = inlined_call_operand.hbm [shape: f32[32,32], index: 2, kind: input, shape index: {}]   ;;  %s3921_s3 = inlined_call_operand.vmem [shape: f32[1,32], index: 3, kind: input, shape index: {}]   ;;  %s3922_s4 = inlined_call_operand.hbm [shape: f32[32,64], index: 4, kind: input, shape index: {}]   ;;  %s3923_s5 = inlined_call_operand.vmem [shape: f32[1,64], index: 5, kind: input, shape index: {}]   ;;  %s3924_s6 = inlined_call_operand.hbm [shape: f32[32,32], index: 6, kind: input, shape index: {}]   ;;  %s3925_s7 = inlined_call_operand.vmem [shape: f32[1,32], index: 7, kind: input, shape index: {}]   ;;  %s3926_s8 = inlined_call_operand.hbm [shape: f32[4,16,32], index: 8, kind: output, shape index: {}]  }
   0x1   :  { %3934 = sst [smem:[#allocation22_spill]] %s3918_s0 }
   0x2   :  { %3935 = sst [smem:[#allocation23_spill]] %s3920_s2 }
   0x3   :  { %3936 = sst [smem:[#allocation24_spill]] %s3922_s4 }
   0x4   :  { %3937 = sst [smem:[#allocation25_spill]] %s3924_s6 }
   0x5   :  { %13 = vsyncpa [#allocation6], 0 }
   0x6   :  { %15 = vsyncpa [#allocation6 + $0x1], 0 }
   0x7   :  { %16 = vsyncpa [#allocation9], 0 }
   0x8   :  { %18 = vsyncpa [#allocation9 + $0x1], 0 }
   0x9   :  { %19 = vsyncpa [#allocation12], 0 }
   0xa   :  { %20 = vsyncpa [#allocation7], 0 }
   0xb   :  { %22 = vsyncpa [#allocation7 + $0x1], 0  ;;  %s3287_s27 = smov 0   ;;  %s3289_s28 = smov 0  }
   0xc   :  { %s3291_s29 = smov 0   ;;  %s3293_s30 = smov 0  }
   0xd LB: > { %3938 = sst [smem:[#allocation20_spill]] %s3209_s27  ;;  %s3308_s9 = sadd.s32 4294967295, %s3221_s30   ;;  %s3221_s30 = sphi %s3293_s30, %s3967_s30   ;;  %s3217_s29 = sphi %s3291_s29, %s3966_s29   ;;  %s3213_s28 = sphi %s3289_s28, %s3965_s28   ;;  %s3209_s27 = sphi %s3287_s27, %s3964_s27  }
   0xe   : > { %s2543_s10 = sadd.s32 4294967294, %s3221_s30   ;;  %p48_p0 = scmp.ne.s32.totalorder %s3213_s28, %s3209_s27 }
   0xf   : > { %p3927_p1 = scmp.eq.s32.totalorder %s3308_s9, 0  ;;  %p230_p3 = scmp.eq.s32.totalorder %s2543_s10, 1 }
  0x10   : > { %p2544_p5 = scmp.ge.s32.totalorder %s3221_s30, 1  ;;  %p237_p7 = scmp.lt.s32.totalorder %s3221_s30, 3 }
  0x11   : > { %p3317_p4 = por %p3927_p1, %p48_p0  ;;  %p3322_p6 = por %p230_p3, %p48_p0 }
  0x12   : > { %p3327_p8 = pnand %p2544_p5, %p237_p7  ;;  %s3223_s14 = smov [#allocation10]  }
  0x13   : > { %s3939_s11 = scalar_select %p3317_p4, 1, 0 }
  0x14   : > { %s3940_s12 = scalar_select %p3322_p6, 1, 0 }
  0x15   : > { %s3942_s13 = scalar_select %p3327_p8, 1, 0 }
  0x16   : > { %3941 = sst [smem:[#allocation21_spill]] %s3940_s12  ;;  %s249_s15 = sshll.u32 %s3223_s14, 4  ;;  %s3331_s15 = int_to_ptr.vmem [resolvable:$true] %s249_s15 }
  0x17   : > { %p2858_p9 = pneg %p3327_p8  ;;  %s3224_s17 = smov [#allocation11]  }
  0x18   : > { %s265_s18 = sshll.u32 %s3224_s17, 4  ;;  %s3225_s19 = smov [#allocation13]   ;;  %s3342_s18 = int_to_ptr.vmem [resolvable:$true] %s265_s18 }
  0x19   : > { %p3338_p11 = pnand %p2858_p9, %p3927_p1  ;;  %s3344_s20 = sshll.u32 %s3225_s19, 4  ;;  %s282_s20 = int_to_ptr.vmem [resolvable:$true] %s3344_s20 }
  0x1a   : > { %s3944_s2 = sld [smem:[#allocation23_spill]] }
  0x1b   : > { %p3354_p13 = pneg %p3338_p11 }
  0x20   : > { %s2999_s23 = scalar_lea.hbm %s3944_s2, 512 }
  0x21   : > { %p3000_p12 = scmp.ne.s32.totalorder %s3944_s2, %s2999_s23  ;;  %p3006_p5 = scmp.lt.u32.totalorder %s2999_s23, %s3944_s2 }
  0x23   : > { %p3002_p0 = pnand %p3354_p13, %p3000_p12 }
  0x25   : > { %p3003_p3 = pneg %p3002_p0 }
  0x27   : > { %p3008_p7 = pnand %p3006_p5, %p3003_p3 }
  0x29   : > { %3011 = shalt.err (!%p3008_p7)
}
  0x2a   : > { %s3012_s17 = scalar_lea.vmem %s3331_s15, 512  ;;  %p3020_p2 = scmp.lt.s32.totalorder %s3331_s15, %s3331_s15 }
  0x2b   : > { %p3013_p9 = scmp.ne.s32.totalorder %s3331_s15, %s3012_s17  ;;  %p3021_p6 = scmp.lt.s32.totalorder %s3012_s17, %s3012_s17 }
  0x2d   : > { %p3015_p10 = pnand %p3013_p9, %p3354_p13  ;;  %p3022_p12 = por %p3021_p6, %p3020_p2 }
  0x2f   : > { %p3016_p1 = pneg %p3015_p10 }
  0x31   : > { %p3023_p0 = pnand %p3022_p12, %p3016_p1 }
  0x33   : > { %3026 = shalt.err (!%p3023_p0)
}
  0x34   : > { %s3932_s19 = smov 128   ;;  %s3227_s21 = smov 8  }
  0x35   : > { %2861 = dma.hbm_to_vmem [thread:$0]  (!%p3338_p11), %s3944_s2, 512, %s3331_s15, [#allocation9], %s3932_s19, %s3932_s19, %s3227_s21  }
  0x36   : > { %s3946_s4 = sld [smem:[#allocation24_spill]] }
  0x3c   : > { %s3027_s10 = scalar_lea.hbm %s3946_s4, 512 }
  0x3d   : > { %p3028_p1 = scmp.ne.s32.totalorder %s3946_s4, %s3027_s10  ;;  %p3034_p10 = scmp.lt.u32.totalorder %s3027_s10, %s3946_s4 }
  0x3f   : > { %p3030_p2 = pnand %p3028_p1, %p3354_p13 }
  0x41   : > { %p3031_p6 = pneg %p3030_p2 }
  0x43   : > { %p3036_p3 = pnand %p3034_p10, %p3031_p6 }
  0x45   : > { %3039 = shalt.err (!%p3036_p3)
}
  0x46   : > { %s3040_s15 = scalar_lea.vmem %s3342_s18, 512  ;;  %p3048_p12 = scmp.lt.s32.totalorder %s3342_s18, %s3342_s18 }
  0x47   : > { %p3041_p5 = scmp.ne.s32.totalorder %s3342_s18, %s3040_s15  ;;  %p3049_p0 = scmp.lt.s32.totalorder %s3040_s15, %s3040_s15 }
  0x49   : > { %p3043_p7 = pnand %p3041_p5, %p3354_p13  ;;  %p3050_p1 = por %p3049_p0, %p3048_p12 }
  0x4b   : > { %p3044_p9 = pneg %p3043_p7 }
  0x4d   : > { %p3051_p2 = pnand %p3050_p1, %p3044_p9 }
  0x4f   : > { %3054 = shalt.err (!%p3051_p2)
}
  0x50   : > { %2864 = dma.hbm_to_vmem [thread:$0]  (!%p3338_p11), %s3946_s4, 512, %s3342_s18, [#allocation12], %s3932_s19, %s3932_s19, %s3227_s21  }
  0x51   : > { %s3947_s6 = sld [smem:[#allocation25_spill]] }
  0x57   : > { %s3055_s24 = scalar_lea.hbm %s3947_s6, 512 }
  0x58   : > { %p3056_p6 = scmp.ne.s32.totalorder %s3947_s6, %s3055_s24  ;;  %p3062_p5 = scmp.lt.u32.totalorder %s3055_s24, %s3947_s6 }
  0x5a   : > { %p3058_p10 = pnand %p3056_p6, %p3354_p13 }
  0x5c   : > { %p3059_p3 = pneg %p3058_p10 }
  0x5e   : > { %p3064_p7 = pnand %p3062_p5, %p3059_p3 }
  0x60   : > { %3067 = shalt.err (!%p3064_p7)
}
  0x61   : > { %s3068_s15 = scalar_lea.vmem %s282_s20, 512  ;;  %p3076_p1 = scmp.lt.s32.totalorder %s282_s20, %s282_s20 }
  0x62   : > { %p3069_p9 = scmp.ne.s32.totalorder %s282_s20, %s3068_s15  ;;  %p3077_p2 = scmp.lt.s32.totalorder %s3068_s15, %s3068_s15 }
  0x64   : > { %p3071_p12 = pnand %p3069_p9, %p3354_p13  ;;  %p3078_p4 = por %p3077_p2, %p3076_p1 }
  0x66   : > { %p3072_p0 = pneg %p3071_p12 }
  0x68   : > { %p3079_p8 = pnand %p3078_p4, %p3072_p0 }
  0x6a   : > { %3082 = shalt.err (!%p3079_p8)
}
  0x6b   : > { %2867 = dma.hbm_to_vmem [thread:$0]  (!%p3338_p11), %s3947_s6, 512, %s282_s20, [#allocation12], %s3932_s19, %s3932_s19, %s3227_s21  }
  0x6c   : > { %s3427_s26 = sadd.s32 1, %s3221_s30   ;;  %s35_s12 = sadd.s32 1, %s3217_s29 }
  0x6d   : > { %s32_s16 = ssub.s32 %s3221_s30, %s3427_s26  ;;  %p42_p8 = scmp.ne.s32.totalorder %s3217_s29, %s3213_s28 }
  0x6e   : > { %p33_p4 = scmp.eq.s32.totalorder %s32_s16, 0  ;;  %p43_p13 = scmp.eq.s32.totalorder %s3221_s30, 0 }
  0x6f   : > { %p2882_p6 = scmp.lt.s32.totalorder %s3221_s30, 2  ;;  %p3948_p3 = scmp.eq.s32.totalorder %s3308_s9, 1 }
  0x70   : > { %s3437_s22 = scalar_select %p33_p4, %s3217_s29, %s35_s12  }
  0x71   : > { %p44_p10 = por %p43_p13, %p42_p8  ;;  %p3441_p5 = por %p3948_p3, %p42_p8 }
  0x72   : > { %s3446_s24 = sand.u32 1, %s3217_s29   ;;  %s2623_s20 = sshll.u32 %s3221_s30, 9 }
  0x73   : > { %s2549_s25 = sshll.u32 %s3446_s24, 5  ;;  %s3950_s0 = sld [smem:[#allocation22_spill]] }
  0x74   : > { %s302_s15 = scalar_lea.vmem [#allocation5], %s2549_s25  ;;  %p3455_p11 = pnand %p2882_p6, %p44_p10 }
  0x75   : > { %s310_s18 = sshll.u32 %s302_s15, 4  ;;  %s299_s12 = scalar_lea.sflag [#allocation6], %s3446_s24  ;;  %s3459_s18 = int_to_ptr.vmem [resolvable:$true] %s310_s18 }
  0x76   : > { %p3085_p9 = pneg %p3455_p11 }
  0x79   : > { %s3453_s17 = scalar_lea.hbm %s3950_s0, %s2623_s20  ;;  %s3088_s10 = scalar_lea.hbm %s3950_s0, 1024 }
  0x7a   : > { %s3083_s19 = scalar_lea.hbm %s3453_s17, 512  ;;  %p3089_p1 = scmp.lt.u32.totalorder %s3453_s17, %s3950_s0 }
  0x7b   : > { %p3084_p7 = scmp.ne.s32.totalorder %s3453_s17, %s3083_s19  ;;  %p3090_p2 = scmp.lt.u32.totalorder %s3088_s10, %s3083_s19 }
  0x7c   : > { %p3092_p8 = scmp.lt.u32.totalorder %s3083_s19, %s3453_s17 }
  0x7d   : > { %p3086_p12 = pnand %p3085_p9, %p3084_p7  ;;  %p3091_p4 = por %p3090_p2, %p3089_p1 }
  0x7f   : > { %p3087_p0 = pneg %p3086_p12  ;;  %p3093_p13 = por %p3092_p8, %p3091_p4 }
  0x81   : > { %p3094_p6 = pnand %p3093_p13, %p3087_p0 }
  0x83   : > { %3097 = shalt.err (!%p3094_p6)
}
  0x84   : > { %s3098_s16 = scalar_lea.vmem %s3459_s18, 512  ;;  %s3228_s20 = smov [#allocation5]  }
  0x85   : > { %p3099_p10 = scmp.ne.s32.totalorder %s3459_s18, %s3098_s16  ;;  %s3103_s25 = sshll.u32 %s3228_s20, 4  ;;  %s3104_s25 = int_to_ptr.vmem [resolvable:$false] %s3103_s25 }
  0x86   : > { %s3105_s14 = scalar_lea.vmem %s3104_s25, 1024  ;;  %p3106_p12 = scmp.lt.s32.totalorder %s3459_s18, %s3104_s25 }
  0x87   : > { %p3101_p3 = pnand %p3099_p10, %p3085_p9  ;;  %p3107_p1 = scmp.lt.s32.totalorder %s3105_s14, %s3098_s16 }
  0x89   : > { %p3102_p7 = pneg %p3101_p3  ;;  %p3108_p2 = por %p3107_p1, %p3106_p12 }
  0x8b   : > { %p3109_p4 = pnand %p3108_p2, %p3102_p7 }
  0x8d   : > { %3112 = shalt.err (!%p3109_p4)
}
  0x8e   : > { %s3952_s19 = smov 128   ;;  %s2553_s10 = sshll.u32 %s3446_s24, 4 }
  0x8f   : > { %2871 = dma.hbm_to_vmem [thread:$0]  (!%p3455_p11), %s3453_s17, 512, %s3459_s18, %s299_s12, %s3952_s19, %s3952_s19, %s3227_s21  }
  0x90   : > { %s2624_s15 = sshll.u32 %s3221_s30, 8  ;;  %s324_s14 = scalar_lea.vmem [#allocation8], %s2553_s10 }
  0x91   : > { %s3498_s25 = scalar_lea.hbm %s3919_s1, %s2624_s15  ;;  %s331_s0 = sshll.u32 %s324_s14, 4  ;;  %s3500_s0 = int_to_ptr.vmem [resolvable:$true] %s331_s0 }
  0x92   : > { %s3953_s2 = sand.u32 1, %s3221_s30   ;;  %s3113_s6 = scalar_lea.hbm %s3498_s25, 256 }
  0x93   : > { %s3504_s4 = scalar_lea.sflag [#allocation9], %s3953_s2  ;;  %p3114_p0 = scmp.ne.s32.totalorder %s3498_s25, %s3113_s6 }
  0x94   : > { %s3118_s18 = scalar_lea.hbm %s3919_s1, 512  ;;  %p3119_p6 = scmp.lt.u32.totalorder %s3498_s25, %s3919_s1 }
  0x95   : > { %p3116_p8 = pnand %p3114_p0, %p3085_p9  ;;  %p3120_p10 = scmp.lt.u32.totalorder %s3118_s18, %s3113_s6 }
  0x96   : > { %p3122_p7 = scmp.lt.u32.totalorder %s3113_s6, %s3498_s25 }
  0x97   : > { %p3117_p13 = pneg %p3116_p8  ;;  %p3121_p3 = por %p3120_p10, %p3119_p6 }
  0x99   : > { %p3123_p12 = por %p3122_p7, %p3121_p3 }
  0x9b   : > { %p3124_p1 = pnand %p3123_p12, %p3117_p13 }
  0x9d   : > { %3127 = shalt.err (!%p3124_p1)
}
  0x9e   : > { %s3128_s2 = scalar_lea.vmem %s3500_s0, 256  ;;  %s3229_s10 = smov [#allocation8]  }
  0x9f   : > { %p3129_p2 = scmp.ne.s32.totalorder %s3500_s0, %s3128_s2  ;;  %s3133_s16 = sshll.u32 %s3229_s10, 4  ;;  %s3134_s16 = int_to_ptr.vmem [resolvable:$false] %s3133_s16 }
  0xa0   : > { %s3135_s20 = scalar_lea.vmem %s3134_s16, 512  ;;  %p3136_p8 = scmp.lt.s32.totalorder %s3500_s0, %s3134_s16 }
  0xa1   : > { %p3131_p4 = pnand %p3129_p2, %p3085_p9  ;;  %p3137_p6 = scmp.lt.s32.totalorder %s3135_s20, %s3128_s2 }
  0xa3   : > { %p3132_p0 = pneg %p3131_p4  ;;  %p3138_p10 = por %p3137_p6, %p3136_p8 }
  0xa5   : > { %p3139_p3 = pnand %p3138_p10, %p3132_p0 }
  0xa7   : > { %3142 = shalt.err (!%p3139_p3)
}
  0xa8   : > { %2874 = dma.hbm_to_vmem [thread:$0]  (!%p3455_p11), %s3498_s25, 256, %s3500_s0, %s3504_s4, %s3952_s19, %s3952_s19, %s3227_s21  }
  0xa9   : > { %p3954_p9 = scmp.ne.s32.totalorder %s3942_s13, 0 }
  0xaa   : > { %s3536_s6 = sand.u32 (!%p3954_p9), 1, %s3213_s28   ;;  %p3955_p13 = scmp.ne.s32.totalorder (!%p3954_p9), %s3939_s11, 0 }
  0xab   : > { %343 = sbr.rel (%p3954_p9) target bundleno = 1725 (0x6bd), region = 52  ;;  %s2557_s14 = sshll.u32 (!%p3954_p9), %s3536_s6, 5 }
  0xac   : > { %s346_s24 = scalar_lea.sflag (!%p3954_p9), [#allocation6], %s3536_s6  ;;  %s3542_s27 = scalar_lea.vmem (!%p3954_p9), [#allocation5], %s2557_s14 }
  0xb2   : > { %3188 = dma.done.wait (%p3955_p13), %s346_s24, 512  }
  0xb3   : > { %3190 = vsyncadd (%p3955_p13), %s346_s24, 4294966784  ;;  %s354_s0 = sand.u32 1, %s3308_s9   ;;  %s2558_s4 = sshll.u32 %s3536_s6, 4 }
  0xb4   : > { %s355_s13 = scalar_lea.sflag [#allocation9], %s354_s0  ;;  %s3550_s21 = scalar_lea.vmem [#allocation8], %s2558_s4 }
  0xb5   : > { %3192 = dma.done.wait (%p3955_p13), %s355_s13, 256  }
  0xb6   : > { %3194 = vsyncadd (%p3955_p13), %s355_s13, 4294967040  ;;  %p3956_p11 = scmp.eq.s32.totalorder %s3308_s9, 0 }
  0xb8   : > { %3196 = dma.done.wait (%p3956_p11), [#allocation9], 512   ;;  %p3957_p7 = pmov %p3956_p11 }
  0xba   : > { %3198 = vsyncadd (%p3957_p7), [#allocation9], 4294966784  ;;  %p3958_p12 = pmov %p3957_p7 }
  0xbb   : > { %p3959_p1 = pmov %p3957_p7 }
  0xbc   : > { %3200 = dma.done.wait (%p3958_p12), [#allocation12], 1024  }
  0xbd   : > { %3202 = vsyncadd (%p3959_p1), [#allocation12], 4294966272  ;;  %vm428_vm0 = vcmask 261120   ;;  %v417_v0 = vld [vmem:[#allocation10] sm:$0xff]  ;;  %v418_v1 = vld [vmem:[#allocation10 + $0x8] sm:$0xff]  ;;  %vm626_vm1 = vcmask 523264  }
  0xbe   : > { %v419_v2 = vld [vmem:[#allocation10 + $0x10] sm:$0xff]  ;;  %v2816_v3 = vpack.c.bf16 %v418_v1, %v417_v0  ;;  %v420_v4 = vld [vmem:[#allocation10 + $0x18] sm:$0xff]  ;;  %v411_v5 = vld [vmem:[%s3542_s27] sm:$0xff]  ;;  %vm632_vm2 = vcmask 64512   ;;  %s3230_s18 = smov 120   ;;  %s3231_s12 = smov 112  }
  0xbf   : > { %v2820_v6 = vpack.c.bf16 %v420_v4, %v419_v2  ;;  %2705 = vmatprep.mubr.msk.f32.mxu0 %vm428_vm0, %v411_v5  ;;  %v534_v7 = vld [vmem:[#allocation11] sm:$0xff]  ;;  %v535_v8 = vld [vmem:[#allocation11 + $0x8] sm:$0xff]  ;;  %v536_v10 = vld [vmem:[#allocation11 + $0x10] sm:$0xff]  ;;  %s3232_s15 = smov 104   ;;  %s3233_s2 = smov 96   ;;  %vm1452_vm3 = vcmask 130048  }
  0xc0   : > { %2817 = vmatprep.subr.bf16.mxu0 %v2816_v3  ;;  %v2824_v9 = vpack.c.bf16 %v535_v8, %v534_v7  ;;  %v537_v11 = vld [vmem:[#allocation11 + $0x18] sm:$0xff]  ;;  %v412_v12 = vld [vmem:[%s3542_s27 + $0x8] sm:$0xff]  ;;  %v413_v13 = vld [vmem:[%s3542_s27 + $0x10] sm:$0xff]  ;;  %s3234_s10 = smov 80   ;;  %s3235_s16 = smov 88   ;;  %vm1455_vm4 = vcmask 195584  }
  0xc1   : > { %2819 = vmatpush3.bf16.msra.mxu0 %v2816_v3  ;;  %v2828_v14 = vpack.c.bf16 %v537_v11, %v536_v10  ;;  %v414_v15 = vld [vmem:[%s3542_s27 + $0x18] sm:$0xff]  ;;  %v415_v16 = vld [vmem:[%s3550_s21] sm:$0xff]  ;;  %s3236_s20 = smov 72   ;;  %s3237_s24 = smov 8  }
  0xc2   : > { %2821 = vmatprep.subr.bf16.mxu0 %v2820_v6  ;;  %v416_v17 = vld [vmem:[%s3550_s21 + $0x8] sm:$0xff]  ;;  %v2563_v18 = vld [vmem:[%s3921_s3] ss:$0 sm:$0xff]  ;;  %s3238_s27 = smov 16   ;;  %s3239_s0 = smov 24  }
  0xc3   : > { %v2568_v29 = vld [vmem:[%s3923_s5] ss:$0 sm:$0xff]  ;;  %s407_s21 = scalar_lea.vmem [#allocation14], %s2557_s14  ;;  %s2626_s19 = sshll.u32 %s3308_s9, 9 }
  0xc4   : > { %s2419_s11 = sshll.u32 %s407_s21, 4  ;;  %s3871_s14 = scalar_lea.hbm %s3926_s8, %s2626_s19  ;;  %s3866_s11 = int_to_ptr.vmem [resolvable:$true] %s2419_s11 }
  0xc5   : > { %2823 = vmatpush3.bf16.msra.mxu0 %v2820_v6  ;;  %s3143_s9 = scalar_lea.vmem %s3866_s11, 512 }
  0xc6   : > { %2825 = vmatprep.subr.bf16.mxu0 %v2824_v9  ;;  %p3144_p2 = scmp.ne.s32.totalorder %s3866_s11, %s3143_s9 }
  0xc8   : > { %2706 = vmatmul.mubr.msk.f32.vlgmr.msra.gmra.mrb[0].mxu0 %vm428_vm0, %v412_v12  ;;  %p3145_p4 = pnand %p3144_p2, %p3441_p5 }
  0xc9   : > { %2827 = vmatpush3.bf16.msra.mxu0 %v2824_v9  ;;  %2708 = vmatprep.mubr.msk.f32.mxu0 %vm428_vm0, %v413_v13 }
  0xca   : > { %2829 = vmatprep.subr.bf16.mxu0 %v2828_v14  ;;  %p3146_p0 = pneg %p3145_p4 }
  0xcc   : > { %2709 = vmatmul.mubr.msk.f32.gmra.mrb[2].mxu0 %vm428_vm0, %v414_v15 }
  0xcd   : > { %2831 = vmatpush3.bf16.msra.mxu0 %v2828_v14  ;;  %2719 = vmatprep.mubr.msk.f32.mxu0 %vm428_vm0, %v415_v16 }
  0xd0   : > { %2720 = vmatmul.mubr.msk.f32.vlgmr.msra.gmra.mrb[4].mxu0 %vm428_vm0, %v416_v17 }
 0x19b   : > { %v2707_v19 = vpop.f32.mrb[0].mxu0 }
 0x19c   : > { %v513_v20 = vadd.f32 %v2707_v19, %v2563_v18  ;;  %v507_v21 = vpop.f32.mrb[1].mxu0 }
 0x19d   : > { %v508_v22 = vadd.f32 %v2563_v18, %v507_v21 }
 0x19e   : > { %v527_v23 = vmul.f32 0.35355338, %v513_v20 }
 0x19f   : > { %v526_v24 = vmul.f32 0.35355338, %v508_v22  ;;  %v2710_v25 = vpop.f32.mrb[2].mxu0 }
 0x1a0   : > { %531 = vst.msk [vmem:[#allocation2 + $0x8] sm:$0xff] %vm428_vm0, %v527_v23  ;;  %v523_v26 = vadd.f32 %v2710_v25, %v2563_v18  ;;  %v517_v27 = vpop.f32.mrb[3].mxu0 }
 0x1a1   : > { %530 = vst.msk [vmem:[#allocation2] sm:$0xff] %vm428_vm0, %v526_v24  ;;  %v518_v28 = vadd.f32 %v2563_v18, %v517_v27 }
 0x1a2   : > { %v529_v30 = vmul.f32 0.35355338, %v523_v26 }
 0x1a3   : > { %v528_v31 = vmul.f32 0.35355338, %v518_v28  ;;  %v2721_v32 = vpop.f32.mrb[4].mxu0 }
 0x1a4   : > { %533 = vst.msk [vmem:[#allocation2 + $0x18] sm:$0xff] %vm428_vm0, %v529_v30  ;;  %v623_v33 = vadd.f32 %v2721_v32, %v2568_v29  ;;  %v617_v34 = vpop.f32.mrb[5].mxu0 }
 0x1a5   : > { %532 = vst.msk [vmem:[#allocation2 + $0x10] sm:$0xff] %vm428_vm0, %v528_v31  ;;  %v618_v35 = vadd.f32 %v2568_v29, %v617_v34 }
 0x1a6   : > { %628 = vst.msk [vmem:[#allocation3 + $0x8] sm:$0xff] %vm626_vm1, %v623_v33 }
 0x1a7   : > { %627 = vst.msk [vmem:[#allocation3] sm:$0xff] %vm626_vm1, %v618_v35  ;;  %v630_v36 = vld [vmem:[#allocation2 + $0x8] sm:$0xff] }
 0x1a8   : > { %831 = vrot.lane.b32.xlu1 %v630_v36, %s3230_s18  ;;  %v629_v37 = vld [vmem:[#allocation2] sm:$0xff] }
 0x1a9   : > { %829 = vrot.lane.b32.xlu0 %v629_v37, %s3230_s18  ;;  %2724 = vmatprep.mubr.msk.f32.mxu1 %vm632_vm2, %v629_v37 }
 0x1ab   : > { %v1461_v40 = vld [vmem:[#allocation2 + $0x18] sm:$0xff] }
 0x1ac   : > { %1030 = vrot.lane.b32.xlu1 %v630_v36, %s3231_s12  ;;  %v1460_v41 = vld [vmem:[#allocation2 + $0x10] sm:$0xff] }
 0x1ad   : > { %v3597_v39 = vld [vmem:[#allocation3 + $0x8] sm:$0xff] }
 0x1ae   : > { %v3587_v38 = vld [vmem:[#allocation3] sm:$0xff] }
 0x1af   : > { %2722 = vmatprep.subr.msk.mxu1 %vm632_vm2, %v3587_v38  ;;  %833 = vrot.lane.b32.xlu0 %v3587_v38, %s3230_s18 }
 0x1b0   : > { %1032 = vrot.lane.b32.xlu1 %v3587_v38, %s3231_s12  ;;  %2723 = vmatpush3.xpose.msk.msra.mxu1 %vm632_vm2, %v3587_v38 }
 0x1b3   : > { %1028 = vrot.lane.b32.xlu0 %v629_v37, %s3231_s12  ;;  %2725 = vmatmul.mubr.msk.f32.vlgmr.msra.gmra.mrb[0].mxu1 %vm632_vm2, %v630_v36 }
 0x1b4   : > { %1227 = vrot.lane.b32.xlu1 %v629_v37, %s3232_s15 }
 0x1b7   : > { %1231 = vrot.lane.b32.xlu0 %v3587_v38, %s3232_s15 }
 0x1b8   : > { %1663 = vrot.lane.b32.xlu1 %v3597_v39, %s3230_s18 }
 0x1bb   : > { %1229 = vrot.lane.b32.xlu0 %v630_v36, %s3232_s15 }
 0x1bc   : > { %1661 = vrot.lane.b32.xlu1 %v1461_v40, %s3230_s18 }
 0x1bf   : > { %1659 = vrot.lane.b32.xlu0 %v1460_v41, %s3230_s18  ;;  %s2405_s18 = scalar_lea.sflag [#allocation7], %s3536_s6 }
 0x1c0   : > { %1858 = vrot.lane.b32.xlu1 %v1460_v41, %s3231_s12 }
 0x1c3   : > { %1862 = vrot.lane.b32.xlu0 %v3597_v39, %s3231_s12 }
 0x1c4   : > { %2061 = vrot.lane.b32.xlu1 %v3597_v39, %s3232_s15 }
 0x1c7   : > { %1860 = vrot.lane.b32.xlu0 %v1461_v40, %s3231_s12  ;;  %s3240_s12 = smov [#allocation14]  }
 0x1c8   : > { %2059 = vrot.lane.b32.xlu1 %v1461_v40, %s3232_s15 }
 0x1cb   : > { %2057 = vrot.lane.b32.xlu0 %v1460_v41, %s3232_s15  ;;  %s3147_s15 = sshll.u32 %s3240_s12, 4  ;;  %s3148_s15 = int_to_ptr.vmem [resolvable:$false] %s3147_s15 }
 0x1cc   : > { %745 = vrot.lane.b32.xlu1 %v3587_v38, %s3233_s2  ;;  %p3150_p8 = scmp.lt.s32.totalorder %s3866_s11, %s3148_s15 }
 0x21a   : > { %v832_v42 = vpop.permute.xlu1 %831 }
 0x21b   : > { %v830_v43 = vpop.permute.xlu0 %829 }
 0x21c   : > { %2734 = vmatprep.mubr.msk.f32.mxu1 %vm632_vm2, %v830_v43 }
 0x21e   : > { %v1031_v44 = vpop.permute.xlu1 %1030 }
 0x221   : > { %v834_v45 = vpop.permute.xlu0 %833 }
 0x222   : > { %v1033_v46 = vpop.permute.xlu1 %1032  ;;  %2732 = vmatprep.subr.msk.mxu1 %vm632_vm2, %v834_v45 }
 0x223   : > { %2733 = vmatpush3.xpose.msk.msra.mxu1 %vm632_vm2, %v834_v45 }
 0x224   : > { %2742 = vmatprep.subr.msk.mxu1 %vm632_vm2, %v1033_v46 }
 0x225   : > { %v1029_v47 = vpop.permute.xlu0 %1028 }
 0x226   : > { %v1228_v48 = vpop.permute.xlu1 %1227  ;;  %2735 = vmatmul.mubr.msk.f32.vlgmr.msra.gmra.mrb[2].mxu1 %vm632_vm2, %v832_v42 }
 0x227   : > { %2743 = vmatpush3.xpose.msk.msra.mxu1 %vm632_vm2, %v1033_v46  ;;  %2744 = vmatprep.mubr.msk.f32.mxu1 %vm632_vm2, %v1029_v47 }
 0x229   : > { %v1232_v49 = vpop.permute.xlu0 %1231 }
 0x22a   : > { %v1664_v50 = vpop.permute.xlu1 %1663  ;;  %2745 = vmatmul.mubr.msk.f32.vlgmr.msra.gmra.mrb[4].mxu1 %vm632_vm2, %v1031_v44  ;;  %2752 = vmatprep.subr.msk.mxu1 %vm632_vm2, %v1232_v49 }
 0x22b   : > { %2753 = vmatpush3.xpose.msk.msra.mxu1 %vm632_vm2, %v1232_v49  ;;  %2754 = vmatprep.mubr.msk.f32.mxu1 %vm632_vm2, %v1228_v48 }
 0x22c   : > { %2762 = vmatprep.subr.msk.mxu1 %vm632_vm2, %v3597_v39 }
 0x22d   : > { %v1230_v51 = vpop.permute.xlu0 %1229 }
 0x22e   : > { %v1662_v52 = vpop.permute.xlu1 %1661  ;;  %2755 = vmatmul.mubr.msk.f32.vlgmr.msra.gmra.mrb[6].mxu1 %vm632_vm2, %v1230_v51 }
 0x22f   : > { %2763 = vmatpush3.xpose.msk.msra.mxu1 %vm632_vm2, %v3597_v39  ;;  %2764 = vmatprep.mubr.msk.f32.mxu1 %vm632_vm2, %v1460_v41 }
 0x230   : > { %2772 = vmatprep.subr.msk.mxu1 %vm632_vm2, %v1664_v50 }
 0x231   : > { %v1660_v53 = vpop.permute.xlu0 %1659 }
 0x232   : > { %v1859_v54 = vpop.permute.xlu1 %1858  ;;  %2765 = vmatmul.mubr.msk.f32.vlgmr.msra.gmra.mrb[8].mxu1 %vm632_vm2, %v1461_v40 }
 0x233   : > { %2773 = vmatpush3.xpose.msk.msra.mxu1 %vm632_vm2, %v1664_v50  ;;  %2774 = vmatprep.mubr.msk.f32.mxu1 %vm632_vm2, %v1660_v53 }
 0x235   : > { %v1863_v55 = vpop.permute.xlu0 %1862 }
 0x236   : > { %v2062_v56 = vpop.permute.xlu1 %2061  ;;  %2775 = vmatmul.mubr.msk.f32.vlgmr.msra.gmra.mrb[10].mxu1 %vm632_vm2, %v1662_v52  ;;  %2782 = vmatprep.subr.msk.mxu1 %vm632_vm2, %v1863_v55 }
 0x237   : > { %2783 = vmatpush3.xpose.msk.msra.mxu1 %vm632_vm2, %v1863_v55  ;;  %2784 = vmatprep.mubr.msk.f32.mxu1 %vm632_vm2, %v1859_v54 }
 0x238   : > { %2792 = vmatprep.subr.msk.mxu1 %vm632_vm2, %v2062_v56 }
 0x239   : > { %v1861_v57 = vpop.permute.xlu0 %1860 }
 0x23a   : > { %v2060_v58 = vpop.permute.xlu1 %2059  ;;  %2785 = vmatmul.mubr.msk.f32.vlgmr.msra.gmra.mrb[12].mxu1 %vm632_vm2, %v1861_v57 }
 0x23b   : > { %2793 = vmatpush3.xpose.msk.msra.mxu1 %vm632_vm2, %v2062_v56 }
 0x23d   : > { %v2058_v59 = vpop.permute.xlu0 %2057 }
 0x23e   : > { %v746_v60 = vpop.permute.xlu1 %745  ;;  %2794 = vmatprep.mubr.msk.f32.mxu1 %vm632_vm2, %v2058_v59 }
 0x23f   : > { %2727 = vmatprep.subr.mxu0 %v746_v60  ;;  %2795 = vmatmul.mubr.msk.f32.vlgmr.msra.gmra.mrb[14].mxu1 %vm632_vm2, %v2060_v58 }
 0x240   : > { %2728 = vmatpush3.msra.mxu0 %v746_v60 }
 0x286   : > { %v2726_v61 = vpop.f32.mrb[0].mxu1 }
 0x287   : > { %v3634_v62 = vpop.f32.mrb[1].mxu1  ;;  %v720_v63 = vsel %vm632_vm2, %v2726_v61, -inf }
 0x288   : > { %721 = vmax.xlane.f32.xlu1 %v720_v63  ;;  %v717_v0 = vsel %vm632_vm2, %v3634_v62, -inf }
 0x289   : > { %718 = vmax.xlane.f32.xlu0 %v717_v0 }
 0x2f9   : > { %v3639_v1 = vpop.f32.mrb[2].mxu1 }
 0x2fa   : > { %v3641_v2 = vpop.f32.mrb[3].mxu1  ;;  %v919_v3 = vsel %vm632_vm2, %v3639_v1, -inf }
 0x2fb   : > { %920 = vmax.xlane.f32.xlu0 %v919_v3  ;;  %v916_v6 = vsel %vm632_vm2, %v3641_v2, -inf }
 0x2fd   : > { %v3645_v4 = vpop.f32.mrb[4].mxu1 }
 0x2fe   : > { %v3647_v5 = vpop.f32.mrb[5].mxu1  ;;  %v1118_v10 = vsel %vm632_vm2, %v3645_v4, -inf }
 0x2ff   : > { %917 = vmax.xlane.f32.xlu0 %v916_v6  ;;  %v1115_v7 = vsel %vm632_vm2, %v3647_v5, -inf }
 0x300   : > { %1116 = vmax.xlane.f32.xlu1 %v1115_v7 }
 0x301   : > { %v3653_v8 = vpop.f32.mrb[6].mxu1 }
 0x302   : > { %v3655_v9 = vpop.f32.mrb[7].mxu1  ;;  %v1317_v14 = vsel %vm632_vm2, %v3653_v8, -inf }
 0x303   : > { %1119 = vmax.xlane.f32.xlu0 %v1118_v10  ;;  %v1314_v11 = vsel %vm632_vm2, %v3655_v9, -inf }
 0x304   : > { %1315 = vmax.xlane.f32.xlu1 %v1314_v11 }
 0x305   : > { %v3661_v12 = vpop.f32.mrb[8].mxu1 }
 0x306   : > { %v3663_v13 = vpop.f32.mrb[9].mxu1  ;;  %v1550_v18 = vsel %vm632_vm2, %v3661_v12, -inf }
 0x307   : > { %1318 = vmax.xlane.f32.xlu0 %v1317_v14  ;;  %v1547_v15 = vsel %vm632_vm2, %v3663_v13, -inf }
 0x308   : > { %1548 = vmax.xlane.f32.xlu1 %v1547_v15 }
 0x309   : > { %v3669_v16 = vpop.f32.mrb[10].mxu1 }
 0x30a   : > { %v3671_v17 = vpop.f32.mrb[11].mxu1  ;;  %v1749_v22 = vsel %vm632_vm2, %v3669_v16, -inf }
 0x30b   : > { %1551 = vmax.xlane.f32.xlu0 %v1550_v18  ;;  %v1746_v19 = vsel %vm632_vm2, %v3671_v17, -inf }
 0x30c   : > { %1747 = vmax.xlane.f32.xlu1 %v1746_v19 }
 0x30d   : > { %v3677_v20 = vpop.f32.mrb[12].mxu1 }
 0x30e   : > { %v3679_v21 = vpop.f32.mrb[13].mxu1  ;;  %v1948_v25 = vsel %vm632_vm2, %v3677_v20, -inf }
 0x30f   : > { %1750 = vmax.xlane.f32.xlu0 %v1749_v22  ;;  %v1945_v23 = vsel %vm632_vm2, %v3679_v21, -inf }
 0x310   : > { %1946 = vmax.xlane.f32.xlu1 %v1945_v23 }
 0x312   : > { %v3685_v24 = vpop.f32.mrb[14].mxu1 }
 0x313   : > { %v3689_v26 = vpop.f32.mrb[15].mxu1  ;;  %1949 = vmax.xlane.f32.xlu0 %v1948_v25  ;;  %v2147_v27 = vsel %vm632_vm2, %v3685_v24, -inf }
 0x314   : > { %v2144_v31 = vsel %vm632_vm2, %v3689_v26, -inf }
 0x315   : > { %v722_v28 = vpop.xlane.xlu1 %721 }
 0x316   : > { %v724_v29 = vsub.f32 %v2726_v61, %v722_v28  ;;  %v719_v34 = vpop.xlane.xlu0 %718 }
 0x317   : > { %2148 = vmax.xlane.f32.xlu0 %v2147_v27  ;;  %v723_v35 = vsub.f32 %v3634_v62, %v719_v34 }
 0x318   : > { %v727_v30 = vmul.f32 1.442695, %v724_v29 }
 0x319   : > { %v725_v36 = vmul.f32 1.442695, %v723_v35 }
 0x31a   : > { %2935 = vpow2.f32 %v727_v30 }
 0x31b   : > { %2937 = vpow2.f32 %v725_v36 }
 0x321   : > { %1143 = vrot.lane.b32.xlu1 %v3587_v38, %s3234_s10 }
 0x324   : > { %v3700_v32 = vpop.eup %2935 }
 0x325   : > { %v732_v33 = vsel %vm632_vm2, %v3700_v32, 0.0  ;;  %v3708_v37 = vpop.eup %2937 }
 0x326   : > { %v729_v40 = vsel %vm632_vm2, %v3708_v37, 0.0 }
 0x32d   : > { %944 = vrot.lane.b32.xlu0 %v3587_v38, %s3235_s16 }
 0x331   : > { %1575 = vrot.lane.b32.xlu0 %v3597_v39, %s3233_s2  ;;  %s3149_s2 = scalar_lea.vmem %s3148_s15, 1024 }
 0x332   : > { %p3151_p6 = scmp.lt.s32.totalorder %s3149_s2, %s3143_s9 }
 0x334   : > { %p3152_p10 = por %p3151_p6, %p3150_p8 }
 0x336   : > { %p3153_p3 = pnand %p3152_p10, %p3146_p0 }
 0x345   : > { %2145 = vmax.xlane.f32.xlu1 %v2144_v31 }
 0x350   : > { %733 = vadd.xlane.f32.xlu0 %v732_v33 }
 0x356   : > { %1342 = vrot.lane.b32.xlu1 %v3587_v38, %s3236_s20 }
 0x35a   : > { %1774 = vrot.lane.b32.xlu1 %v3597_v39, %s3235_s16 }
 0x37e   : > { %730 = vadd.xlane.f32.xlu1 %v729_v40 }
 0x388   : > { %v921_v41 = vpop.xlane.xlu0 %920 }
 0x389   : > { %v923_v42 = vsub.f32 %v3639_v1, %v921_v41 }
 0x38b   : > { %v926_v43 = vmul.f32 1.442695, %v923_v42 }
 0x38c   : > { %v918_v44 = vpop.xlane.xlu0 %917 }
 0x38d   : > { %2939 = vpow2.f32 %v926_v43  ;;  %v922_v38 = vsub.f32 %v3641_v2, %v918_v44  ;;  %v1117_v45 = vpop.xlane.xlu1 %1116 }
 0x38e   : > { %v1121_v46 = vsub.f32 %v3647_v5, %v1117_v45 }
 0x38f   : > { %v924_v47 = vmul.f32 1.442695, %v922_v38 }
 0x390   : > { %v1123_v48 = vmul.f32 1.442695, %v1121_v46  ;;  %v1120_v49 = vpop.xlane.xlu0 %1119 }
 0x391   : > { %2941 = vpow2.f32 %v924_v47  ;;  %v1122_v50 = vsub.f32 %v3645_v4, %v1120_v49  ;;  %v1316_v51 = vpop.xlane.xlu1 %1315 }
 0x392   : > { %v1320_v52 = vsub.f32 %v3655_v9, %v1316_v51  ;;  %2943 = vpow2.f32 %v1123_v48 }
 0x393   : > { %v1125_v53 = vmul.f32 1.442695, %v1122_v50 }
 0x394   : > { %v1322_v54 = vmul.f32 1.442695, %v1320_v52  ;;  %v1319_v55 = vpop.xlane.xlu0 %1318 }
 0x395   : > { %2945 = vpow2.f32 %v1125_v53  ;;  %v1321_v56 = vsub.f32 %v3653_v8, %v1319_v55  ;;  %v1549_v57 = vpop.xlane.xlu1 %1548 }
 0x396   : > { %v1553_v58 = vsub.f32 %v3663_v13, %v1549_v57  ;;  %2947 = vpow2.f32 %v1322_v54 }
 0x397   : > { %v3719_v59 = vpop.eup %2939  ;;  %v1324_v60 = vmul.f32 1.442695, %v1321_v56 }
 0x398   : > { %v1555_v61 = vmul.f32 1.442695, %v1553_v58  ;;  %v1552_v62 = vpop.xlane.xlu0 %1551  ;;  %v931_v63 = vsel %vm632_vm2, %v3719_v59, 0.0 }
 0x399   : > { %2949 = vpow2.f32 %v1324_v60  ;;  %v1554_v0 = vsub.f32 %v3661_v12, %v1552_v62  ;;  %v1748_v1 = vpop.xlane.xlu1 %1747  ;;  %932 = vadd.xlane.f32.xlu0 %v931_v63 }
 0x39a   : > { %v1752_v2 = vsub.f32 %v3671_v17, %v1748_v1  ;;  %2951 = vpow2.f32 %v1555_v61 }
 0x39b   : > { %v3725_v3 = vpop.eup %2941  ;;  %v1557_v4 = vmul.f32 1.442695, %v1554_v0 }
 0x39c   : > { %v1754_v5 = vmul.f32 1.442695, %v1752_v2  ;;  %v1751_v6 = vpop.xlane.xlu0 %1750  ;;  %v928_v7 = vsel %vm632_vm2, %v3725_v3, 0.0  ;;  %v3729_v8 = vpop.eup %2943 }
 0x39d   : > { %2953 = vpow2.f32 %v1557_v4  ;;  %v1753_v9 = vsub.f32 %v3669_v16, %v1751_v6  ;;  %v1947_v10 = vpop.xlane.xlu1 %1946  ;;  %929 = vadd.xlane.f32.xlu1 %v928_v7  ;;  %v1127_v17 = vsel %vm632_vm2, %v3729_v8, 0.0 }
 0x39e   : > { %v1951_v11 = vsub.f32 %v3679_v21, %v1947_v10  ;;  %2955 = vpow2.f32 %v1754_v5 }
 0x39f   : > { %v3733_v12 = vpop.eup %2945  ;;  %v1756_v13 = vmul.f32 1.442695, %v1753_v9 }
 0x3a0   : > { %v1953_v14 = vmul.f32 1.442695, %v1951_v11  ;;  %v1950_v15 = vpop.xlane.xlu0 %1949  ;;  %v1130_v18 = vsel %vm632_vm2, %v3733_v12, 0.0  ;;  %v3739_v19 = vpop.eup %2947 }
 0x3a1   : > { %2957 = vpow2.f32 %v1756_v13  ;;  %v1952_v16 = vsub.f32 %v3677_v20, %v1950_v15  ;;  %1128 = vadd.xlane.f32.xlu1 %v1127_v17  ;;  %1131 = vadd.xlane.f32.xlu0 %v1130_v18  ;;  %v1326_v25 = vsel %vm632_vm2, %v3739_v19, 0.0  ;;  %v3779_v46 = vpop.permute.xlu1 %1143 }
 0x3a2   : > { %2959 = vpow2.f32 %v1953_v14 }
 0x3a3   : > { %v3742_v21 = vpop.eup %2949  ;;  %v1955_v22 = vmul.f32 1.442695, %v1952_v16 }
 0x3a4   : > { %v2149_v23 = vpop.xlane.xlu0 %2148  ;;  %v1329_v27 = vsel %vm632_vm2, %v3742_v21, 0.0  ;;  %v3748_v28 = vpop.eup %2951 }
 0x3a5   : > { %2961 = vpow2.f32 %v1955_v22  ;;  %v2151_v29 = vsub.f32 %v3685_v24, %v2149_v23  ;;  %1327 = vadd.xlane.f32.xlu1 %v1326_v25  ;;  %1330 = vadd.xlane.f32.xlu0 %v1329_v27  ;;  %v1559_v33 = vsel %vm632_vm2, %v3748_v28, 0.0 }
 0x3a7   : > { %v3751_v20 = vpop.eup %2953  ;;  %v2154_v30 = vmul.f32 1.442695, %v2151_v29 }
 0x3a8   : > { %v945_v31 = vpop.permute.xlu0 %944  ;;  %v1562_v34 = vsel %vm632_vm2, %v3751_v20, 0.0  ;;  %v3757_v35 = vpop.eup %2955 }
 0x3a9   : > { %2963 = vpow2.f32 %v2154_v30  ;;  %1560 = vadd.xlane.f32.xlu1 %v1559_v33  ;;  %1563 = vadd.xlane.f32.xlu0 %v1562_v34  ;;  %v1758_v24 = vsel %vm632_vm2, %v3757_v35, 0.0 }
 0x3aa   : > { %2737 = vmatprep.subr.mxu0 %v945_v31 }
 0x3ab   : > { %v3759_v36 = vpop.eup %2957 }
 0x3ac   : > { %v1761_v40 = vsel %vm632_vm2, %v3759_v36, 0.0  ;;  %v3765_v41 = vpop.eup %2959  ;;  %v3788_v52 = vpop.permute.xlu0 %1575 }
 0x3ad   : > { %1759 = vadd.xlane.f32.xlu1 %v1758_v24  ;;  %1762 = vadd.xlane.f32.xlu0 %v1761_v40  ;;  %v1957_v43 = vsel %vm632_vm2, %v3765_v41, 0.0 }
 0x3af   : > { %v3767_v42 = vpop.eup %2961 }
 0x3b0   : > { %v1960_v44 = vsel %vm632_vm2, %v3767_v42, 0.0 }
 0x3b1   : > { %1958 = vadd.xlane.f32.xlu1 %v1957_v43  ;;  %1961 = vadd.xlane.f32.xlu0 %v1960_v44 }
 0x3b3   : > { %v3773_v38 = vpop.eup %2963 }
 0x3b4   : > { %v2159_v45 = vsel %vm632_vm2, %v3773_v38, 0.0 }
 0x3b5   : > { %2160 = vadd.xlane.f32.xlu0 %v2159_v45 }
 0x3cb   : > { %1973 = vrot.lane.b32.xlu0 %v3597_v39, %s3234_s10 }
 0x3d2   : > { %v2146_v47 = vpop.xlane.xlu1 %2145 }
 0x3d3   : > { %v2150_v48 = vsub.f32 %v3689_v26, %v2146_v47 }
 0x3d5   : > { %v2152_v49 = vmul.f32 1.442695, %v2150_v48 }
 0x3d6   : > { %v3790_v53 = vpop.permute.xlu1 %1342 }
 0x3d7   : > { %2965 = vpow2.f32 %v2152_v49 }
 0x3da   : > { %v3792_v55 = vpop.permute.xlu1 %1774 }
 0x3dd   : > { %v734_v54 = vpop.xlane.xlu0 %733 }
 0x3de   : > { %2967 = vrcp.f32 %v734_v54 }
 0x3e1   : > { %v3782_v50 = vpop.eup %2965 }
 0x3e2   : > { %v2156_v51 = vsel %vm632_vm2, %v3782_v50, 0.0 }
 0x3e3   : > { %2157 = vadd.xlane.f32.xlu1 %v2156_v51 }
 0x3e8   : > { %v2968_v56 = vpop.eup %2967 }
 0x3e9   : > { %v738_v57 = vmul.f32 %v2968_v56, %v734_v54 }
 0x3eb   : > { %v740_v60 = vsub.f32 2.0, %v738_v57 }
 0x3ed   : > { %v742_v63 = vmul.f32 %v2968_v56, %v740_v60 }
 0x3ef   : > { %v744_v1 = vmul.f32 %v3700_v32, %v742_v63 }
 0x3f4   : > { %2172 = vrot.lane.b32.xlu1 %v3597_v39, %s3236_s20 }
 0x40b   : > { %v731_v26 = vpop.xlane.xlu1 %730 }
 0x40c   : > { %2969 = vrcp.f32 %v731_v26 }
 0x416   : > { %v2970_v58 = vpop.eup %2969 }
 0x417   : > { %v737_v61 = vmul.f32 %v2970_v58, %v731_v26 }
 0x419   : > { %v739_v62 = vsub.f32 2.0, %v737_v61 }
 0x41b   : > { %v741_v0 = vmul.f32 %v2970_v58, %v739_v62 }
 0x41d   : > { %v743_v39 = vmul.f32 %v3708_v37, %v741_v0 }
 0x41f   : > { %2729 = vmatprep.mubr.msk.f32.mxu0 %vm632_vm2, %v743_v39 }
 0x420   : > { %2730 = vmatmul.mubr.msk.f32.vlgmr.msra.gmra.mrb[6].mxu0 %vm632_vm2, %v744_v1 }
 0x421   : > { %2738 = vmatpush3.msra.mxu0 %v945_v31 }
 0x422   : > { %2747 = vmatprep.subr.mxu0 %v3779_v46 }
 0x426   : > { %v933_v2 = vpop.xlane.xlu0 %932 }
 0x427   : > { %2971 = vrcp.f32 %v933_v2 }
 0x42a   : > { %v930_v4 = vpop.xlane.xlu1 %929 }
 0x42b   : > { %2973 = vrcp.f32 %v930_v4 }
 0x42e   : > { %v1129_v5 = vpop.xlane.xlu1 %1128  ;;  %v1132_v6 = vpop.xlane.xlu0 %1131 }
 0x42f   : > { %2975 = vrcp.f32 %v1129_v5 }
 0x430   : > { %2977 = vrcp.f32 %v1132_v6 }
 0x431   : > { %v2972_v7 = vpop.eup %2971 }
 0x432   : > { %v937_v9 = vmul.f32 %v2972_v7, %v933_v2  ;;  %v1328_v37 = vpop.xlane.xlu1 %1327  ;;  %v1331_v10 = vpop.xlane.xlu0 %1330 }
 0x433   : > { %2979 = vrcp.f32 %v1328_v37 }
 0x434   : > { %2981 = vrcp.f32 %v1331_v10  ;;  %v939_v11 = vsub.f32 2.0, %v937_v9 }
 0x435   : > { %v2974_v32 = vpop.eup %2973 }
 0x436   : > { %v936_v13 = vmul.f32 %v2974_v32, %v930_v4  ;;  %v1561_v14 = vpop.xlane.xlu1 %1560  ;;  %v1564_v15 = vpop.xlane.xlu0 %1563  ;;  %v941_v16 = vmul.f32 %v2972_v7, %v939_v11 }
 0x437   : > { %2983 = vrcp.f32 %v1561_v14 }
 0x438   : > { %v938_v17 = vsub.f32 2.0, %v936_v13  ;;  %2985 = vrcp.f32 %v1564_v15  ;;  %v943_v24 = vmul.f32 %v3719_v59, %v941_v16 }
 0x439   : > { %v2976_v18 = vpop.eup %2975 }
 0x43a   : > { %v2978_v22 = vpop.eup %2977  ;;  %v940_v23 = vmul.f32 %v2974_v32, %v938_v17  ;;  %v1135_v25 = vmul.f32 %v2976_v18, %v1129_v5  ;;  %v1760_v27 = vpop.xlane.xlu1 %1759 }
 0x43b   : > { %v1763_v29 = vpop.xlane.xlu0 %1762  ;;  %v1136_v30 = vmul.f32 %v2978_v22, %v1132_v6  ;;  %2987 = vrcp.f32 %v1760_v27 }
 0x43c   : > { %v942_v31 = vmul.f32 %v3725_v3, %v940_v23  ;;  %v1137_v33 = vsub.f32 2.0, %v1135_v25  ;;  %2989 = vrcp.f32 %v1763_v29 }
 0x43d   : > { %v2980_v34 = vpop.eup %2979  ;;  %v1138_v40 = vsub.f32 2.0, %v1136_v30 }
 0x43e   : > { %v2982_v43 = vpop.eup %2981  ;;  %v1139_v44 = vmul.f32 %v2976_v18, %v1137_v33  ;;  %v1334_v45 = vmul.f32 %v2980_v34, %v1328_v37  ;;  %v1959_v47 = vpop.xlane.xlu1 %1958  ;;  %2739 = vmatprep.mubr.msk.f32.mxu0 %vm632_vm2, %v942_v31 }
 0x43f   : > { %v1962_v48 = vpop.xlane.xlu0 %1961  ;;  %v1140_v49 = vmul.f32 %v2978_v22, %v1138_v40  ;;  %v1335_v51 = vmul.f32 %v2982_v43, %v1331_v10  ;;  %2991 = vrcp.f32 %v1959_v47  ;;  %2740 = vmatmul.mubr.msk.f32.vlgmr.msra.gmra.mrb[8].mxu0 %vm632_vm2, %v943_v24  ;;  %v2292_v40 = vld [vmem:[#allocation13] sm:$0xff] }
 0x440   : > { %v1141_v3 = vmul.f32 %v3729_v8, %v1139_v44  ;;  %v1336_v54 = vsub.f32 2.0, %v1334_v45  ;;  %2993 = vrcp.f32 %v1962_v48  ;;  %2748 = vmatpush3.msra.mxu0 %v3779_v46  ;;  %v2294_v45 = vld [vmem:[#allocation13 + $0x10] sm:$0xff] }
 0x441   : > { %v2984_v59 = vpop.eup %2983  ;;  %v1142_v26 = vmul.f32 %v3733_v12, %v1140_v49  ;;  %v1337_v56 = vsub.f32 2.0, %v1335_v51  ;;  %2757 = vmatprep.subr.mxu0 %v3790_v53 }
 0x442   : > { %v2986_v57 = vpop.eup %2985  ;;  %v1338_v58 = vmul.f32 %v2980_v34, %v1336_v54  ;;  %v1567_v60 = vmul.f32 %v2984_v59, %v1561_v14  ;;  %2749 = vmatprep.mubr.msk.f32.mxu0 %vm632_vm2, %v1141_v3 }
 0x443   : > { %v1339_v61 = vmul.f32 %v2982_v43, %v1337_v56  ;;  %v1568_v62 = vmul.f32 %v2986_v57, %v1564_v15  ;;  %2750 = vmatmul.mubr.msk.f32.vlgmr.msra.gmra.mrb[10].mxu0 %vm632_vm2, %v1142_v26  ;;  %v2161_v4 = vpop.xlane.xlu0 %2160  ;;  %v2293_v43 = vld [vmem:[#allocation13 + $0x8] sm:$0xff] }
 0x444   : > { %v1340_v8 = vmul.f32 %v3739_v19, %v1338_v58  ;;  %v1569_v63 = vsub.f32 2.0, %v1567_v60  ;;  %2758 = vmatpush3.msra.mxu0 %v3790_v53  ;;  %2995 = vrcp.f32 %v2161_v4  ;;  %v2832_v44 = vpack.c.bf16 %v2293_v43, %v2292_v40 }
 0x445   : > { %v2988_v46 = vpop.eup %2987  ;;  %v1341_v12 = vmul.f32 %v3742_v21, %v1339_v61  ;;  %v1570_v0 = vsub.f32 2.0, %v1568_v62  ;;  %2767 = vmatprep.subr.mxu0 %v3788_v52 }
 0x446   : > { %v2990_v39 = vpop.eup %2989  ;;  %v1571_v1 = vmul.f32 %v2984_v59, %v1569_v63  ;;  %v1766_v2 = vmul.f32 %v2988_v46, %v1760_v27  ;;  %2759 = vmatprep.mubr.msk.f32.mxu0 %vm632_vm2, %v1340_v8  ;;  %2833 = vmatprep.subr.bf16.mxu1 %v2832_v44 }
 0x447   : > { %v1572_v5 = vmul.f32 %v2986_v57, %v1570_v0  ;;  %v1767_v6 = vmul.f32 %v2990_v39, %v1763_v29  ;;  %2760 = vmatmul.mubr.msk.f32.vlgmr.msra.gmra.mrb[12].mxu0 %vm632_vm2, %v1341_v12  ;;  %v1974_v15 = vpop.permute.xlu0 %1973  ;;  %2835 = vmatpush3.bf16.msra.mxu1 %v2832_v44 }
 0x448   : > { %v1573_v19 = vmul.f32 %v3748_v28, %v1571_v1  ;;  %v1768_v7 = vsub.f32 2.0, %v1766_v2  ;;  %2768 = vmatpush3.msra.mxu0 %v3788_v52 }
 0x449   : > { %v2992_v53 = vpop.eup %2991  ;;  %v1574_v21 = vmul.f32 %v3751_v20, %v1572_v5  ;;  %v1769_v9 = vsub.f32 2.0, %v1767_v6  ;;  %2777 = vmatprep.subr.mxu0 %v3792_v55 }
 0x44a   : > { %v2994_v37 = vpop.eup %2993  ;;  %v1770_v10 = vmul.f32 %v2988_v46, %v1768_v7  ;;  %v1965_v32 = vmul.f32 %v2992_v53, %v1959_v47  ;;  %2769 = vmatprep.mubr.msk.f32.mxu0 %vm632_vm2, %v1573_v19  ;;  %v2295_v47 = vld [vmem:[#allocation13 + $0x18] sm:$0xff] }
 0x44b   : > { %v1771_v11 = vmul.f32 %v2990_v39, %v1769_v9  ;;  %v1966_v13 = vmul.f32 %v2994_v37, %v1962_v48  ;;  %2770 = vmatmul.mubr.msk.f32.vlgmr.msra.gmra.mrb[14].mxu0 %vm632_vm2, %v1574_v21  ;;  %v2836_v48 = vpack.c.bf16 %v2295_v47, %v2294_v45 }
 0x44c   : > { %v1772_v28 = vmul.f32 %v3757_v35, %v1770_v10  ;;  %v1967_v14 = vsub.f32 2.0, %v1965_v32  ;;  %2778 = vmatpush3.msra.mxu0 %v3792_v55 }
 0x44d   : > { %v1773_v20 = vmul.f32 %v3759_v36, %v1771_v11  ;;  %v1968_v52 = vsub.f32 2.0, %v1966_v13  ;;  %2787 = vmatprep.subr.mxu0 %v1974_v15  ;;  %2837 = vmatprep.subr.bf16.mxu1 %v2836_v48 }
 0x44e   : > { %v1969_v17 = vmul.f32 %v2992_v53, %v1967_v14  ;;  %2779 = vmatprep.mubr.msk.f32.mxu0 %vm632_vm2, %v1772_v28  ;;  %v2996_v36 = vpop.eup %2995  ;;  %2839 = vmatpush3.bf16.msra.mxu1 %v2836_v48 }
 0x44f   : > { %v1970_v18 = vmul.f32 %v2994_v37, %v1968_v52  ;;  %2780 = vmatmul.mubr.msk.f32.vlgmr.msra.gmra.mrb[16].mxu0 %vm632_vm2, %v1773_v20  ;;  %v2165_v23 = vmul.f32 %v2996_v36, %v2161_v4 }
 0x450   : > { %v1971_v16 = vmul.f32 %v3765_v41, %v1969_v17  ;;  %2788 = vmatpush3.msra.mxu0 %v1974_v15 }
 0x451   : > { %v1972_v22 = vmul.f32 %v3767_v42, %v1970_v18  ;;  %v2167_v27 = vsub.f32 2.0, %v2165_v23 }
 0x452   : > { %2789 = vmatprep.mubr.msk.f32.mxu0 %vm632_vm2, %v1971_v16  ;;  %v2611_v16 = vld [vmem:[%s3925_s7] ss:$0 sm:$0xff] }
 0x453   : > { %2790 = vmatmul.mubr.msk.f32.vlgmr.msra.gmra.mrb[18].mxu0 %vm632_vm2, %v1972_v22  ;;  %v2169_v41 = vmul.f32 %v2996_v36, %v2167_v27 }
 0x455   : > { %v2171_v33 = vmul.f32 %v3773_v38, %v2169_v41 }
 0x470   : > { %v2158_v35 = vpop.xlane.xlu1 %2157 }
 0x471   : > { %2997 = vrcp.f32 %v2158_v35 }
 0x474   : > { %v2173_v55 = vpop.permute.xlu1 %2172 }
 0x475   : > { %2797 = vmatprep.subr.mxu0 %v2173_v55 }
 0x476   : > { %2798 = vmatpush3.msra.mxu0 %v2173_v55 }
 0x47b   : > { %v2998_v25 = vpop.eup %2997 }
 0x47c   : > { %v2164_v29 = vmul.f32 %v2998_v25, %v2158_v35 }
 0x47e   : > { %v2166_v30 = vsub.f32 2.0, %v2164_v29 }
 0x480   : > { %v2168_v31 = vmul.f32 %v2998_v25, %v2166_v30 }
 0x482   : > { %v2170_v42 = vmul.f32 %v3782_v50, %v2168_v31 }
 0x484   : > { %2799 = vmatprep.mubr.msk.f32.mxu0 %vm632_vm2, %v2170_v42 }
 0x485   : > { %2800 = vmatmul.mubr.msk.f32.vlgmr.msra.gmra.mrb[20].mxu0 %vm632_vm2, %v2171_v33 }
 0x4f3   : > { %v2731_v34 = vpop.f32.mrb[6].mxu0 }
 0x4f4   : > { %v820_v24 = vpop.f32.mrb[7].mxu0 }
 0x512   : > { %v2741_v49 = vpop.f32.mrb[8].mxu0 }
 0x513   : > { %1430 = vrot.lane.b32.xlu1 %v2741_v49, %s3237_s24  ;;  %v1019_v50 = vpop.f32.mrb[9].mxu0 }
 0x514   : > { %1428 = vrot.lane.b32.xlu0 %v1019_v50, %s3237_s24 }
 0x516   : > { %v2751_v38 = vpop.f32.mrb[10].mxu0 }
 0x517   : > { %1438 = vrot.lane.b32.xlu1 %v2751_v38, %s3238_s27  ;;  %v1218_v51 = vpop.f32.mrb[11].mxu0 }
 0x518   : > { %1436 = vrot.lane.b32.xlu0 %v1218_v51, %s3238_s27 }
 0x51a   : > { %v2761_v3 = vpop.f32.mrb[12].mxu0 }
 0x51b   : > { %1446 = vrot.lane.b32.xlu1 %v2761_v3, %s3239_s0  ;;  %v1417_v54 = vpop.f32.mrb[13].mxu0 }
 0x51c   : > { %1444 = vrot.lane.b32.xlu0 %v1417_v54, %s3239_s0 }
 0x51e   : > { %v2771_v59 = vpop.f32.mrb[14].mxu0 }
 0x51f   : > { %v1650_v26 = vpop.f32.mrb[15].mxu0 }
 0x522   : > { %v2781_v56 = vpop.f32.mrb[16].mxu0 }
 0x523   : > { %2260 = vrot.lane.b32.xlu1 %v2781_v56, %s3237_s24  ;;  %v1849_v57 = vpop.f32.mrb[17].mxu0 }
 0x524   : > { %2258 = vrot.lane.b32.xlu0 %v1849_v57, %s3237_s24 }
 0x526   : > { %v2791_v58 = vpop.f32.mrb[18].mxu0 }
 0x527   : > { %2268 = vrot.lane.b32.xlu1 %v2791_v58, %s3238_s27  ;;  %v2048_v60 = vpop.f32.mrb[19].mxu0 }
 0x528   : > { %2266 = vrot.lane.b32.xlu0 %v2048_v60, %s3238_s27 }
 0x558   : > { %v2801_v61 = vpop.f32.mrb[20].mxu0 }
 0x559   : > { %2276 = vrot.lane.b32.xlu1 %v2801_v61, %s3239_s0  ;;  %v2247_v62 = vpop.f32.mrb[21].mxu0 }
 0x55a   : > { %2274 = vrot.lane.b32.xlu0 %v2247_v62, %s3239_s0 }
 0x585   : > { %v1431_v8 = vpop.permute.xlu1 %1430 }
 0x586   : > { %v1429_v63 = vpop.permute.xlu0 %1428  ;;  %v1451_v0 = vsel %vm632_vm2, %v2731_v34, %v1431_v8 }
 0x587   : > { %v1450_v39 = vsel %vm632_vm2, %v820_v24, %v1429_v63 }
 0x589   : > { %v1439_v46 = vpop.permute.xlu1 %1438 }
 0x58a   : > { %v1437_v12 = vpop.permute.xlu0 %1436  ;;  %v1454_v1 = vsel %vm1452_vm3, %v1451_v0, %v1439_v46 }
 0x58b   : > { %v1453_v4 = vsel %vm1452_vm3, %v1450_v39, %v1437_v12 }
 0x58d   : > { %v1447_v2 = vpop.permute.xlu1 %1446 }
 0x58e   : > { %v1457_v5 = vsel %vm1455_vm4, %v1454_v1, %v1447_v2  ;;  %v1445_v6 = vpop.permute.xlu0 %1444 }
 0x58f   : > { %1459 = vst.msk [vmem:[#allocation4 + $0x8] sm:$0xff] %vm428_vm0, %v1457_v5  ;;  %v1456_v19 = vsel %vm1455_vm4, %v1453_v4, %v1445_v6 }
 0x590   : > { %1458 = vst.msk [vmem:[#allocation4] sm:$0xff] %vm428_vm0, %v1456_v19 }
 0x595   : > { %v2261_v21 = vpop.permute.xlu1 %2260 }
 0x596   : > { %v2289_v53 = vld [vmem:[#allocation4 + $0x8] sm:$0xff]  ;;  %v2259_v9 = vpop.permute.xlu0 %2258  ;;  %v2281_v32 = vsel %vm632_vm2, %v2771_v59, %v2261_v21 }
 0x597   : > { %v2288_v7 = vld [vmem:[#allocation4] sm:$0xff]  ;;  %v2280_v11 = vsel %vm632_vm2, %v1650_v26, %v2259_v9 }
 0x598   : > { %2810 = vmatprep.mubr.msk.f32.mxu1 %vm428_vm0, %v2288_v7 }
 0x599   : > { %2811 = vmatmul.mubr.msk.f32.vlgmr.msra.gmra.mrb[16].mxu1 %vm428_vm0, %v2289_v53  ;;  %v2269_v37 = vpop.permute.xlu1 %2268 }
 0x59a   : > { %v2267_v10 = vpop.permute.xlu0 %2266  ;;  %v2283_v13 = vsel %vm1452_vm3, %v2281_v32, %v2269_v37 }
 0x59b   : > { %v2282_v14 = vsel %vm1452_vm3, %v2280_v11, %v2267_v10 }
 0x5cb   : > { %v2277_v28 = vpop.permute.xlu1 %2276 }
 0x5cc   : > { %v2285_v15 = vsel %vm1455_vm4, %v2283_v13, %v2277_v28  ;;  %v2275_v20 = vpop.permute.xlu0 %2274 }
 0x5cd   : > { %2287 = vst.msk [vmem:[#allocation4 + $0x18] sm:$0xff] %vm428_vm0, %v2285_v15  ;;  %v2284_v52 = vsel %vm1455_vm4, %v2282_v14, %v2275_v20 }
 0x5ce   : > { %2286 = vst.msk [vmem:[#allocation4 + $0x10] sm:$0xff] %vm428_vm0, %v2284_v52 }
 0x5d4   : > { %v2291_v18 = vld [vmem:[#allocation4 + $0x18] sm:$0xff] }
 0x5d5   : > { %v2290_v17 = vld [vmem:[#allocation4 + $0x10] sm:$0xff] }
 0x5d6   : > { %2813 = vmatprep.mubr.msk.f32.mxu1 %vm428_vm0, %v2290_v17 }
 0x5d7   : > { %2814 = vmatmul.mubr.msk.f32.gmra.mrb[18].mxu1 %vm428_vm0, %v2291_v18 }
 0x66c   : > { %v2812_v22 = vpop.f32.mrb[16].mxu1 }
 0x66d   : > { %v2387_v35 = vadd.f32 %v2812_v22, %v2611_v16  ;;  %v2381_v36 = vpop.f32.mrb[17].mxu1 }
 0x66e   : > { %v2382_v55 = vadd.f32 %v2611_v16, %v2381_v36 }
 0x66f   : > { %2401 = vst.msk [vmem:[%s407_s21 + $0x8] sm:$0xff] %vm428_vm0, %v2387_v35 }
 0x670   : > { %2400 = vst.msk [vmem:[%s407_s21] sm:$0xff] %vm428_vm0, %v2382_v55 }
 0x6aa   : > { %v2815_v23 = vpop.f32.mrb[18].mxu1 }
 0x6ab   : > { %v2397_v25 = vadd.f32 %v2815_v23, %v2611_v16  ;;  %v2391_v27 = vpop.f32.mrb[19].mxu1 }
 0x6ac   : > { %v2392_v29 = vadd.f32 %v2611_v16, %v2391_v27 }
 0x6ad   : > { %2403 = vst.msk [vmem:[%s407_s21 + $0x18] sm:$0xff] %vm428_vm0, %v2397_v25 }
 0x6ae   : > { %2402 = vst.msk [vmem:[%s407_s21 + $0x10] sm:$0xff] %vm428_vm0, %v2392_v29 }
 0x6af   : > { %3156 = shalt.err (!%p3153_p3)
}
 0x6b0   : > { %s3157_s10 = scalar_lea.hbm %s3871_s14, 512  ;;  %s3161_s27 = scalar_lea.hbm %s3926_s8, 1024 }
 0x6b1   : > { %p3158_p9 = scmp.ne.s32.totalorder %s3871_s14, %s3157_s10  ;;  %p3162_p7 = scmp.lt.u32.totalorder %s3871_s14, %s3926_s8 }
 0x6b2   : > { %p3163_p12 = scmp.lt.u32.totalorder %s3161_s27, %s3157_s10  ;;  %p3165_p2 = scmp.lt.u32.totalorder %s3157_s10, %s3871_s14 }
 0x6b3   : > { %p3159_p13 = pnand %p3158_p9, %p3441_p5 }
 0x6b4   : > { %p3164_p1 = por %p3163_p12, %p3162_p7 }
 0x6b5   : > { %p3160_p11 = pneg %p3159_p13 }
 0x6b6   : > { %p3166_p4 = por %p3165_p2, %p3164_p1 }
 0x6b8   : > { %p3167_p0 = pnand %p3166_p4, %p3160_p11 }
 0x6ba   : > { %3170 = shalt.err (!%p3167_p0)
}
 0x6bb   : > { %s3241_s13 = smov 128  }
 0x6bc   : > { %2856 = dma.vmem_to_hbm [thread:$0]  (%p3441_p5), %s3866_s11, 512, %s3871_s14, %s2405_s18, %s3241_s13, %s3241_s13, %s3237_s24  }
 0x6bd PF: > { %s3960_s21 = sld [smem:[#allocation20_spill]]  ;;  %s3961_s19 = sld [smem:[#allocation21_spill]] }
 0x6be   : > { %p3963_p6 = scmp.ge.s32.totalorder %s3221_s30, 2 }
 0x6c3   : > { %s2434_s25 = sand.u32 1, %s3960_s21   ;;  %p3962_p8 = scmp.ne.s32.totalorder %s3961_s19, 0 }
 0x6c4   : > { %s2435_s17 = scalar_lea.sflag [#allocation7], %s2434_s25 }
 0x6c5   : > { %p2876_p10 = pnand %p3963_p6, %p3962_p8 }
 0x6c7   : > { %3204 = dma.done.wait (!%p2876_p10), %s2435_s17, 512  }
 0x6c8   : > { %3206 = vsyncadd (!%p2876_p10), %s2435_s17, 4294966784  ;;  %p25_p3 = scmp.ge.s32.totalorder %s3427_s26, 4   ;;  %s3964_s27 = smov %s3213_s28 }
 0x6c9   : > { %s3965_s28 = smov %s3217_s29  ;;  %s3966_s29 = smov %s3437_s22 }
 0x6ca   : > { %s3967_s30 = smov %s3427_s26  ;;  %27 = sbr.rel (!%p25_p3) target bundleno = 13 (0xd), region = 122 }
 0x6d1   :  { %2440 = vsyncpa [#allocation6], 1 }
 0x6d2   :  { %2442 = vsyncpa [#allocation6 + $0x1], 1 }
 0x6d3   :  { %2443 = vsyncpa [#allocation9], 1 }
 0x6d4   :  { %2445 = vsyncpa [#allocation9 + $0x1], 1 }
 0x6d5   :  { %2446 = vsyncpa [#allocation12], 1 }
 0x6d6   :  { %2447 = vsyncpa [#allocation7], 1 }
 0x6d7   :  { %2449 = vsyncpa [#allocation7 + $0x1], 1 }

</bundles_post_ra>
